<compile_context>
chip_gen: v7x
topology: tpu7x:2x2x1
jax: 0.10.0
libtpu: 0.0.40
codegen_flags: <defaults>
</compile_context>

<pallas_src>
import functools

import jax
import jax.numpy as jnp
from jax.experimental import pallas as pl
from jax.experimental.pallas import tpu as pltpu

NUM_FEATURES = 16     # synthetic stand-in for train_features_input.shape[2]
HIDDEN = 128          # nn.LSTM(hidden_size=128)
NUM_LAYERS = 2        # nn.LSTM(num_layers=2, bidirectional=True)
DENSE1_OUT = 32
DENSE2_OUT = 1

TIME_CHUNK = 128              # max timesteps per recurrence grid step
MAX_ROW_BLOCK = 1024          # max rows per grid step in row-tiled kernels
VMEM_LIMIT = 48 * 1024 * 1024 # raised scoped-VMEM cap (safe on v5e/v6e/v7x)
ACT_DTYPE = jnp.bfloat16      # MXU-facing activations / weights


def _round_up(n, m):
    return ((n + m - 1) // m) * m


def _pick_row_block(natural_rows, cap=MAX_ROW_BLOCK):
    """Largest 8-aligned divisor-by-halving of natural_rows that is <= cap."""
    rb = natural_rows
    while rb > cap and rb % 16 == 0:
        rb //= 2
    return rb


def _pick_time_chunk(seq_len, batch_pad):
    """Cap the chunk so double-buffered gate+output blocks fit comfortably in
    VMEM on every generation (v7x: 64 MiB physical per TensorCore)."""
    tc = min(seq_len, TIME_CHUNK)
    budget = 24 * 1024 * 1024
    def chunk_bytes(t):   # bf16 gates-in + h-out blocks, double buffered
        return 2 * t * batch_pad * (4 * HIDDEN + HIDDEN) * 2
    while tc > 8 and chunk_bytes(tc) > budget:
        tc = _round_up(tc // 2, 8)
    return max(tc, 1)


# ----------------------------------------------------------------------------
# Row-tiled matmul + bias (hoisted LSTM input projection for all timesteps and
# both directions: (T*B, D) @ (D, 8H) + b).  bf16 operands, f32 accumulation,
# bf16 output.
# ----------------------------------------------------------------------------
def matmul_bias_kernel(x_ref, w_ref, b_ref, out_ref):
    x = x_ref[...].astype(w_ref.dtype)          # cast-in-kernel (layer-0 is f32)
    acc = jnp.dot(x, w_ref[...], preferred_element_type=jnp.float32)
    out_ref[...] = (acc + b_ref[...]).astype(out_ref.dtype)


def matmul_bias(x2d, w, b, *, block_rows, out_dtype=ACT_DTYPE):
    n, d = x2d.shape
    f = w.shape[1]
    rb = max(min(block_rows, n), 1)
    n_pad = _round_up(n, rb)
    if n_pad != n:            # fallback only; callers keep n a multiple of rb
        x2d = jnp.pad(x2d, ((0, n_pad - n), (0, 0)))
    out = pl.pallas_call(
        matmul_bias_kernel,
        out_shape=jax.ShapeDtypeStruct((n_pad, f), out_dtype),
        grid_spec=pltpu.PrefetchScalarGridSpec(
            num_scalar_prefetch=0,
            grid=(n_pad // rb,),
            in_specs=[
                pl.BlockSpec((rb, d), lambda i: (i, 0)),
                pl.BlockSpec((d, f), lambda i: (0, 0)),
                pl.BlockSpec((1, f), lambda i: (0, 0)),
            ],
            out_specs=pl.BlockSpec((rb, f), lambda i: (i, 0)),
        ),
        compiler_params=pltpu.CompilerParams(
            dimension_semantics=("parallel",),
            vmem_limit_bytes=VMEM_LIMIT),
    )(x2d, w, b)
    return out if n_pad == n else out[:n]


# ----------------------------------------------------------------------------
# Fused bidirectional LSTM recurrence.  grid = (direction, time_chunk); gate
# pre-activations arrive precomputed (bf16).  Only h_prev @ W_hh and the gate
# nonlinearities run per timestep; h/c stay in f32 vregs inside a chunk
# (fori_loop carry) and persist across chunks via VMEM scratch.
# ----------------------------------------------------------------------------
def bilstm_recurrence_kernel(g_ref, whh_ref, out_ref, h_scr, c_scr,
                             *, seq_len, tc, nc, hidden, unroll):
    d = pl.program_id(0)                  # 0 = forward, 1 = backward
    c = pl.program_id(1)                  # chunk step along the time axis
    tb = c + d * (nc - 1 - 2 * c)         # time-block actually processed

    @pl.when(c == 0)
    def _():
        h_scr[...] = jnp.zeros_like(h_scr)
        c_scr[...] = jnp.zeros_like(c_scr)

    whh = whh_ref[0]                      # (H, 4H) bf16, this direction's W_hh

    def sig(x):
        # sigmoid via tanh: one EUP op instead of exp + reciprocal.
        return 0.5 * jnp.tanh(0.5 * x) + 0.5

    def make_step(masked):
        def step(i, carry):
            h_prev, c_prev = carry
            t = i + d * (tc - 1 - 2 * i)  # local time index (reversed for bwd)
            gates = (g_ref[t].astype(jnp.float32)
                     + jnp.dot(h_prev.astype(whh.dtype), whh,
                               preferred_element_type=jnp.float32))
            i_g = sig(gates[:, 0 * hidden:1 * hidden])
            f_g = sig(gates[:, 1 * hidden:2 * hidden])
            g_g = jnp.tanh(gates[:, 2 * hidden:3 * hidden])
            o_g = sig(gates[:, 3 * hidden:4 * hidden])
            c_new = f_g * c_prev + i_g * g_g
            h_new = o_g * jnp.tanh(c_new)
            if masked:                    # only the last time block needs this
                valid = (tb * tc + t) < seq_len
                h_new = jnp.where(valid, h_new, h_prev)
                c_new = jnp.where(valid, c_new, c_prev)
            out_ref[t] = h_new.astype(out_ref.dtype)
            return h_new, c_new
        return step

    def run(masked):
        h_last, c_last = jax.lax.fori_loop(
            0, tc, make_step(masked), (h_scr[...], c_scr[...]), unroll=unroll)
        h_scr[...] = h_last
        c_scr[...] = c_last

    if seq_len == nc * tc:
        run(False)                        # no padded timesteps anywhere
    else:
        @pl.when(tb == nc - 1)
        def _():
            run(True)                     # the single chunk with padded steps

        @pl.when(tb != nc - 1)
        def _():
            run(False)                    # mask-free serial critical path


def bilstm_recurrence(gates_tbg, whh_stacked, *, seq_len, tc, nc):
    t_pad, batch, g8 = gates_tbg.shape
    hidden = g8 // 8
    unroll = True if tc <= 16 else 8
    kernel = functools.partial(
        bilstm_recurrence_kernel,
        seq_len=seq_len, tc=tc, nc=nc, hidden=hidden, unroll=unroll)

    def block_map(d, c):
        # fwd walks chunks 0..nc-1, bwd walks nc-1..0; last block axis = direction
        return (c + d * (nc - 1 - 2 * c), 0, d)

    return pl.pallas_call(
        kernel,
        out_shape=jax.ShapeDtypeStruct((t_pad, batch, 2 * hidden), ACT_DTYPE),
        grid_spec=pltpu.PrefetchScalarGridSpec(
            num_scalar_prefetch=0,
            grid=(2, nc),                      # (direction, time-chunk)
            in_specs=[
                pl.BlockSpec((tc, batch, 4 * hidden), block_map),
                pl.BlockSpec((1, hidden, 4 * hidden), lambda d, c: (d, 0, 0)),
            ],
            out_specs=pl.BlockSpec((tc, batch, hidden), block_map),
            scratch_shapes=[
                pltpu.VMEM((batch, hidden), jnp.float32),   # h state (f32)
                pltpu.VMEM((batch, hidden), jnp.float32),   # c state (f32)
            ],
        ),
        compiler_params=pltpu.CompilerParams(
            # TODO(synk): on v7x switch the direction axis to pltpu.CORE_PARALLEL
            # (or pl.core_map over a 2-core mesh) to split fwd/bwd across the
            # two TensorCores; plain "parallel" is kept here for portability.
            dimension_semantics=("parallel", "arbitrary"),
            vmem_limit_bytes=VMEM_LIMIT),
    )(gates_tbg, whh_stacked)


# ----------------------------------------------------------------------------
# Head: relu -> dense_1 -> relu -> dense_2 (dropout = identity), row-tiled.
# ----------------------------------------------------------------------------
def head_kernel(x_ref, w1_ref, b1_ref, w2_ref, b2_ref, out_ref):
    x = jnp.maximum(x_ref[...], 0).astype(w1_ref.dtype)       # relu on LSTM out
    # TODO(synk): dropout_1 / dropout_2 are inference-mode identities here.
    h = jnp.dot(x, w1_ref[...], preferred_element_type=jnp.float32) + b1_ref[...]
    h = jnp.maximum(h, 0.0)
    # dense_2 (32 -> 1): broadcast-multiply + lane reduction (VPU/XLU) instead
    # of a 1-output-column MXU matmul.
    # TODO(synk): output stays (rb, 1); a lane-dense (rb//128, 128) store would
    # avoid masked vst but needs an in-kernel sublane->lane relayout (tiny win).
    y = jnp.sum(h * w2_ref[...], axis=-1, keepdims=True) + b2_ref[...]
    out_ref[...] = y.astype(out_ref.dtype)


def dense_head(x2d, w1_t, b1, w2_row, b2, *, block_rows):
    n, f = x2d.shape
    rb = max(min(block_rows, n), 1)
    n_pad = _round_up(n, rb)
    if n_pad != n:
        x2d = jnp.pad(x2d, ((0, n_pad - n), (0, 0)))
    out = pl.pallas_call(
        head_kernel,
        out_shape=jax.ShapeDtypeStruct((n_pad, DENSE2_OUT), jnp.float32),
        grid_spec=pltpu.PrefetchScalarGridSpec(
            num_scalar_prefetch=0,
            grid=(n_pad // rb,),
            in_specs=[
                pl.BlockSpec((rb, f), lambda i: (i, 0)),
                pl.BlockSpec((f, DENSE1_OUT), lambda i: (0, 0)),
                pl.BlockSpec((1, DENSE1_OUT), lambda i: (0, 0)),
                pl.BlockSpec((1, DENSE1_OUT), lambda i: (0, 0)),
                pl.BlockSpec((1, DENSE2_OUT), lambda i: (0, 0)),
            ],
            out_specs=pl.BlockSpec((rb, DENSE2_OUT), lambda i: (i, 0)),
        ),
        compiler_params=pltpu.CompilerParams(
            dimension_semantics=("parallel",),
            vmem_limit_bytes=VMEM_LIMIT),
    )(x2d, w1_t, b1, w2_row, b2)
    return out if n_pad == n else out[:n]


# ----------------------------------------------------------------------------
# Parameter init (PyTorch-like uniform(-1/sqrt(fan), 1/sqrt(fan))).
# MXU-facing weights stored in bf16; biases / VPU-side weights stay f32.
# ----------------------------------------------------------------------------
def init_params(key):
    params = {}
    bound_lstm = 1.0 / (HIDDEN ** 0.5)
    for layer in range(NUM_LAYERS):
        d_in = NUM_FEATURES if layer == 0 else 2 * HIDDEN
        wih_t, whh_t, biases = [], [], []
        for _ in range(2):                                    # forward, backward
            key, k1, k2, k3, k4 = jax.random.split(key, 5)
            w_ih = jax.random.uniform(k1, (4 * HIDDEN, d_in), jnp.float32,
                                      -bound_lstm, bound_lstm)
            w_hh = jax.random.uniform(k2, (4 * HIDDEN, HIDDEN), jnp.float32,
                                      -bound_lstm, bound_lstm)
            b_ih = jax.random.uniform(k3, (4 * HIDDEN,), jnp.float32,
                                      -bound_lstm, bound_lstm)
            b_hh = jax.random.uniform(k4, (4 * HIDDEN,), jnp.float32,
                                      -bound_lstm, bound_lstm)
            wih_t.append(jnp.transpose(w_ih))                     # (D, 4H)
            whh_t.append(jnp.transpose(w_hh))                     # (H, 4H)
            biases.append((b_ih + b_hh).reshape(1, 4 * HIDDEN))   # (1, 4H)
        params[f"l{layer}_wih_cat"] = jnp.concatenate(wih_t, 1).astype(ACT_DTYPE)
        params[f"l{layer}_b_cat"] = jnp.concatenate(biases, 1)        # f32 (1,8H)
        params[f"l{layer}_whh"] = jnp.stack(whh_t, 0).astype(ACT_DTYPE)

    bound_d1 = 1.0 / ((2 * HIDDEN) ** 0.5)
    key, k1, k2 = jax.random.split(key, 3)
    params["dense1_w_t"] = jax.random.uniform(
        k1, (2 * HIDDEN, DENSE1_OUT), jnp.float32, -bound_d1, bound_d1
    ).astype(ACT_DTYPE)
    params["dense1_b"] = jax.random.uniform(
        k2, (1, DENSE1_OUT), jnp.float32, -bound_d1, bound_d1)

    bound_d2 = 1.0 / (DENSE1_OUT ** 0.5)
    key, k1, k2 = jax.random.split(key, 3)
    params["dense2_w_row"] = jax.random.uniform(
        k1, (1, DENSE1_OUT), jnp.float32, -bound_d2, bound_d2)   # torch W2: (1,32)
    params["dense2_b"] = jax.random.uniform(
        k2, (1, DENSE2_OUT), jnp.float32, -bound_d2, bound_d2)
    return params


# ----------------------------------------------------------------------------
# Full forward pass (mirrors binaryClassifier.forward)
# ----------------------------------------------------------------------------
@jax.jit
def binary_classifier_forward(inputs_btd, params):
    # inputs_btd: (B, T, NUM_FEATURES), batch_first like the PyTorch module.
    batch, seq_len, feat = inputs_btd.shape

    # Pad batch to a sublane multiple (tiles waste those sublanes anyway) and
    # time to a whole number of chunks ONCE, so all later (T*B,F)<->(T,B,F)
    # reshapes are free views and nothing else is padded/sliced in the pipeline.
    b_pad = max(_round_up(batch, 8), 8)
    tc = _pick_time_chunk(seq_len, b_pad)
    nc = -(-seq_len // tc)
    t_pad = nc * tc

    x = jnp.pad(inputs_btd, ((0, b_pad - batch), (0, t_pad - seq_len), (0, 0)))
    # time-major rows (row = t * B + b); the dense head is row-wise so the big
    # (T, B, 256) activation is never transposed back to batch-major.
    x2d = jnp.transpose(x, (1, 0, 2)).reshape(t_pad * b_pad, feat)

    rb = _pick_row_block(tc * b_pad)

    for layer in range(NUM_LAYERS):
        # Hoisted input projection: (T*B, D) @ (D, 8H) + b for both directions.
        g2d = matmul_bias(x2d, params[f"l{layer}_wih_cat"],
                          params[f"l{layer}_b_cat"], block_rows=rb)  # bf16 (T*B,8H)
        g3d = g2d.reshape(t_pad, b_pad, 8 * HIDDEN)                  # free view
        h3d = bilstm_recurrence(g3d, params[f"l{layer}_whh"],
                                seq_len=seq_len, tc=tc, nc=nc)       # bf16 (Tp,B,2H)
        # Padded time rows stay in the stream (masked inside the next layer's
        # recurrence) => zero-copy layer-to-layer handoff.
        x2d = h3d.reshape(t_pad * b_pad, 2 * HIDDEN)

    # TODO(synk): pack_padded/pad_packed_sequence (total_length=3522) is packing
    # glue; full-length padded batches are used instead.
    y2d = dense_head(x2d, params["dense1_w_t"], params["dense1_b"],
                     params["dense2_w_row"], params["dense2_b"],
                     block_rows=rb)                                  # f32 (T*B, 1)
    y = y2d.reshape(t_pad, b_pad, DENSE2_OUT)
    return y[:seq_len, :batch].transpose(1, 0, 2)                    # (B, T, 1)


# ----------------------------------------------------------------------------
# Pure-JAX reference (f32, lax.scan) for validation.
# ----------------------------------------------------------------------------
@jax.jit
def reference_forward(inputs_btd, params):
    x = inputs_btd.astype(jnp.float32)
    B = x.shape[0]

    def lstm_dir(x_tbd, wih, whh, b, reverse):
        gx = jnp.einsum("tbd,dg->tbg", x_tbd, wih) + b

        def step(carry, g):
            h, c = carry
            gates = g + h @ whh
            i = jax.nn.sigmoid(gates[:, :HIDDEN])
            f = jax.nn.sigmoid(gates[:, HIDDEN:2 * HIDDEN])
            gg = jnp.tanh(gates[:, 2 * HIDDEN:3 * HIDDEN])
            o = jax.nn.sigmoid(gates[:, 3 * HIDDEN:])
            c = f * c + i * gg
            h = o * jnp.tanh(c)
            return (h, c), h

        init = (jnp.zeros((B, HIDDEN)), jnp.zeros((B, HIDDEN)))
        _, hs = jax.lax.scan(step, init, gx, reverse=reverse)
        return hs

    h = jnp.transpose(x, (1, 0, 2))
    for layer in range(NUM_LAYERS):
        wih = params[f"l{layer}_wih_cat"].astype(jnp.float32)
        whh = params[f"l{layer}_whh"].astype(jnp.float32)
        b = params[f"l{layer}_b_cat"]
        fwd = lstm_dir(h, wih[:, :4 * HIDDEN], whh[0], b[:, :4 * HIDDEN], False)
        bwd = lstm_dir(h, wih[:, 4 * HIDDEN:], whh[1], b[:, 4 * HIDDEN:], True)
        h = jnp.concatenate([fwd, bwd], axis=-1)
    h = jnp.maximum(h, 0.0)
    h = h @ params["dense1_w_t"].astype(jnp.float32) + params["dense1_b"]
    h = jnp.maximum(h, 0.0)
    y = jnp.sum(h * params["dense2_w_row"], axis=-1, keepdims=True) + params["dense2_b"]
    return jnp.transpose(y, (1, 0, 2))


if __name__ == "__main__":
    key = jax.random.PRNGKey(0)
    key_params, key_x1, key_x2 = jax.random.split(key, 3)

    params = init_params(key_params)

    # Case 1: small single-chunk sequence (batch=2, seq=8).
    b1, t1 = 2, 8
    x1 = jax.random.normal(key_x1, (b1, t1, NUM_FEATURES), jnp.float32)
    out1 = jax.block_until_ready(binary_classifier_forward(x1, params))
    assert out1.shape == (b1, t1, DENSE2_OUT), out1.shape
    ref1 = jax.block_until_ready(reference_forward(x1, params))
    err1 = float(jnp.max(jnp.abs(out1 - ref1)))
    assert err1 < 1e-1, f"case1 max abs err {err1}"

    # Case 2: multi-chunk with a padded tail (exercises masking, backward chunk
    # order and the padded layer-to-layer handoff).
    b2, t2 = 2, TIME_CHUNK + 2
    x2 = jax.random.normal(key_x2, (b2, t2, NUM_FEATURES), jnp.float32)
    out2 = jax.block_until_ready(binary_classifier_forward(x2, params))
    assert out2.shape == (b2, t2, DENSE2_OUT), out2.shape
    ref2 = jax.block_until_ready(reference_forward(x2, params))
    err2 = float(jnp.max(jnp.abs(out2 - ref2)))
    assert err2 < 1e-1, f"case2 max abs err {err2}"

    print("KERNEL_OK")
</pallas_src>

<mosaic_0001>
module attributes {stable_mosaic.version = 11 : i64} {
  func.func @matmul_bias_kernel(%arg0: i32, %arg1: memref<64x16xf32, #tpu.memory_space<vmem>>, %arg2: memref<16x1024xbf16, #tpu.memory_space<vmem>>, %arg3: memref<1x1024xf32, #tpu.memory_space<vmem>>, %arg4: memref<64x1024xbf16, #tpu.memory_space<vmem>>) attributes {dimension_semantics = [#tpu.dimension_semantics<parallel>], iteration_bounds = array<i64: 1>, scalar_prefetch = 0 : i64, scratch_operands = 0 : i64, tpu.core_type = #tpu.core_type<tc>, window_params = [{transform_indices = @transform_0, window_bounds = array<i64: 64, 16>}, {pipeline_mode = #tpu.pipeline_mode<synchronous>, transform_indices = @transform_1, window_bounds = array<i64: 16, 1024>}, {pipeline_mode = #tpu.pipeline_mode<synchronous>, transform_indices = @transform_2, window_bounds = array<i64: 1, 1024>}, {transform_indices = @transform_3, window_bounds = array<i64: 64, 1024>}]} {
    %c0 = arith.constant 0 : index
    %c0_0 = arith.constant 0 : index
    %0 = vector.load %arg1[%c0, %c0_0] : memref<64x16xf32, #tpu.memory_space<vmem>>, vector<64x16xf32>
    %1 = arith.truncf %0 : vector<64x16xf32> to vector<64x16xbf16>
    %c0_1 = arith.constant 0 : index
    %c0_2 = arith.constant 0 : index
    %2 = vector.load %arg2[%c0_1, %c0_2] : memref<16x1024xbf16, #tpu.memory_space<vmem>>, vector<16x1024xbf16>
    %cst = arith.constant dense<0.000000e+00> : vector<64x1024xf32>
    %3 = tpu.matmul %1, %2, %cst {dimension_numbers = #tpu.dot_dimension_numbers<[1], [0], [0], [1], [0, 0, 1, 1], [], []>} : vector<64x16xbf16>, vector<16x1024xbf16>, vector<64x1024xf32> -> vector<64x1024xf32>
    %c0_3 = arith.constant 0 : index
    %c0_4 = arith.constant 0 : index
    %4 = vector.load %arg3[%c0_3, %c0_4] : memref<1x1024xf32, #tpu.memory_space<vmem>>, vector<1x1024xf32>
    %5 = vector.broadcast %4 : vector<1x1024xf32> to vector<64x1024xf32>
    %6 = arith.addf %3, %5 : vector<64x1024xf32>
    %7 = arith.truncf %6 : vector<64x1024xf32> to vector<64x1024xbf16>
    %c0_5 = arith.constant 0 : index
    %c0_6 = arith.constant 0 : index
    %8 = vector.load %arg4[%c0_5, %c0_6] : memref<64x1024xbf16, #tpu.memory_space<vmem>>, vector<64x1024xbf16>
    tpu.vector_store %arg4[%c0_5, %c0_6], %7 {strides = array<i32>} : memref<64x1024xbf16, #tpu.memory_space<vmem>>, vector<64x1024xbf16>,
    return
  }
  func.func @transform_0(%arg0: i32) -> (i32, i32) {
    %c0_i32 = arith.constant 0 : i32
    %c0_i32_0 = arith.constant 0 : i32
    return %arg0, %c0_i32 : i32, i32
  }
  func.func @transform_1(%arg0: i32) -> (i32, i32) {
    %c0_i32 = arith.constant 0 : i32
    %c0_i32_0 = arith.constant 0 : i32
    %c0_i32_1 = arith.constant 0 : i32
    return %c0_i32, %c0_i32_0 : i32, i32
  }
  func.func @transform_2(%arg0: i32) -> (i32, i32) {
    %c0_i32 = arith.constant 0 : i32
    %c0_i32_0 = arith.constant 0 : i32
    %c0_i32_1 = arith.constant 0 : i32
    return %c0_i32, %c0_i32_0 : i32, i32
  }
  func.func @transform_3(%arg0: i32) -> (i32, i32) {
    %c0_i32 = arith.constant 0 : i32
    %c0_i32_0 = arith.constant 0 : i32
    return %arg0, %c0_i32 : i32, i32
  }
}

module attributes {stable_mosaic.version = 11 : i64} {
  func.func @bilstm_recurrence_kernel(%arg0: i32, %arg1: i32, %arg2: memref<8x8x512xbf16, #tpu.memory_space<vmem>>, %arg3: memref<1x128x512xbf16, #tpu.memory_space<vmem>>, %arg4: memref<8x8x128xbf16, #tpu.memory_space<vmem>>, %arg5: memref<8x128xf32, #tpu.memory_space<vmem>>, %arg6: memref<8x128xf32, #tpu.memory_space<vmem>>) attributes {dimension_semantics = [#tpu.dimension_semantics<parallel>, #tpu.dimension_semantics<arbitrary>], iteration_bounds = array<i64: 2, 1>, scalar_prefetch = 0 : i64, scratch_operands = 2 : i64, tpu.core_type = #tpu.core_type<tc>, window_params = [{transform_indices = @transform_0, window_bounds = array<i64: 8, 8, 512>}, {transform_indices = @transform_1, window_bounds = array<i64: 1, 128, 512>}, {transform_indices = @transform_2, window_bounds = array<i64: 8, 8, 128>}]} {
    %c0_i32 = arith.constant 0 : i32
    %0 = arith.cmpi eq, %arg1, %c0_i32 : i32
    %1 = arith.extui %0 : i1 to i32
    %c0_i32_0 = arith.constant 0 : i32
    %2 = arith.cmpi ne, %1, %c0_i32_0 : i32
    scf.if %2 {
      %cst_139 = arith.constant 0.000000e+00 : f32
      %385 = vector.broadcast %cst_139 : f32 to vector<8x128xf32>
      %c0_140 = arith.constant 0 : index
      %c0_141 = arith.constant 0 : index
      %386 = vector.load %arg5[%c0_140, %c0_141] : memref<8x128xf32, #tpu.memory_space<vmem>>, vector<8x128xf32>
      tpu.vector_store %arg5[%c0_140, %c0_141], %385 {strides = array<i32>} : memref<8x128xf32, #tpu.memory_space<vmem>>, vector<8x128xf32>,
      %cst_142 = arith.constant 0.000000e+00 : f32
      %387 = vector.broadcast %cst_142 : f32 to vector<8x128xf32>
      %c0_143 = arith.constant 0 : index
      %c0_144 = arith.constant 0 : index
      %388 = vector.load %arg6[%c0_143, %c0_144] : memref<8x128xf32, #tpu.memory_space<vmem>>, vector<8x128xf32>
      tpu.vector_store %arg6[%c0_143, %c0_144], %387 {strides = array<i32>} : memref<8x128xf32, #tpu.memory_space<vmem>>, vector<8x128xf32>,
    } else {
    }
    %c0 = arith.constant 0 : index
    %c0_1 = arith.constant 0 : index
    %c0_2 = arith.constant 0 : index
    %3 = vector.load %arg3[%c0, %c0_1, %c0_2] : memref<1x128x512xbf16, #tpu.memory_space<vmem>>, vector<1x128x512xbf16>
    %4 = vector.shape_cast %3 : vector<1x128x512xbf16> to vector<128x512xbf16>
    %c0_3 = arith.constant 0 : index
    %c0_4 = arith.constant 0 : index
    %5 = vector.load %arg5[%c0_3, %c0_4] : memref<8x128xf32, #tpu.memory_space<vmem>>, vector<8x128xf32>
    %c0_5 = arith.constant 0 : index
    %c0_6 = arith.constant 0 : index
    %6 = vector.load %arg6[%c0_5, %c0_6] : memref<8x128xf32, #tpu.memory_space<vmem>>, vector<8x128xf32>
    %c0_i32_7 = arith.constant 0 : i32
    %c2_i32 = arith.constant 2 : i32
    %7 = arith.muli %c2_i32, %c0_i32_7 : i32
    %c7_i32 = arith.constant 7 : i32
    %8 = arith.subi %c7_i32, %7 : i32
    %9 = arith.muli %arg0, %8 : i32
    %10 = arith.addi %c0_i32_7, %9 : i32
    %11 = arith.index_cast %10 : i32 to index
    %c0_8 = arith.constant 0 : index
    %c0_9 = arith.constant 0 : index
    %12 = vector.load %arg2[%11, %c0_8, %c0_9] : memref<8x8x512xbf16, #tpu.memory_space<vmem>>, vector<1x8x512xbf16>
    %13 = vector.shape_cast %12 : vector<1x8x512xbf16> to vector<8x512xbf16>
    %14 = arith.extf %13 : vector<8x512xbf16> to vector<8x512xf32>
    %15 = arith.truncf %5 : vector<8x128xf32> to vector<8x128xbf16>
    %cst = arith.constant dense<0.000000e+00> : vector<8x512xf32>
    %16 = tpu.matmul %15, %4, %cst {dimension_numbers = #tpu.dot_dimension_numbers<[1], [0], [0], [1], [0, 0, 1, 1], [], []>} : vector<8x128xbf16>, vector<128x512xbf16>, vector<8x512xf32> -> vector<8x512xf32>
    %17 = arith.addf %14, %16 : vector<8x512xf32>
    %18 = vector.extract_strided_slice %17 {offsets = [0, 0], sizes = [8, 128], strides = [1, 1]} : vector<8x512xf32> to vector<8x128xf32>
    %cst_10 = arith.constant 5.000000e-01 : f32
    %19 = vector.broadcast %cst_10 : f32 to vector<8x128xf32>
    %20 = arith.mulf %19, %18 : vector<8x128xf32>
    %21 = math.tanh %20 : vector<8x128xf32>
    %cst_11 = arith.constant 5.000000e-01 : f32
    %22 = vector.broadcast %cst_11 : f32 to vector<8x128xf32>
    %23 = arith.mulf %22, %21 : vector<8x128xf32>
    %cst_12 = arith.constant 5.000000e-01 : f32
    %24 = vector.broadcast %cst_12 : f32 to vector<8x128xf32>
    %25 = arith.addf %23, %24 : vector<8x128xf32>
    %26 = vector.extract_strided_slice %17 {offsets = [0, 128], sizes = [8, 128], strides = [1, 1]} : vector<8x512xf32> to vector<8x128xf32>
    %cst_13 = arith.constant 5.000000e-01 : f32
    %27 = vector.broadcast %cst_13 : f32 to vector<8x128xf32>
    %28 = arith.mulf %27, %26 : vector<8x128xf32>
    %29 = math.tanh %28 : vector<8x128xf32>
    %cst_14 = arith.constant 5.000000e-01 : f32
    %30 = vector.broadcast %cst_14 : f32 to vector<8x128xf32>
    %31 = arith.mulf %30, %29 : vector<8x128xf32>
    %cst_15 = arith.constant 5.000000e-01 : f32
    %32 = vector.broadcast %cst_15 : f32 to vector<8x128xf32>
    %33 = arith.addf %31, %32 : vector<8x128xf32>
    %34 = vector.extract_strided_slice %17 {offsets = [0, 256], sizes = [8, 128], strides = [1, 1]} : vector<8x512xf32> to vector<8x128xf32>
    %35 = math.tanh %34 : vector<8x128xf32>
    %36 = vector.extract_strided_slice %17 {offsets = [0, 384], sizes = [8, 128], strides = [1, 1]} : vector<8x512xf32> to vector<8x128xf32>
    %cst_16 = arith.constant 5.000000e-01 : f32
    %37 = vector.broadcast %cst_16 : f32 to vector<8x128xf32>
    %38 = arith.mulf %37, %36 : vector<8x128xf32>
    %39 = math.tanh %38 : vector<8x128xf32>
    %cst_17 = arith.constant 5.000000e-01 : f32
    %40 = vector.broadcast %cst_17 : f32 to vector<8x128xf32>
    %41 = arith.mulf %40, %39 : vector<8x128xf32>
    %cst_18 = arith.constant 5.000000e-01 : f32
    %42 = vector.broadcast %cst_18 : f32 to vector<8x128xf32>
    %43 = arith.addf %41, %42 : vector<8x128xf32>
    %44 = arith.mulf %33, %6 : vector<8x128xf32>
    %45 = arith.mulf %25, %35 : vector<8x128xf32>
    %46 = arith.addf %44, %45 : vector<8x128xf32>
    %47 = math.tanh %46 : vector<8x128xf32>
    %48 = arith.mulf %43, %47 : vector<8x128xf32>
    %49 = arith.truncf %48 : vector<8x128xf32> to vector<8x128xbf16>
    %50 = arith.index_cast %10 : i32 to index
    %c0_19 = arith.constant 0 : index
    %c0_20 = arith.constant 0 : index
    %51 = vector.load %arg4[%50, %c0_19, %c0_20] : memref<8x8x128xbf16, #tpu.memory_space<vmem>>, vector<1x8x128xbf16>
    %52 = vector.shape_cast %51 : vector<1x8x128xbf16> to vector<8x128xbf16>
    %53 = vector.shape_cast %49 : vector<8x128xbf16> to vector<1x8x128xbf16>
    tpu.vector_store %arg4[%50, %c0_19, %c0_20], %53 {strides = array<i32>} : memref<8x8x128xbf16, #tpu.memory_space<vmem>>, vector<1x8x128xbf16>,
    %c1_i32 = arith.constant 1 : i32
    %c2_i32_21 = arith.constant 2 : i32
    %54 = arith.muli %c2_i32_21, %c1_i32 : i32
    %c7_i32_22 = arith.constant 7 : i32
    %55 = arith.subi %c7_i32_22, %54 : i32
    %56 = arith.muli %arg0, %55 : i32
    %57 = arith.addi %c1_i32, %56 : i32
    %58 = arith.index_cast %57 : i32 to index
    %c0_23 = arith.constant 0 : index
    %c0_24 = arith.constant 0 : index
    %59 = vector.load %arg2[%58, %c0_23, %c0_24] : memref<8x8x512xbf16, #tpu.memory_space<vmem>>, vector<1x8x512xbf16>
    %60 = vector.shape_cast %59 : vector<1x8x512xbf16> to vector<8x512xbf16>
    %61 = arith.extf %60 : vector<8x512xbf16> to vector<8x512xf32>
    %62 = arith.truncf %48 : vector<8x128xf32> to vector<8x128xbf16>
    %cst_25 = arith.constant dense<0.000000e+00> : vector<8x512xf32>
    %63 = tpu.matmul %62, %4, %cst_25 {dimension_numbers = #tpu.dot_dimension_numbers<[1], [0], [0], [1], [0, 0, 1, 1], [], []>} : vector<8x128xbf16>, vector<128x512xbf16>, vector<8x512xf32> -> vector<8x512xf32>
    %64 = arith.addf %61, %63 : vector<8x512xf32>
    %65 = vector.extract_strided_slice %64 {offsets = [0, 0], sizes = [8, 128], strides = [1, 1]} : vector<8x512xf32> to vector<8x128xf32>
    %cst_26 = arith.constant 5.000000e-01 : f32
    %66 = vector.broadcast %cst_26 : f32 to vector<8x128xf32>
    %67 = arith.mulf %66, %65 : vector<8x128xf32>
    %68 = math.tanh %67 : vector<8x128xf32>
    %cst_27 = arith.constant 5.000000e-01 : f32
    %69 = vector.broadcast %cst_27 : f32 to vector<8x128xf32>
    %70 = arith.mulf %69, %68 : vector<8x128xf32>
    %cst_28 = arith.constant 5.000000e-01 : f32
    %71 = vector.broadcast %cst_28 : f32 to vector<8x128xf32>
    %72 = arith.addf %70, %71 : vector<8x128xf32>
    %73 = vector.extract_strided_slice %64 {offsets = [0, 128], sizes = [8, 128], strides = [1, 1]} : vector<8x512xf32> to vector<8x128xf32>
    %cst_29 = arith.constant 5.000000e-01 : f32
    %74 = vector.broadcast %cst_29 : f32 to vector<8x128xf32>
    %75 = arith.mulf %74, %73 : vector<8x128xf32>
    %76 = math.tanh %75 : vector<8x128xf32>
    %cst_30 = arith.constant 5.000000e-01 : f32
    %77 = vector.broadcast %cst_30 : f32 to vector<8x128xf32>
    %78 = arith.mulf %77, %76 : vector<8x128xf32>
    %cst_31 = arith.constant 5.000000e-01 : f32
    %79 = vector.broadcast %cst_31 : f32 to vector<8x128xf32>
    %80 = arith.addf %78, %79 : vector<8x128xf32>
    %81 = vector.extract_strided_slice %64 {offsets = [0, 256], sizes = [8, 128], strides = [1, 1]} : vector<8x512xf32> to vector<8x128xf32>
    %82 = math.tanh %81 : vector<8x128xf32>
    %83 = vector.extract_strided_slice %64 {offsets = [0, 384], sizes = [8, 128], strides = [1, 1]} : vector<8x512xf32> to vector<8x128xf32>
    %cst_32 = arith.constant 5.000000e-01 : f32
    %84 = vector.broadcast %cst_32 : f32 to vector<8x128xf32>
    %85 = arith.mulf %84, %83 : vector<8x128xf32>
    %86 = math.tanh %85 : vector<8x128xf32>
    %cst_33 = arith.constant 5.000000e-01 : f32
    %87 = vector.broadcast %cst_33 : f32 to vector<8x128xf32>
    %88 = arith.mulf %87, %86 : vector<8x128xf32>
    %cst_34 = arith.constant 5.000000e-01 : f32
    %89 = vector.broadcast %cst_34 : f32 to vector<8x128xf32>
    %90 = arith.addf %88, %89 : vector<8x128xf32>
    %91 = arith.mulf %80, %46 : vector<8x128xf32>
    %92 = arith.mulf %72, %82 : vector<8x128xf32>
    %93 = arith.addf %91, %92 : vector<8x128xf32>
    %94 = math.tanh %93 : vector<8x128xf32>
    %95 = arith.mulf %90, %94 : vector<8x128xf32>
    %96 = arith.truncf %95 : vector<8x128xf32> to vector<8x128xbf16>
    %97 = arith.index_cast %57 : i32 to index
    %c0_35 = arith.constant 0 : index
    %c0_36 = arith.constant 0 : index
    %98 = vector.load %arg4[%97, %c0_35, %c0_36] : memref<8x8x128xbf16, #tpu.memory_space<vmem>>, vector<1x8x128xbf16>
    %99 = vector.shape_cast %98 : vector<1x8x128xbf16> to vector<8x128xbf16>
    %100 = vector.shape_cast %96 : vector<8x128xbf16> to vector<1x8x128xbf16>
    tpu.vector_store %arg4[%97, %c0_35, %c0_36], %100 {strides = array<i32>} : memref<8x8x128xbf16, #tpu.memory_space<vmem>>, vector<1x8x128xbf16>,
    %c2_i32_37 = arith.constant 2 : i32
    %c2_i32_38 = arith.constant 2 : i32
    %101 = arith.muli %c2_i32_38, %c2_i32_37 : i32
    %c7_i32_39 = arith.constant 7 : i32
    %102 = arith.subi %c7_i32_39, %101 : i32
    %103 = arith.muli %arg0, %102 : i32
    %104 = arith.addi %c2_i32_37, %103 : i32
    %105 = arith.index_cast %104 : i32 to index
    %c0_40 = arith.constant 0 : index
    %c0_41 = arith.constant 0 : index
    %106 = vector.load %arg2[%105, %c0_40, %c0_41] : memref<8x8x512xbf16, #tpu.memory_space<vmem>>, vector<1x8x512xbf16>
    %107 = vector.shape_cast %106 : vector<1x8x512xbf16> to vector<8x512xbf16>
    %108 = arith.extf %107 : vector<8x512xbf16> to vector<8x512xf32>
    %109 = arith.truncf %95 : vector<8x128xf32> to vector<8x128xbf16>
    %cst_42 = arith.constant dense<0.000000e+00> : vector<8x512xf32>
    %110 = tpu.matmul %109, %4, %cst_42 {dimension_numbers = #tpu.dot_dimension_numbers<[1], [0], [0], [1], [0, 0, 1, 1], [], []>} : vector<8x128xbf16>, vector<128x512xbf16>, vector<8x512xf32> -> vector<8x512xf32>
    %111 = arith.addf %108, %110 : vector<8x512xf32>
    %112 = vector.extract_strided_slice %111 {offsets = [0, 0], sizes = [8, 128], strides = [1, 1]} : vector<8x512xf32> to vector<8x128xf32>
    %cst_43 = arith.constant 5.000000e-01 : f32
    %113 = vector.broadcast %cst_43 : f32 to vector<8x128xf32>
    %114 = arith.mulf %113, %112 : vector<8x128xf32>
    %115 = math.tanh %114 : vector<8x128xf32>
    %cst_44 = arith.constant 5.000000e-01 : f32
    %116 = vector.broadcast %cst_44 : f32 to vector<8x128xf32>
    %117 = arith.mulf %116, %115 : vector<8x128xf32>
    %cst_45 = arith.constant 5.000000e-01 : f32
    %118 = vector.broadcast %cst_45 : f32 to vector<8x128xf32>
    %119 = arith.addf %117, %118 : vector<8x128xf32>
    %120 = vector.extract_strided_slice %111 {offsets = [0, 128], sizes = [8, 128], strides = [1, 1]} : vector<8x512xf32> to vector<8x128xf32>
    %cst_46 = arith.constant 5.000000e-01 : f32
    %121 = vector.broadcast %cst_46 : f32 to vector<8x128xf32>
    %122 = arith.mulf %121, %120 : vector<8x128xf32>
    %123 = math.tanh %122 : vector<8x128xf32>
    %cst_47 = arith.constant 5.000000e-01 : f32
    %124 = vector.broadcast %cst_47 : f32 to vector<8x128xf32>
    %125 = arith.mulf %124, %123 : vector<8x128xf32>
    %cst_48 = arith.constant 5.000000e-01 : f32
    %126 = vector.broadcast %cst_48 : f32 to vector<8x128xf32>
    %127 = arith.addf %125, %126 : vector<8x128xf32>
    %128 = vector.extract_strided_slice %111 {offsets = [0, 256], sizes = [8, 128], strides = [1, 1]} : vector<8x512xf32> to vector<8x128xf32>
    %129 = math.tanh %128 : vector<8x128xf32>
    %130 = vector.extract_strided_slice %111 {offsets = [0, 384], sizes = [8, 128], strides = [1, 1]} : vector<8x512xf32> to vector<8x128xf32>
    %cst_49 = arith.constant 5.000000e-01 : f32
    %131 = vector.broadcast %cst_49 : f32 to vector<8x128xf32>
    %132 = arith.mulf %131, %130 : vector<8x128xf32>
    %133 = math.tanh %132 : vector<8x128xf32>
    %cst_50 = arith.constant 5.000000e-01 : f32
    %134 = vector.broadcast %cst_50 : f32 to vector<8x128xf32>
    %135 = arith.mulf %134, %133 : vector<8x128xf32>
    %cst_51 = arith.constant 5.000000e-01 : f32
    %136 = vector.broadcast %cst_51 : f32 to vector<8x128xf32>
    %137 = arith.addf %135, %136 : vector<8x128xf32>
    %138 = arith.mulf %127, %93 : vector<8x128xf32>
    %139 = arith.mulf %119, %129 : vector<8x128xf32>
    %140 = arith.addf %138, %139 : vector<8x128xf32>
    %141 = math.tanh %140 : vector<8x128xf32>
    %142 = arith.mulf %137, %141 : vector<8x128xf32>
    %143 = arith.truncf %142 : vector<8x128xf32> to vector<8x128xbf16>
    %144 = arith.index_cast %104 : i32 to index
    %c0_52 = arith.constant 0 : index
    %c0_53 = arith.constant 0 : index
    %145 = vector.load %arg4[%144, %c0_52, %c0_53] : memref<8x8x128xbf16, #tpu.memory_space<vmem>>, vector<1x8x128xbf16>
    %146 = vector.shape_cast %145 : vector<1x8x128xbf16> to vector<8x128xbf16>
    %147 = vector.shape_cast %143 : vector<8x128xbf16> to vector<1x8x128xbf16>
    tpu.vector_store %arg4[%144, %c0_52, %c0_53], %147 {strides = array<i32>} : memref<8x8x128xbf16, #tpu.memory_space<vmem>>, vector<1x8x128xbf16>,
    %c3_i32 = arith.constant 3 : i32
    %c2_i32_54 = arith.constant 2 : i32
    %148 = arith.muli %c2_i32_54, %c3_i32 : i32
    %c7_i32_55 = arith.constant 7 : i32
    %149 = arith.subi %c7_i32_55, %148 : i32
    %150 = arith.muli %arg0, %149 : i32
    %151 = arith.addi %c3_i32, %150 : i32
    %152 = arith.index_cast %151 : i32 to index
    %c0_56 = arith.constant 0 : index
    %c0_57 = arith.constant 0 : index
    %153 = vector.load %arg2[%152, %c0_56, %c0_57] : memref<8x8x512xbf16, #tpu.memory_space<vmem>>, vector<1x8x512xbf16>
    %154 = vector.shape_cast %153 : vector<1x8x512xbf16> to vector<8x512xbf16>
    %155 = arith.extf %154 : vector<8x512xbf16> to vector<8x512xf32>
    %156 = arith.truncf %142 : vector<8x128xf32> to vector<8x128xbf16>
    %cst_58 = arith.constant dense<0.000000e+00> : vector<8x512xf32>
    %157 = tpu.matmul %156, %4, %cst_58 {dimension_numbers = #tpu.dot_dimension_numbers<[1], [0], [0], [1], [0, 0, 1, 1], [], []>} : vector<8x128xbf16>, vector<128x512xbf16>, vector<8x512xf32> -> vector<8x512xf32>
    %158 = arith.addf %155, %157 : vector<8x512xf32>
    %159 = vector.extract_strided_slice %158 {offsets = [0, 0], sizes = [8, 128], strides = [1, 1]} : vector<8x512xf32> to vector<8x128xf32>
    %cst_59 = arith.constant 5.000000e-01 : f32
    %160 = vector.broadcast %cst_59 : f32 to vector<8x128xf32>
    %161 = arith.mulf %160, %159 : vector<8x128xf32>
    %162 = math.tanh %161 : vector<8x128xf32>
    %cst_60 = arith.constant 5.000000e-01 : f32
    %163 = vector.broadcast %cst_60 : f32 to vector<8x128xf32>
    %164 = arith.mulf %163, %162 : vector<8x128xf32>
    %cst_61 = arith.constant 5.000000e-01 : f32
    %165 = vector.broadcast %cst_61 : f32 to vector<8x128xf32>
    %166 = arith.addf %164, %165 : vector<8x128xf32>
    %167 = vector.extract_strided_slice %158 {offsets = [0, 128], sizes = [8, 128], strides = [1, 1]} : vector<8x512xf32> to vector<8x128xf32>
    %cst_62 = arith.constant 5.000000e-01 : f32
    %168 = vector.broadcast %cst_62 : f32 to vector<8x128xf32>
    %169 = arith.mulf %168, %167 : vector<8x128xf32>
    %170 = math.tanh %169 : vector<8x128xf32>
    %cst_63 = arith.constant 5.000000e-01 : f32
    %171 = vector.broadcast %cst_63 : f32 to vector<8x128xf32>
    %172 = arith.mulf %171, %170 : vector<8x128xf32>
    %cst_64 = arith.constant 5.000000e-01 : f32
    %173 = vector.broadcast %cst_64 : f32 to vector<8x128xf32>
    %174 = arith.addf %172, %173 : vector<8x128xf32>
    %175 = vector.extract_strided_slice %158 {offsets = [0, 256], sizes = [8, 128], strides = [1, 1]} : vector<8x512xf32> to vector<8x128xf32>
    %176 = math.tanh %175 : vector<8x128xf32>
    %177 = vector.extract_strided_slice %158 {offsets = [0, 384], sizes = [8, 128], strides = [1, 1]} : vector<8x512xf32> to vector<8x128xf32>
    %cst_65 = arith.constant 5.000000e-01 : f32
    %178 = vector.broadcast %cst_65 : f32 to vector<8x128xf32>
    %179 = arith.mulf %178, %177 : vector<8x128xf32>
    %180 = math.tanh %179 : vector<8x128xf32>
    %cst_66 = arith.constant 5.000000e-01 : f32
    %181 = vector.broadcast %cst_66 : f32 to vector<8x128xf32>
    %182 = arith.mulf %181, %180 : vector<8x128xf32>
    %cst_67 = arith.constant 5.000000e-01 : f32
    %183 = vector.broadcast %cst_67 : f32 to vector<8x128xf32>
    %184 = arith.addf %182, %183 : vector<8x128xf32>
    %185 = arith.mulf %174, %140 : vector<8x128xf32>
    %186 = arith.mulf %166, %176 : vector<8x128xf32>
    %187 = arith.addf %185, %186 : vector<8x128xf32>
    %188 = math.tanh %187 : vector<8x128xf32>
    %189 = arith.mulf %184, %188 : vector<8x128xf32>
    %190 = arith.truncf %189 : vector<8x128xf32> to vector<8x128xbf16>
    %191 = arith.index_cast %151 : i32 to index
    %c0_68 = arith.constant 0 : index
    %c0_69 = arith.constant 0 : index
    %192 = vector.load %arg4[%191, %c0_68, %c0_69] : memref<8x8x128xbf16, #tpu.memory_space<vmem>>, vector<1x8x128xbf16>
    %193 = vector.shape_cast %192 : vector<1x8x128xbf16> to vector<8x128xbf16>
    %194 = vector.shape_cast %190 : vector<8x128xbf16> to vector<1x8x128xbf16>
    tpu.vector_store %arg4[%191, %c0_68, %c0_69], %194 {strides = array<i32>} : memref<8x8x128xbf16, #tpu.memory_space<vmem>>, vector<1x8x128xbf16>,
    %c4_i32 = arith.constant 4 : i32
    %c2_i32_70 = arith.constant 2 : i32
    %195 = arith.muli %c2_i32_70, %c4_i32 : i32
    %c7_i32_71 = arith.constant 7 : i32
    %196 = arith.subi %c7_i32_71, %195 : i32
    %197 = arith.muli %arg0, %196 : i32
    %198 = arith.addi %c4_i32, %197 : i32
    %199 = arith.index_cast %198 : i32 to index
    %c0_72 = arith.constant 0 : index
    %c0_73 = arith.constant 0 : index
    %200 = vector.load %arg2[%199, %c0_72, %c0_73] : memref<8x8x512xbf16, #tpu.memory_space<vmem>>, vector<1x8x512xbf16>
    %201 = vector.shape_cast %200 : vector<1x8x512xbf16> to vector<8x512xbf16>
    %202 = arith.extf %201 : vector<8x512xbf16> to vector<8x512xf32>
    %203 = arith.truncf %189 : vector<8x128xf32> to vector<8x128xbf16>
    %cst_74 = arith.constant dense<0.000000e+00> : vector<8x512xf32>
    %204 = tpu.matmul %203, %4, %cst_74 {dimension_numbers = #tpu.dot_dimension_numbers<[1], [0], [0], [1], [0, 0, 1, 1], [], []>} : vector<8x128xbf16>, vector<128x512xbf16>, vector<8x512xf32> -> vector<8x512xf32>
    %205 = arith.addf %202, %204 : vector<8x512xf32>
    %206 = vector.extract_strided_slice %205 {offsets = [0, 0], sizes = [8, 128], strides = [1, 1]} : vector<8x512xf32> to vector<8x128xf32>
    %cst_75 = arith.constant 5.000000e-01 : f32
    %207 = vector.broadcast %cst_75 : f32 to vector<8x128xf32>
    %208 = arith.mulf %207, %206 : vector<8x128xf32>
    %209 = math.tanh %208 : vector<8x128xf32>
    %cst_76 = arith.constant 5.000000e-01 : f32
    %210 = vector.broadcast %cst_76 : f32 to vector<8x128xf32>
    %211 = arith.mulf %210, %209 : vector<8x128xf32>
    %cst_77 = arith.constant 5.000000e-01 : f32
    %212 = vector.broadcast %cst_77 : f32 to vector<8x128xf32>
    %213 = arith.addf %211, %212 : vector<8x128xf32>
    %214 = vector.extract_strided_slice %205 {offsets = [0, 128], sizes = [8, 128], strides = [1, 1]} : vector<8x512xf32> to vector<8x128xf32>
    %cst_78 = arith.constant 5.000000e-01 : f32
    %215 = vector.broadcast %cst_78 : f32 to vector<8x128xf32>
    %216 = arith.mulf %215, %214 : vector<8x128xf32>
    %217 = math.tanh %216 : vector<8x128xf32>
    %cst_79 = arith.constant 5.000000e-01 : f32
    %218 = vector.broadcast %cst_79 : f32 to vector<8x128xf32>
    %219 = arith.mulf %218, %217 : vector<8x128xf32>
    %cst_80 = arith.constant 5.000000e-01 : f32
    %220 = vector.broadcast %cst_80 : f32 to vector<8x128xf32>
    %221 = arith.addf %219, %220 : vector<8x128xf32>
    %222 = vector.extract_strided_slice %205 {offsets = [0, 256], sizes = [8, 128], strides = [1, 1]} : vector<8x512xf32> to vector<8x128xf32>
    %223 = math.tanh %222 : vector<8x128xf32>
    %224 = vector.extract_strided_slice %205 {offsets = [0, 384], sizes = [8, 128], strides = [1, 1]} : vector<8x512xf32> to vector<8x128xf32>
    %cst_81 = arith.constant 5.000000e-01 : f32
    %225 = vector.broadcast %cst_81 : f32 to vector<8x128xf32>
    %226 = arith.mulf %225, %224 : vector<8x128xf32>
    %227 = math.tanh %226 : vector<8x128xf32>
    %cst_82 = arith.constant 5.000000e-01 : f32
    %228 = vector.broadcast %cst_82 : f32 to vector<8x128xf32>
    %229 = arith.mulf %228, %227 : vector<8x128xf32>
    %cst_83 = arith.constant 5.000000e-01 : f32
    %230 = vector.broadcast %cst_83 : f32 to vector<8x128xf32>
    %231 = arith.addf %229, %230 : vector<8x128xf32>
    %232 = arith.mulf %221, %187 : vector<8x128xf32>
    %233 = arith.mulf %213, %223 : vector<8x128xf32>
    %234 = arith.addf %232, %233 : vector<8x128xf32>
    %235 = math.tanh %234 : vector<8x128xf32>
    %236 = arith.mulf %231, %235 : vector<8x128xf32>
    %237 = arith.truncf %236 : vector<8x128xf32> to vector<8x128xbf16>
    %238 = arith.index_cast %198 : i32 to index
    %c0_84 = arith.constant 0 : index
    %c0_85 = arith.constant 0 : index
    %239 = vector.load %arg4[%238, %c0_84, %c0_85] : memref<8x8x128xbf16, #tpu.memory_space<vmem>>, vector<1x8x128xbf16>
    %240 = vector.shape_cast %239 : vector<1x8x128xbf16> to vector<8x128xbf16>
    %241 = vector.shape_cast %237 : vector<8x128xbf16> to vector<1x8x128xbf16>
    tpu.vector_store %arg4[%238, %c0_84, %c0_85], %241 {strides = array<i32>} : memref<8x8x128xbf16, #tpu.memory_space<vmem>>, vector<1x8x128xbf16>,
    %c5_i32 = arith.constant 5 : i32
    %c2_i32_86 = arith.constant 2 : i32
    %242 = arith.muli %c2_i32_86, %c5_i32 : i32
    %c7_i32_87 = arith.constant 7 : i32
    %243 = arith.subi %c7_i32_87, %242 : i32
    %244 = arith.muli %arg0, %243 : i32
    %245 = arith.addi %c5_i32, %244 : i32
    %246 = arith.index_cast %245 : i32 to index
    %c0_88 = arith.constant 0 : index
    %c0_89 = arith.constant 0 : index
    %247 = vector.load %arg2[%246, %c0_88, %c0_89] : memref<8x8x512xbf16, #tpu.memory_space<vmem>>, vector<1x8x512xbf16>
    %248 = vector.shape_cast %247 : vector<1x8x512xbf16> to vector<8x512xbf16>
    %249 = arith.extf %248 : vector<8x512xbf16> to vector<8x512xf32>
    %250 = arith.truncf %236 : vector<8x128xf32> to vector<8x128xbf16>
    %cst_90 = arith.constant dense<0.000000e+00> : vector<8x512xf32>
    %251 = tpu.matmul %250, %4, %cst_90 {dimension_numbers = #tpu.dot_dimension_numbers<[1], [0], [0], [1], [0, 0, 1, 1], [], []>} : vector<8x128xbf16>, vector<128x512xbf16>, vector<8x512xf32> -> vector<8x512xf32>
    %252 = arith.addf %249, %251 : vector<8x512xf32>
    %253 = vector.extract_strided_slice %252 {offsets = [0, 0], sizes = [8, 128], strides = [1, 1]} : vector<8x512xf32> to vector<8x128xf32>
    %cst_91 = arith.constant 5.000000e-01 : f32
    %254 = vector.broadcast %cst_91 : f32 to vector<8x128xf32>
    %255 = arith.mulf %254, %253 : vector<8x128xf32>
    %256 = math.tanh %255 : vector<8x128xf32>
    %cst_92 = arith.constant 5.000000e-01 : f32
    %257 = vector.broadcast %cst_92 : f32 to vector<8x128xf32>
    %258 = arith.mulf %257, %256 : vector<8x128xf32>
    %cst_93 = arith.constant 5.000000e-01 : f32
    %259 = vector.broadcast %cst_93 : f32 to vector<8x128xf32>
    %260 = arith.addf %258, %259 : vector<8x128xf32>
    %261 = vector.extract_strided_slice %252 {offsets = [0, 128], sizes = [8, 128], strides = [1, 1]} : vector<8x512xf32> to vector<8x128xf32>
    %cst_94 = arith.constant 5.000000e-01 : f32
    %262 = vector.broadcast %cst_94 : f32 to vector<8x128xf32>
    %263 = arith.mulf %262, %261 : vector<8x128xf32>
    %264 = math.tanh %263 : vector<8x128xf32>
    %cst_95 = arith.constant 5.000000e-01 : f32
    %265 = vector.broadcast %cst_95 : f32 to vector<8x128xf32>
    %266 = arith.mulf %265, %264 : vector<8x128xf32>
    %cst_96 = arith.constant 5.000000e-01 : f32
    %267 = vector.broadcast %cst_96 : f32 to vector<8x128xf32>
    %268 = arith.addf %266, %267 : vector<8x128xf32>
    %269 = vector.extract_strided_slice %252 {offsets = [0, 256], sizes = [8, 128], strides = [1, 1]} : vector<8x512xf32> to vector<8x128xf32>
    %270 = math.tanh %269 : vector<8x128xf32>
    %271 = vector.extract_strided_slice %252 {offsets = [0, 384], sizes = [8, 128], strides = [1, 1]} : vector<8x512xf32> to vector<8x128xf32>
    %cst_97 = arith.constant 5.000000e-01 : f32
    %272 = vector.broadcast %cst_97 : f32 to vector<8x128xf32>
    %273 = arith.mulf %272, %271 : vector<8x128xf32>
    %274 = math.tanh %273 : vector<8x128xf32>
    %cst_98 = arith.constant 5.000000e-01 : f32
    %275 = vector.broadcast %cst_98 : f32 to vector<8x128xf32>
    %276 = arith.mulf %275, %274 : vector<8x128xf32>
    %cst_99 = arith.constant 5.000000e-01 : f32
    %277 = vector.broadcast %cst_99 : f32 to vector<8x128xf32>
    %278 = arith.addf %276, %277 : vector<8x128xf32>
    %279 = arith.mulf %268, %234 : vector<8x128xf32>
    %280 = arith.mulf %260, %270 : vector<8x128xf32>
    %281 = arith.addf %279, %280 : vector<8x128xf32>
    %282 = math.tanh %281 : vector<8x128xf32>
    %283 = arith.mulf %278, %282 : vector<8x128xf32>
    %284 = arith.truncf %283 : vector<8x128xf32> to vector<8x128xbf16>
    %285 = arith.index_cast %245 : i32 to index
    %c0_100 = arith.constant 0 : index
    %c0_101 = arith.constant 0 : index
    %286 = vector.load %arg4[%285, %c0_100, %c0_101] : memref<8x8x128xbf16, #tpu.memory_space<vmem>>, vector<1x8x128xbf16>
    %287 = vector.shape_cast %286 : vector<1x8x128xbf16> to vector<8x128xbf16>
    %288 = vector.shape_cast %284 : vector<8x128xbf16> to vector<1x8x128xbf16>
    tpu.vector_store %arg4[%285, %c0_100, %c0_101], %288 {strides = array<i32>} : memref<8x8x128xbf16, #tpu.memory_space<vmem>>, vector<1x8x128xbf16>,
    %c6_i32 = arith.constant 6 : i32
    %c2_i32_102 = arith.constant 2 : i32
    %289 = arith.muli %c2_i32_102, %c6_i32 : i32
    %c7_i32_103 = arith.constant 7 : i32
    %290 = arith.subi %c7_i32_103, %289 : i32
    %291 = arith.muli %arg0, %290 : i32
    %292 = arith.addi %c6_i32, %291 : i32
    %293 = arith.index_cast %292 : i32 to index
    %c0_104 = arith.constant 0 : index
    %c0_105 = arith.constant 0 : index
    %294 = vector.load %arg2[%293, %c0_104, %c0_105] : memref<8x8x512xbf16, #tpu.memory_space<vmem>>, vector<1x8x512xbf16>
    %295 = vector.shape_cast %294 : vector<1x8x512xbf16> to vector<8x512xbf16>
    %296 = arith.extf %295 : vector<8x512xbf16> to vector<8x512xf32>
    %297 = arith.truncf %283 : vector<8x128xf32> to vector<8x128xbf16>
    %cst_106 = arith.constant dense<0.000000e+00> : vector<8x512xf32>
    %298 = tpu.matmul %297, %4, %cst_106 {dimension_numbers = #tpu.dot_dimension_numbers<[1], [0], [0], [1], [0, 0, 1, 1], [], []>} : vector<8x128xbf16>, vector<128x512xbf16>, vector<8x512xf32> -> vector<8x512xf32>
    %299 = arith.addf %296, %298 : vector<8x512xf32>
    %300 = vector.extract_strided_slice %299 {offsets = [0, 0], sizes = [8, 128], strides = [1, 1]} : vector<8x512xf32> to vector<8x128xf32>
    %cst_107 = arith.constant 5.000000e-01 : f32
    %301 = vector.broadcast %cst_107 : f32 to vector<8x128xf32>
    %302 = arith.mulf %301, %300 : vector<8x128xf32>
    %303 = math.tanh %302 : vector<8x128xf32>
    %cst_108 = arith.constant 5.000000e-01 : f32
    %304 = vector.broadcast %cst_108 : f32 to vector<8x128xf32>
    %305 = arith.mulf %304, %303 : vector<8x128xf32>
    %cst_109 = arith.constant 5.000000e-01 : f32
    %306 = vector.broadcast %cst_109 : f32 to vector<8x128xf32>
    %307 = arith.addf %305, %306 : vector<8x128xf32>
    %308 = vector.extract_strided_slice %299 {offsets = [0, 128], sizes = [8, 128], strides = [1, 1]} : vector<8x512xf32> to vector<8x128xf32>
    %cst_110 = arith.constant 5.000000e-01 : f32
    %309 = vector.broadcast %cst_110 : f32 to vector<8x128xf32>
    %310 = arith.mulf %309, %308 : vector<8x128xf32>
    %311 = math.tanh %310 : vector<8x128xf32>
    %cst_111 = arith.constant 5.000000e-01 : f32
    %312 = vector.broadcast %cst_111 : f32 to vector<8x128xf32>
    %313 = arith.mulf %312, %311 : vector<8x128xf32>
    %cst_112 = arith.constant 5.000000e-01 : f32
    %314 = vector.broadcast %cst_112 : f32 to vector<8x128xf32>
    %315 = arith.addf %313, %314 : vector<8x128xf32>
    %316 = vector.extract_strided_slice %299 {offsets = [0, 256], sizes = [8, 128], strides = [1, 1]} : vector<8x512xf32> to vector<8x128xf32>
    %317 = math.tanh %316 : vector<8x128xf32>
    %318 = vector.extract_strided_slice %299 {offsets = [0, 384], sizes = [8, 128], strides = [1, 1]} : vector<8x512xf32> to vector<8x128xf32>
    %cst_113 = arith.constant 5.000000e-01 : f32
    %319 = vector.broadcast %cst_113 : f32 to vector<8x128xf32>
    %320 = arith.mulf %319, %318 : vector<8x128xf32>
    %321 = math.tanh %320 : vector<8x128xf32>
    %cst_114 = arith.constant 5.000000e-01 : f32
    %322 = vector.broadcast %cst_114 : f32 to vector<8x128xf32>
    %323 = arith.mulf %322, %321 : vector<8x128xf32>
    %cst_115 = arith.constant 5.000000e-01 : f32
    %324 = vector.broadcast %cst_115 : f32 to vector<8x128xf32>
    %325 = arith.addf %323, %324 : vector<8x128xf32>
    %326 = arith.mulf %315, %281 : vector<8x128xf32>
    %327 = arith.mulf %307, %317 : vector<8x128xf32>
    %328 = arith.addf %326, %327 : vector<8x128xf32>
    %329 = math.tanh %328 : vector<8x128xf32>
    %330 = arith.mulf %325, %329 : vector<8x128xf32>
    %331 = arith.truncf %330 : vector<8x128xf32> to vector<8x128xbf16>
    %332 = arith.index_cast %292 : i32 to index
    %c0_116 = arith.constant 0 : index
    %c0_117 = arith.constant 0 : index
    %333 = vector.load %arg4[%332, %c0_116, %c0_117] : memref<8x8x128xbf16, #tpu.memory_space<vmem>>, vector<1x8x128xbf16>
    %334 = vector.shape_cast %333 : vector<1x8x128xbf16> to vector<8x128xbf16>
    %335 = vector.shape_cast %331 : vector<8x128xbf16> to vector<1x8x128xbf16>
    tpu.vector_store %arg4[%332, %c0_116, %c0_117], %335 {strides = array<i32>} : memref<8x8x128xbf16, #tpu.memory_space<vmem>>, vector<1x8x128xbf16>,
    %c7_i32_118 = arith.constant 7 : i32
    %c2_i32_119 = arith.constant 2 : i32
    %336 = arith.muli %c2_i32_119, %c7_i32_118 : i32
    %c7_i32_120 = arith.constant 7 : i32
    %337 = arith.subi %c7_i32_120, %336 : i32
    %338 = arith.muli %arg0, %337 : i32
    %339 = arith.addi %c7_i32_118, %338 : i32
    %340 = arith.index_cast %339 : i32 to index
    %c0_121 = arith.constant 0 : index
    %c0_122 = arith.constant 0 : index
    %341 = vector.load %arg2[%340, %c0_121, %c0_122] : memref<8x8x512xbf16, #tpu.memory_space<vmem>>, vector<1x8x512xbf16>
    %342 = vector.shape_cast %341 : vector<1x8x512xbf16> to vector<8x512xbf16>
    %343 = arith.extf %342 : vector<8x512xbf16> to vector<8x512xf32>
    %344 = arith.truncf %330 : vector<8x128xf32> to vector<8x128xbf16>
    %cst_123 = arith.constant dense<0.000000e+00> : vector<8x512xf32>
    %345 = tpu.matmul %344, %4, %cst_123 {dimension_numbers = #tpu.dot_dimension_numbers<[1], [0], [0], [1], [0, 0, 1, 1], [], []>} : vector<8x128xbf16>, vector<128x512xbf16>, vector<8x512xf32> -> vector<8x512xf32>
    %346 = arith.addf %343, %345 : vector<8x512xf32>
    %347 = vector.extract_strided_slice %346 {offsets = [0, 0], sizes = [8, 128], strides = [1, 1]} : vector<8x512xf32> to vector<8x128xf32>
    %cst_124 = arith.constant 5.000000e-01 : f32
    %348 = vector.broadcast %cst_124 : f32 to vector<8x128xf32>
    %349 = arith.mulf %348, %347 : vector<8x128xf32>
    %350 = math.tanh %349 : vector<8x128xf32>
    %cst_125 = arith.constant 5.000000e-01 : f32
    %351 = vector.broadcast %cst_125 : f32 to vector<8x128xf32>
    %352 = arith.mulf %351, %350 : vector<8x128xf32>
    %cst_126 = arith.constant 5.000000e-01 : f32
    %353 = vector.broadcast %cst_126 : f32 to vector<8x128xf32>
    %354 = arith.addf %352, %353 : vector<8x128xf32>
    %355 = vector.extract_strided_slice %346 {offsets = [0, 128], sizes = [8, 128], strides = [1, 1]} : vector<8x512xf32> to vector<8x128xf32>
    %cst_127 = arith.constant 5.000000e-01 : f32
    %356 = vector.broadcast %cst_127 : f32 to vector<8x128xf32>
    %357 = arith.mulf %356, %355 : vector<8x128xf32>
    %358 = math.tanh %357 : vector<8x128xf32>
    %cst_128 = arith.constant 5.000000e-01 : f32
    %359 = vector.broadcast %cst_128 : f32 to vector<8x128xf32>
    %360 = arith.mulf %359, %358 : vector<8x128xf32>
    %cst_129 = arith.constant 5.000000e-01 : f32
    %361 = vector.broadcast %cst_129 : f32 to vector<8x128xf32>
    %362 = arith.addf %360, %361 : vector<8x128xf32>
    %363 = vector.extract_strided_slice %346 {offsets = [0, 256], sizes = [8, 128], strides = [1, 1]} : vector<8x512xf32> to vector<8x128xf32>
    %364 = math.tanh %363 : vector<8x128xf32>
    %365 = vector.extract_strided_slice %346 {offsets = [0, 384], sizes = [8, 128], strides = [1, 1]} : vector<8x512xf32> to vector<8x128xf32>
    %cst_130 = arith.constant 5.000000e-01 : f32
    %366 = vector.broadcast %cst_130 : f32 to vector<8x128xf32>
    %367 = arith.mulf %366, %365 : vector<8x128xf32>
    %368 = math.tanh %367 : vector<8x128xf32>
    %cst_131 = arith.constant 5.000000e-01 : f32
    %369 = vector.broadcast %cst_131 : f32 to vector<8x128xf32>
    %370 = arith.mulf %369, %368 : vector<8x128xf32>
    %cst_132 = arith.constant 5.000000e-01 : f32
    %371 = vector.broadcast %cst_132 : f32 to vector<8x128xf32>
    %372 = arith.addf %370, %371 : vector<8x128xf32>
    %373 = arith.mulf %362, %328 : vector<8x128xf32>
    %374 = arith.mulf %354, %364 : vector<8x128xf32>
    %375 = arith.addf %373, %374 : vector<8x128xf32>
    %376 = math.tanh %375 : vector<8x128xf32>
    %377 = arith.mulf %372, %376 : vector<8x128xf32>
    %378 = arith.truncf %377 : vector<8x128xf32> to vector<8x128xbf16>
    %379 = arith.index_cast %339 : i32 to index
    %c0_133 = arith.constant 0 : index
    %c0_134 = arith.constant 0 : index
    %380 = vector.load %arg4[%379, %c0_133, %c0_134] : memref<8x8x128xbf16, #tpu.memory_space<vmem>>, vector<1x8x128xbf16>
    %381 = vector.shape_cast %380 : vector<1x8x128xbf16> to vector<8x128xbf16>
    %382 = vector.shape_cast %378 : vector<8x128xbf16> to vector<1x8x128xbf16>
    tpu.vector_store %arg4[%379, %c0_133, %c0_134], %382 {strides = array<i32>} : memref<8x8x128xbf16, #tpu.memory_space<vmem>>, vector<1x8x128xbf16>,
    %c8_i32 = arith.constant 8 : i32
    %c0_135 = arith.constant 0 : index
    %c0_136 = arith.constant 0 : index
    %383 = vector.load %arg5[%c0_135, %c0_136] : memref<8x128xf32, #tpu.memory_space<vmem>>, vector<8x128xf32>
    tpu.vector_store %arg5[%c0_135, %c0_136], %377 {strides = array<i32>} : memref<8x128xf32, #tpu.memory_space<vmem>>, vector<8x128xf32>,
    %c0_137 = arith.constant 0 : index
    %c0_138 = arith.constant 0 : index
    %384 = vector.load %arg6[%c0_137, %c0_138] : memref<8x128xf32, #tpu.memory_space<vmem>>, vector<8x128xf32>
    tpu.vector_store %arg6[%c0_137, %c0_138], %375 {strides = array<i32>} : memref<8x128xf32, #tpu.memory_space<vmem>>, vector<8x128xf32>,
    return
  }
  func.func @transform_0(%arg0: i32, %arg1: i32) -> (i32, i32, i32) {
    %c2_i32 = arith.constant 2 : i32
    %0 = arith.muli %c2_i32, %arg1 : i32
    %c0_i32 = arith.constant 0 : i32
    %1 = arith.subi %c0_i32, %0 : i32
    %2 = arith.muli %arg0, %1 : i32
    %3 = arith.addi %arg1, %2 : i32
    %c0_i32_0 = arith.constant 0 : i32
    %c0_i32_1 = arith.constant 0 : i32
    return %3, %c0_i32_0, %arg0 : i32, i32, i32
  }
  func.func @transform_1(%arg0: i32, %arg1: i32) -> (i32, i32, i32) {
    %c0_i32 = arith.constant 0 : i32
    %c0_i32_0 = arith.constant 0 : i32
    %c0_i32_1 = arith.constant 0 : i32
    return %arg0, %c0_i32, %c0_i32_0 : i32, i32, i32
  }
  func.func @transform_2(%arg0: i32, %arg1: i32) -> (i32, i32, i32) {
    %c2_i32 = arith.constant 2 : i32
    %0 = arith.muli %c2_i32, %arg1 : i32
    %c0_i32 = arith.constant 0 : i32
    %1 = arith.subi %c0_i32, %0 : i32
    %2 = arith.muli %arg0, %1 : i32
    %3 = arith.addi %arg1, %2 : i32
    %c0_i32_0 = arith.constant 0 : i32
    %c0_i32_1 = arith.constant 0 : i32
    return %3, %c0_i32_0, %arg0 : i32, i32, i32
  }
}

module attributes {stable_mosaic.version = 11 : i64} {
  func.func @matmul_bias_kernel(%arg0: i32, %arg1: memref<64x256xbf16, #tpu.memory_space<vmem>>, %arg2: memref<256x1024xbf16, #tpu.memory_space<vmem>>, %arg3: memref<1x1024xf32, #tpu.memory_space<vmem>>, %arg4: memref<64x1024xbf16, #tpu.memory_space<vmem>>) attributes {dimension_semantics = [#tpu.dimension_semantics<parallel>], iteration_bounds = array<i64: 1>, scalar_prefetch = 0 : i64, scratch_operands = 0 : i64, tpu.core_type = #tpu.core_type<tc>, window_params = [{transform_indices = @transform_0, window_bounds = array<i64: 64, 256>}, {pipeline_mode = #tpu.pipeline_mode<synchronous>, transform_indices = @transform_1, window_bounds = array<i64: 256, 1024>}, {pipeline_mode = #tpu.pipeline_mode<synchronous>, transform_indices = @transform_2, window_bounds = array<i64: 1, 1024>}, {transform_indices = @transform_3, window_bounds = array<i64: 64, 1024>}]} {
    %c0 = arith.constant 0 : index
    %c0_0 = arith.constant 0 : index
    %0 = vector.load %arg1[%c0, %c0_0] : memref<64x256xbf16, #tpu.memory_space<vmem>>, vector<64x256xbf16>
    %c0_1 = arith.constant 0 : index
    %c0_2 = arith.constant 0 : index
    %1 = vector.load %arg2[%c0_1, %c0_2] : memref<256x1024xbf16, #tpu.memory_space<vmem>>, vector<256x1024xbf16>
    %cst = arith.constant dense<0.000000e+00> : vector<64x1024xf32>
    %2 = tpu.matmul %0, %1, %cst {dimension_numbers = #tpu.dot_dimension_numbers<[1], [0], [0], [1], [0, 0, 1, 1], [], []>} : vector<64x256xbf16>, vector<256x1024xbf16>, vector<64x1024xf32> -> vector<64x1024xf32>
    %c0_3 = arith.constant 0 : index
    %c0_4 = arith.constant 0 : index
    %3 = vector.load %arg3[%c0_3, %c0_4] : memref<1x1024xf32, #tpu.memory_space<vmem>>, vector<1x1024xf32>
    %4 = vector.broadcast %3 : vector<1x1024xf32> to vector<64x1024xf32>
    %5 = arith.addf %2, %4 : vector<64x1024xf32>
    %6 = arith.truncf %5 : vector<64x1024xf32> to vector<64x1024xbf16>
    %c0_5 = arith.constant 0 : index
    %c0_6 = arith.constant 0 : index
    %7 = vector.load %arg4[%c0_5, %c0_6] : memref<64x1024xbf16, #tpu.memory_space<vmem>>, vector<64x1024xbf16>
    tpu.vector_store %arg4[%c0_5, %c0_6], %6 {strides = array<i32>} : memref<64x1024xbf16, #tpu.memory_space<vmem>>, vector<64x1024xbf16>,
    return
  }
  func.func @transform_0(%arg0: i32) -> (i32, i32) {
    %c0_i32 = arith.constant 0 : i32
    %c0_i32_0 = arith.constant 0 : i32
    return %arg0, %c0_i32 : i32, i32
  }
  func.func @transform_1(%arg0: i32) -> (i32, i32) {
    %c0_i32 = arith.constant 0 : i32
    %c0_i32_0 = arith.constant 0 : i32
    %c0_i32_1 = arith.constant 0 : i32
    return %c0_i32, %c0_i32_0 : i32, i32
  }
  func.func @transform_2(%arg0: i32) -> (i32, i32) {
    %c0_i32 = arith.constant 0 : i32
    %c0_i32_0 = arith.constant 0 : i32
    %c0_i32_1 = arith.constant 0 : i32
    return %c0_i32, %c0_i32_0 : i32, i32
  }
  func.func @transform_3(%arg0: i32) -> (i32, i32) {
    %c0_i32 = arith.constant 0 : i32
    %c0_i32_0 = arith.constant 0 : i32
    return %arg0, %c0_i32 : i32, i32
  }
}

module attributes {stable_mosaic.version = 11 : i64} {
  func.func @bilstm_recurrence_kernel(%arg0: i32, %arg1: i32, %arg2: memref<8x8x512xbf16, #tpu.memory_space<vmem>>, %arg3: memref<1x128x512xbf16, #tpu.memory_space<vmem>>, %arg4: memref<8x8x128xbf16, #tpu.memory_space<vmem>>, %arg5: memref<8x128xf32, #tpu.memory_space<vmem>>, %arg6: memref<8x128xf32, #tpu.memory_space<vmem>>) attributes {dimension_semantics = [#tpu.dimension_semantics<parallel>, #tpu.dimension_semantics<arbitrary>], iteration_bounds = array<i64: 2, 1>, scalar_prefetch = 0 : i64, scratch_operands = 2 : i64, tpu.core_type = #tpu.core_type<tc>, window_params = [{transform_indices = @transform_0, window_bounds = array<i64: 8, 8, 512>}, {transform_indices = @transform_1, window_bounds = array<i64: 1, 128, 512>}, {transform_indices = @transform_2, window_bounds = array<i64: 8, 8, 128>}]} {
    %c0_i32 = arith.constant 0 : i32
    %0 = arith.cmpi eq, %arg1, %c0_i32 : i32
    %1 = arith.extui %0 : i1 to i32
    %c0_i32_0 = arith.constant 0 : i32
    %2 = arith.cmpi ne, %1, %c0_i32_0 : i32
    scf.if %2 {
      %cst_139 = arith.constant 0.000000e+00 : f32
      %385 = vector.broadcast %cst_139 : f32 to vector<8x128xf32>
      %c0_140 = arith.constant 0 : index
      %c0_141 = arith.constant 0 : index
      %386 = vector.load %arg5[%c0_140, %c0_141] : memref<8x128xf32, #tpu.memory_space<vmem>>, vector<8x128xf32>
      tpu.vector_store %arg5[%c0_140, %c0_141], %385 {strides = array<i32>} : memref<8x128xf32, #tpu.memory_space<vmem>>, vector<8x128xf32>,
      %cst_142 = arith.constant 0.000000e+00 : f32
      %387 = vector.broadcast %cst_142 : f32 to vector<8x128xf32>
      %c0_143 = arith.constant 0 : index
      %c0_144 = arith.constant 0 : index
      %388 = vector.load %arg6[%c0_143, %c0_144] : memref<8x128xf32, #tpu.memory_space<vmem>>, vector<8x128xf32>
      tpu.vector_store %arg6[%c0_143, %c0_144], %387 {strides = array<i32>} : memref<8x128xf32, #tpu.memory_space<vmem>>, vector<8x128xf32>,
    } else {
    }
    %c0 = arith.constant 0 : index
    %c0_1 = arith.constant 0 : index
    %c0_2 = arith.constant 0 : index
    %3 = vector.load %arg3[%c0, %c0_1, %c0_2] : memref<1x128x512xbf16, #tpu.memory_space<vmem>>, vector<1x128x512xbf16>
    %4 = vector.shape_cast %3 : vector<1x128x512xbf16> to vector<128x512xbf16>
    %c0_3 = arith.constant 0 : index
    %c0_4 = arith.constant 0 : index
    %5 = vector.load %arg5[%c0_3, %c0_4] : memref<8x128xf32, #tpu.memory_space<vmem>>, vector<8x128xf32>
    %c0_5 = arith.constant 0 : index
    %c0_6 = arith.constant 0 : index
    %6 = vector.load %arg6[%c0_5, %c0_6] : memref<8x128xf32, #tpu.memory_space<vmem>>, vector<8x128xf32>
    %c0_i32_7 = arith.constant 0 : i32
    %c2_i32 = arith.constant 2 : i32
    %7 = arith.muli %c2_i32, %c0_i32_7 : i32
    %c7_i32 = arith.constant 7 : i32
    %8 = arith.subi %c7_i32, %7 : i32
    %9 = arith.muli %arg0, %8 : i32
    %10 = arith.addi %c0_i32_7, %9 : i32
    %11 = arith.index_cast %10 : i32 to index
    %c0_8 = arith.constant 0 : index
    %c0_9 = arith.constant 0 : index
    %12 = vector.load %arg2[%11, %c0_8, %c0_9] : memref<8x8x512xbf16, #tpu.memory_space<vmem>>, vector<1x8x512xbf16>
    %13 = vector.shape_cast %12 : vector<1x8x512xbf16> to vector<8x512xbf16>
    %14 = arith.extf %13 : vector<8x512xbf16> to vector<8x512xf32>
    %15 = arith.truncf %5 : vector<8x128xf32> to vector<8x128xbf16>
    %cst = arith.constant dense<0.000000e+00> : vector<8x512xf32>
    %16 = tpu.matmul %15, %4, %cst {dimension_numbers = #tpu.dot_dimension_numbers<[1], [0], [0], [1], [0, 0, 1, 1], [], []>} : vector<8x128xbf16>, vector<128x512xbf16>, vector<8x512xf32> -> vector<8x512xf32>
    %17 = arith.addf %14, %16 : vector<8x512xf32>
    %18 = vector.extract_strided_slice %17 {offsets = [0, 0], sizes = [8, 128], strides = [1, 1]} : vector<8x512xf32> to vector<8x128xf32>
    %cst_10 = arith.constant 5.000000e-01 : f32
    %19 = vector.broadcast %cst_10 : f32 to vector<8x128xf32>
    %20 = arith.mulf %19, %18 : vector<8x128xf32>
    %21 = math.tanh %20 : vector<8x128xf32>
    %cst_11 = arith.constant 5.000000e-01 : f32
    %22 = vector.broadcast %cst_11 : f32 to vector<8x128xf32>
    %23 = arith.mulf %22, %21 : vector<8x128xf32>
    %cst_12 = arith.constant 5.000000e-01 : f32
    %24 = vector.broadcast %cst_12 : f32 to vector<8x128xf32>
    %25 = arith.addf %23, %24 : vector<8x128xf32>
    %26 = vector.extract_strided_slice %17 {offsets = [0, 128], sizes = [8, 128], strides = [1, 1]} : vector<8x512xf32> to vector<8x128xf32>
    %cst_13 = arith.constant 5.000000e-01 : f32
    %27 = vector.broadcast %cst_13 : f32 to vector<8x128xf32>
    %28 = arith.mulf %27, %26 : vector<8x128xf32>
    %29 = math.tanh %28 : vector<8x128xf32>
    %cst_14 = arith.constant 5.000000e-01 : f32
    %30 = vector.broadcast %cst_14 : f32 to vector<8x128xf32>
    %31 = arith.mulf %30, %29 : vector<8x128xf32>
    %cst_15 = arith.constant 5.000000e-01 : f32
    %32 = vector.broadcast %cst_15 : f32 to vector<8x128xf32>
    %33 = arith.addf %31, %32 : vector<8x128xf32>
    %34 = vector.extract_strided_slice %17 {offsets = [0, 256], sizes = [8, 128], strides = [1, 1]} : vector<8x512xf32> to vector<8x128xf32>
    %35 = math.tanh %34 : vector<8x128xf32>
    %36 = vector.extract_strided_slice %17 {offsets = [0, 384], sizes = [8, 128], strides = [1, 1]} : vector<8x512xf32> to vector<8x128xf32>
    %cst_16 = arith.constant 5.000000e-01 : f32
    %37 = vector.broadcast %cst_16 : f32 to vector<8x128xf32>
    %38 = arith.mulf %37, %36 : vector<8x128xf32>
    %39 = math.tanh %38 : vector<8x128xf32>
    %cst_17 = arith.constant 5.000000e-01 : f32
    %40 = vector.broadcast %cst_17 : f32 to vector<8x128xf32>
    %41 = arith.mulf %40, %39 : vector<8x128xf32>
    %cst_18 = arith.constant 5.000000e-01 : f32
    %42 = vector.broadcast %cst_18 : f32 to vector<8x128xf32>
    %43 = arith.addf %41, %42 : vector<8x128xf32>
    %44 = arith.mulf %33, %6 : vector<8x128xf32>
    %45 = arith.mulf %25, %35 : vector<8x128xf32>
    %46 = arith.addf %44, %45 : vector<8x128xf32>
    %47 = math.tanh %46 : vector<8x128xf32>
    %48 = arith.mulf %43, %47 : vector<8x128xf32>
    %49 = arith.truncf %48 : vector<8x128xf32> to vector<8x128xbf16>
    %50 = arith.index_cast %10 : i32 to index
    %c0_19 = arith.constant 0 : index
    %c0_20 = arith.constant 0 : index
    %51 = vector.load %arg4[%50, %c0_19, %c0_20] : memref<8x8x128xbf16, #tpu.memory_space<vmem>>, vector<1x8x128xbf16>
    %52 = vector.shape_cast %51 : vector<1x8x128xbf16> to vector<8x128xbf16>
    %53 = vector.shape_cast %49 : vector<8x128xbf16> to vector<1x8x128xbf16>
    tpu.vector_store %arg4[%50, %c0_19, %c0_20], %53 {strides = array<i32>} : memref<8x8x128xbf16, #tpu.memory_space<vmem>>, vector<1x8x128xbf16>,
    %c1_i32 = arith.constant 1 : i32
    %c2_i32_21 = arith.constant 2 : i32
    %54 = arith.muli %c2_i32_21, %c1_i32 : i32
    %c7_i32_22 = arith.constant 7 : i32
    %55 = arith.subi %c7_i32_22, %54 : i32
    %56 = arith.muli %arg0, %55 : i32
    %57 = arith.addi %c1_i32, %56 : i32
    %58 = arith.index_cast %57 : i32 to index
    %c0_23 = arith.constant 0 : index
    %c0_24 = arith.constant 0 : index
    %59 = vector.load %arg2[%58, %c0_23, %c0_24] : memref<8x8x512xbf16, #tpu.memory_space<vmem>>, vector<1x8x512xbf16>
    %60 = vector.shape_cast %59 : vector<1x8x512xbf16> to vector<8x512xbf16>
    %61 = arith.extf %60 : vector<8x512xbf16> to vector<8x512xf32>
    %62 = arith.truncf %48 : vector<8x128xf32> to vector<8x128xbf16>
    %cst_25 = arith.constant dense<0.000000e+00> : vector<8x512xf32>
    %63 = tpu.matmul %62, %4, %cst_25 {dimension_numbers = #tpu.dot_dimension_numbers<[1], [0], [0], [1], [0, 0, 1, 1], [], []>} : vector<8x128xbf16>, vector<128x512xbf16>, vector<8x512xf32> -> vector<8x512xf32>
    %64 = arith.addf %61, %63 : vector<8x512xf32>
    %65 = vector.extract_strided_slice %64 {offsets = [0, 0], sizes = [8, 128], strides = [1, 1]} : vector<8x512xf32> to vector<8x128xf32>
    %cst_26 = arith.constant 5.000000e-01 : f32
    %66 = vector.broadcast %cst_26 : f32 to vector<8x128xf32>
    %67 = arith.mulf %66, %65 : vector<8x128xf32>
    %68 = math.tanh %67 : vector<8x128xf32>
    %cst_27 = arith.constant 5.000000e-01 : f32
    %69 = vector.broadcast %cst_27 : f32 to vector<8x128xf32>
    %70 = arith.mulf %69, %68 : vector<8x128xf32>
    %cst_28 = arith.constant 5.000000e-01 : f32
    %71 = vector.broadcast %cst_28 : f32 to vector<8x128xf32>
    %72 = arith.addf %70, %71 : vector<8x128xf32>
    %73 = vector.extract_strided_slice %64 {offsets = [0, 128], sizes = [8, 128], strides = [1, 1]} : vector<8x512xf32> to vector<8x128xf32>
    %cst_29 = arith.constant 5.000000e-01 : f32
    %74 = vector.broadcast %cst_29 : f32 to vector<8x128xf32>
    %75 = arith.mulf %74, %73 : vector<8x128xf32>
    %76 = math.tanh %75 : vector<8x128xf32>
    %cst_30 = arith.constant 5.000000e-01 : f32
    %77 = vector.broadcast %cst_30 : f32 to vector<8x128xf32>
    %78 = arith.mulf %77, %76 : vector<8x128xf32>
    %cst_31 = arith.constant 5.000000e-01 : f32
    %79 = vector.broadcast %cst_31 : f32 to vector<8x128xf32>
    %80 = arith.addf %78, %79 : vector<8x128xf32>
    %81 = vector.extract_strided_slice %64 {offsets = [0, 256], sizes = [8, 128], strides = [1, 1]} : vector<8x512xf32> to vector<8x128xf32>
    %82 = math.tanh %81 : vector<8x128xf32>
    %83 = vector.extract_strided_slice %64 {offsets = [0, 384], sizes = [8, 128], strides = [1, 1]} : vector<8x512xf32> to vector<8x128xf32>
    %cst_32 = arith.constant 5.000000e-01 : f32
    %84 = vector.broadcast %cst_32 : f32 to vector<8x128xf32>
    %85 = arith.mulf %84, %83 : vector<8x128xf32>
    %86 = math.tanh %85 : vector<8x128xf32>
    %cst_33 = arith.constant 5.000000e-01 : f32
    %87 = vector.broadcast %cst_33 : f32 to vector<8x128xf32>
    %88 = arith.mulf %87, %86 : vector<8x128xf32>
    %cst_34 = arith.constant 5.000000e-01 : f32
    %89 = vector.broadcast %cst_34 : f32 to vector<8x128xf32>
    %90 = arith.addf %88, %89 : vector<8x128xf32>
    %91 = arith.mulf %80, %46 : vector<8x128xf32>
    %92 = arith.mulf %72, %82 : vector<8x128xf32>
    %93 = arith.addf %91, %92 : vector<8x128xf32>
    %94 = math.tanh %93 : vector<8x128xf32>
    %95 = arith.mulf %90, %94 : vector<8x128xf32>
    %96 = arith.truncf %95 : vector<8x128xf32> to vector<8x128xbf16>
    %97 = arith.index_cast %57 : i32 to index
    %c0_35 = arith.constant 0 : index
    %c0_36 = arith.constant 0 : index
    %98 = vector.load %arg4[%97, %c0_35, %c0_36] : memref<8x8x128xbf16, #tpu.memory_space<vmem>>, vector<1x8x128xbf16>
    %99 = vector.shape_cast %98 : vector<1x8x128xbf16> to vector<8x128xbf16>
    %100 = vector.shape_cast %96 : vector<8x128xbf16> to vector<1x8x128xbf16>
    tpu.vector_store %arg4[%97, %c0_35, %c0_36], %100 {strides = array<i32>} : memref<8x8x128xbf16, #tpu.memory_space<vmem>>, vector<1x8x128xbf16>,
    %c2_i32_37 = arith.constant 2 : i32
    %c2_i32_38 = arith.constant 2 : i32
    %101 = arith.muli %c2_i32_38, %c2_i32_37 : i32
    %c7_i32_39 = arith.constant 7 : i32
    %102 = arith.subi %c7_i32_39, %101 : i32
    %103 = arith.muli %arg0, %102 : i32
    %104 = arith.addi %c2_i32_37, %103 : i32
    %105 = arith.index_cast %104 : i32 to index
    %c0_40 = arith.constant 0 : index
    %c0_41 = arith.constant 0 : index
    %106 = vector.load %arg2[%105, %c0_40, %c0_41] : memref<8x8x512xbf16, #tpu.memory_space<vmem>>, vector<1x8x512xbf16>
    %107 = vector.shape_cast %106 : vector<1x8x512xbf16> to vector<8x512xbf16>
    %108 = arith.extf %107 : vector<8x512xbf16> to vector<8x512xf32>
    %109 = arith.truncf %95 : vector<8x128xf32> to vector<8x128xbf16>
    %cst_42 = arith.constant dense<0.000000e+00> : vector<8x512xf32>
    %110 = tpu.matmul %109, %4, %cst_42 {dimension_numbers = #tpu.dot_dimension_numbers<[1], [0], [0], [1], [0, 0, 1, 1], [], []>} : vector<8x128xbf16>, vector<128x512xbf16>, vector<8x512xf32> -> vector<8x512xf32>
    %111 = arith.addf %108, %110 : vector<8x512xf32>
    %112 = vector.extract_strided_slice %111 {offsets = [0, 0], sizes = [8, 128], strides = [1, 1]} : vector<8x512xf32> to vector<8x128xf32>
    %cst_43 = arith.constant 5.000000e-01 : f32
    %113 = vector.broadcast %cst_43 : f32 to vector<8x128xf32>
    %114 = arith.mulf %113, %112 : vector<8x128xf32>
    %115 = math.tanh %114 : vector<8x128xf32>
    %cst_44 = arith.constant 5.000000e-01 : f32
    %116 = vector.broadcast %cst_44 : f32 to vector<8x128xf32>
    %117 = arith.mulf %116, %115 : vector<8x128xf32>
    %cst_45 = arith.constant 5.000000e-01 : f32
    %118 = vector.broadcast %cst_45 : f32 to vector<8x128xf32>
    %119 = arith.addf %117, %118 : vector<8x128xf32>
    %120 = vector.extract_strided_slice %111 {offsets = [0, 128], sizes = [8, 128], strides = [1, 1]} : vector<8x512xf32> to vector<8x128xf32>
    %cst_46 = arith.constant 5.000000e-01 : f32
    %121 = vector.broadcast %cst_46 : f32 to vector<8x128xf32>
    %122 = arith.mulf %121, %120 : vector<8x128xf32>
    %123 = math.tanh %122 : vector<8x128xf32>
    %cst_47 = arith.constant 5.000000e-01 : f32
    %124 = vector.broadcast %cst_47 : f32 to vector<8x128xf32>
    %125 = arith.mulf %124, %123 : vector<8x128xf32>
    %cst_48 = arith.constant 5.000000e-01 : f32
    %126 = vector.broadcast %cst_48 : f32 to vector<8x128xf32>
    %127 = arith.addf %125, %126 : vector<8x128xf32>
    %128 = vector.extract_strided_slice %111 {offsets = [0, 256], sizes = [8, 128], strides = [1, 1]} : vector<8x512xf32> to vector<8x128xf32>
    %129 = math.tanh %128 : vector<8x128xf32>
    %130 = vector.extract_strided_slice %111 {offsets = [0, 384], sizes = [8, 128], strides = [1, 1]} : vector<8x512xf32> to vector<8x128xf32>
    %cst_49 = arith.constant 5.000000e-01 : f32
    %131 = vector.broadcast %cst_49 : f32 to vector<8x128xf32>
    %132 = arith.mulf %131, %130 : vector<8x128xf32>
    %133 = math.tanh %132 : vector<8x128xf32>
    %cst_50 = arith.constant 5.000000e-01 : f32
    %134 = vector.broadcast %cst_50 : f32 to vector<8x128xf32>
    %135 = arith.mulf %134, %133 : vector<8x128xf32>
    %cst_51 = arith.constant 5.000000e-01 : f32
    %136 = vector.broadcast %cst_51 : f32 to vector<8x128xf32>
    %137 = arith.addf %135, %136 : vector<8x128xf32>
    %138 = arith.mulf %127, %93 : vector<8x128xf32>
    %139 = arith.mulf %119, %129 : vector<8x128xf32>
    %140 = arith.addf %138, %139 : vector<8x128xf32>
    %141 = math.tanh %140 : vector<8x128xf32>
    %142 = arith.mulf %137, %141 : vector<8x128xf32>
    %143 = arith.truncf %142 : vector<8x128xf32> to vector<8x128xbf16>
    %144 = arith.index_cast %104 : i32 to index
    %c0_52 = arith.constant 0 : index
    %c0_53 = arith.constant 0 : index
    %145 = vector.load %arg4[%144, %c0_52, %c0_53] : memref<8x8x128xbf16, #tpu.memory_space<vmem>>, vector<1x8x128xbf16>
    %146 = vector.shape_cast %145 : vector<1x8x128xbf16> to vector<8x128xbf16>
    %147 = vector.shape_cast %143 : vector<8x128xbf16> to vector<1x8x128xbf16>
    tpu.vector_store %arg4[%144, %c0_52, %c0_53], %147 {strides = array<i32>} : memref<8x8x128xbf16, #tpu.memory_space<vmem>>, vector<1x8x128xbf16>,
    %c3_i32 = arith.constant 3 : i32
    %c2_i32_54 = arith.constant 2 : i32
    %148 = arith.muli %c2_i32_54, %c3_i32 : i32
    %c7_i32_55 = arith.constant 7 : i32
    %149 = arith.subi %c7_i32_55, %148 : i32
    %150 = arith.muli %arg0, %149 : i32
    %151 = arith.addi %c3_i32, %150 : i32
    %152 = arith.index_cast %151 : i32 to index
    %c0_56 = arith.constant 0 : index
    %c0_57 = arith.constant 0 : index
    %153 = vector.load %arg2[%152, %c0_56, %c0_57] : memref<8x8x512xbf16, #tpu.memory_space<vmem>>, vector<1x8x512xbf16>
    %154 = vector.shape_cast %153 : vector<1x8x512xbf16> to vector<8x512xbf16>
    %155 = arith.extf %154 : vector<8x512xbf16> to vector<8x512xf32>
    %156 = arith.truncf %142 : vector<8x128xf32> to vector<8x128xbf16>
    %cst_58 = arith.constant dense<0.000000e+00> : vector<8x512xf32>
    %157 = tpu.matmul %156, %4, %cst_58 {dimension_numbers = #tpu.dot_dimension_numbers<[1], [0], [0], [1], [0, 0, 1, 1], [], []>} : vector<8x128xbf16>, vector<128x512xbf16>, vector<8x512xf32> -> vector<8x512xf32>
    %158 = arith.addf %155, %157 : vector<8x512xf32>
    %159 = vector.extract_strided_slice %158 {offsets = [0, 0], sizes = [8, 128], strides = [1, 1]} : vector<8x512xf32> to vector<8x128xf32>
    %cst_59 = arith.constant 5.000000e-01 : f32
    %160 = vector.broadcast %cst_59 : f32 to vector<8x128xf32>
    %161 = arith.mulf %160, %159 : vector<8x128xf32>
    %162 = math.tanh %161 : vector<8x128xf32>
    %cst_60 = arith.constant 5.000000e-01 : f32
    %163 = vector.broadcast %cst_60 : f32 to vector<8x128xf32>
    %164 = arith.mulf %163, %162 : vector<8x128xf32>
    %cst_61 = arith.constant 5.000000e-01 : f32
    %165 = vector.broadcast %cst_61 : f32 to vector<8x128xf32>
    %166 = arith.addf %164, %165 : vector<8x128xf32>
    %167 = vector.extract_strided_slice %158 {offsets = [0, 128], sizes = [8, 128], strides = [1, 1]} : vector<8x512xf32> to vector<8x128xf32>
    %cst_62 = arith.constant 5.000000e-01 : f32
    %168 = vector.broadcast %cst_62 : f32 to vector<8x128xf32>
    %169 = arith.mulf %168, %167 : vector<8x128xf32>
    %170 = math.tanh %169 : vector<8x128xf32>
    %cst_63 = arith.constant 5.000000e-01 : f32
    %171 = vector.broadcast %cst_63 : f32 to vector<8x128xf32>
    %172 = arith.mulf %171, %170 : vector<8x128xf32>
    %cst_64 = arith.constant 5.000000e-01 : f32
    %173 = vector.broadcast %cst_64 : f32 to vector<8x128xf32>
    %174 = arith.addf %172, %173 : vector<8x128xf32>
    %175 = vector.extract_strided_slice %158 {offsets = [0, 256], sizes = [8, 128], strides = [1, 1]} : vector<8x512xf32> to vector<8x128xf32>
    %176 = math.tanh %175 : vector<8x128xf32>
    %177 = vector.extract_strided_slice %158 {offsets = [0, 384], sizes = [8, 128], strides = [1, 1]} : vector<8x512xf32> to vector<8x128xf32>
    %cst_65 = arith.constant 5.000000e-01 : f32
    %178 = vector.broadcast %cst_65 : f32 to vector<8x128xf32>
    %179 = arith.mulf %178, %177 : vector<8x128xf32>
    %180 = math.tanh %179 : vector<8x128xf32>
    %cst_66 = arith.constant 5.000000e-01 : f32
    %181 = vector.broadcast %cst_66 : f32 to vector<8x128xf32>
    %182 = arith.mulf %181, %180 : vector<8x128xf32>
    %cst_67 = arith.constant 5.000000e-01 : f32
    %183 = vector.broadcast %cst_67 : f32 to vector<8x128xf32>
    %184 = arith.addf %182, %183 : vector<8x128xf32>
    %185 = arith.mulf %174, %140 : vector<8x128xf32>
    %186 = arith.mulf %166, %176 : vector<8x128xf32>
    %187 = arith.addf %185, %186 : vector<8x128xf32>
    %188 = math.tanh %187 : vector<8x128xf32>
    %189 = arith.mulf %184, %188 : vector<8x128xf32>
    %190 = arith.truncf %189 : vector<8x128xf32> to vector<8x128xbf16>
    %191 = arith.index_cast %151 : i32 to index
    %c0_68 = arith.constant 0 : index
    %c0_69 = arith.constant 0 : index
    %192 = vector.load %arg4[%191, %c0_68, %c0_69] : memref<8x8x128xbf16, #tpu.memory_space<vmem>>, vector<1x8x128xbf16>
    %193 = vector.shape_cast %192 : vector<1x8x128xbf16> to vector<8x128xbf16>
    %194 = vector.shape_cast %190 : vector<8x128xbf16> to vector<1x8x128xbf16>
    tpu.vector_store %arg4[%191, %c0_68, %c0_69], %194 {strides = array<i32>} : memref<8x8x128xbf16, #tpu.memory_space<vmem>>, vector<1x8x128xbf16>,
    %c4_i32 = arith.constant 4 : i32
    %c2_i32_70 = arith.constant 2 : i32
    %195 = arith.muli %c2_i32_70, %c4_i32 : i32
    %c7_i32_71 = arith.constant 7 : i32
    %196 = arith.subi %c7_i32_71, %195 : i32
    %197 = arith.muli %arg0, %196 : i32
    %198 = arith.addi %c4_i32, %197 : i32
    %199 = arith.index_cast %198 : i32 to index
    %c0_72 = arith.constant 0 : index
    %c0_73 = arith.constant 0 : index
    %200 = vector.load %arg2[%199, %c0_72, %c0_73] : memref<8x8x512xbf16, #tpu.memory_space<vmem>>, vector<1x8x512xbf16>
    %201 = vector.shape_cast %200 : vector<1x8x512xbf16> to vector<8x512xbf16>
    %202 = arith.extf %201 : vector<8x512xbf16> to vector<8x512xf32>
    %203 = arith.truncf %189 : vector<8x128xf32> to vector<8x128xbf16>
    %cst_74 = arith.constant dense<0.000000e+00> : vector<8x512xf32>
    %204 = tpu.matmul %203, %4, %cst_74 {dimension_numbers = #tpu.dot_dimension_numbers<[1], [0], [0], [1], [0, 0, 1, 1], [], []>} : vector<8x128xbf16>, vector<128x512xbf16>, vector<8x512xf32> -> vector<8x512xf32>
    %205 = arith.addf %202, %204 : vector<8x512xf32>
    %206 = vector.extract_strided_slice %205 {offsets = [0, 0], sizes = [8, 128], strides = [1, 1]} : vector<8x512xf32> to vector<8x128xf32>
    %cst_75 = arith.constant 5.000000e-01 : f32
    %207 = vector.broadcast %cst_75 : f32 to vector<8x128xf32>
    %208 = arith.mulf %207, %206 : vector<8x128xf32>
    %209 = math.tanh %208 : vector<8x128xf32>
    %cst_76 = arith.constant 5.000000e-01 : f32
    %210 = vector.broadcast %cst_76 : f32 to vector<8x128xf32>
    %211 = arith.mulf %210, %209 : vector<8x128xf32>
    %cst_77 = arith.constant 5.000000e-01 : f32
    %212 = vector.broadcast %cst_77 : f32 to vector<8x128xf32>
    %213 = arith.addf %211, %212 : vector<8x128xf32>
    %214 = vector.extract_strided_slice %205 {offsets = [0, 128], sizes = [8, 128], strides = [1, 1]} : vector<8x512xf32> to vector<8x128xf32>
    %cst_78 = arith.constant 5.000000e-01 : f32
    %215 = vector.broadcast %cst_78 : f32 to vector<8x128xf32>
    %216 = arith.mulf %215, %214 : vector<8x128xf32>
    %217 = math.tanh %216 : vector<8x128xf32>
    %cst_79 = arith.constant 5.000000e-01 : f32
    %218 = vector.broadcast %cst_79 : f32 to vector<8x128xf32>
    %219 = arith.mulf %218, %217 : vector<8x128xf32>
    %cst_80 = arith.constant 5.000000e-01 : f32
    %220 = vector.broadcast %cst_80 : f32 to vector<8x128xf32>
    %221 = arith.addf %219, %220 : vector<8x128xf32>
    %222 = vector.extract_strided_slice %205 {offsets = [0, 256], sizes = [8, 128], strides = [1, 1]} : vector<8x512xf32> to vector<8x128xf32>
    %223 = math.tanh %222 : vector<8x128xf32>
    %224 = vector.extract_strided_slice %205 {offsets = [0, 384], sizes = [8, 128], strides = [1, 1]} : vector<8x512xf32> to vector<8x128xf32>
    %cst_81 = arith.constant 5.000000e-01 : f32
    %225 = vector.broadcast %cst_81 : f32 to vector<8x128xf32>
    %226 = arith.mulf %225, %224 : vector<8x128xf32>
    %227 = math.tanh %226 : vector<8x128xf32>
    %cst_82 = arith.constant 5.000000e-01 : f32
    %228 = vector.broadcast %cst_82 : f32 to vector<8x128xf32>
    %229 = arith.mulf %228, %227 : vector<8x128xf32>
    %cst_83 = arith.constant 5.000000e-01 : f32
    %230 = vector.broadcast %cst_83 : f32 to vector<8x128xf32>
    %231 = arith.addf %229, %230 : vector<8x128xf32>
    %232 = arith.mulf %221, %187 : vector<8x128xf32>
    %233 = arith.mulf %213, %223 : vector<8x128xf32>
    %234 = arith.addf %232, %233 : vector<8x128xf32>
    %235 = math.tanh %234 : vector<8x128xf32>
    %236 = arith.mulf %231, %235 : vector<8x128xf32>
    %237 = arith.truncf %236 : vector<8x128xf32> to vector<8x128xbf16>
    %238 = arith.index_cast %198 : i32 to index
    %c0_84 = arith.constant 0 : index
    %c0_85 = arith.constant 0 : index
    %239 = vector.load %arg4[%238, %c0_84, %c0_85] : memref<8x8x128xbf16, #tpu.memory_space<vmem>>, vector<1x8x128xbf16>
    %240 = vector.shape_cast %239 : vector<1x8x128xbf16> to vector<8x128xbf16>
    %241 = vector.shape_cast %237 : vector<8x128xbf16> to vector<1x8x128xbf16>
    tpu.vector_store %arg4[%238, %c0_84, %c0_85], %241 {strides = array<i32>} : memref<8x8x128xbf16, #tpu.memory_space<vmem>>, vector<1x8x128xbf16>,
    %c5_i32 = arith.constant 5 : i32
    %c2_i32_86 = arith.constant 2 : i32
    %242 = arith.muli %c2_i32_86, %c5_i32 : i32
    %c7_i32_87 = arith.constant 7 : i32
    %243 = arith.subi %c7_i32_87, %242 : i32
    %244 = arith.muli %arg0, %243 : i32
    %245 = arith.addi %c5_i32, %244 : i32
    %246 = arith.index_cast %245 : i32 to index
    %c0_88 = arith.constant 0 : index
    %c0_89 = arith.constant 0 : index
    %247 = vector.load %arg2[%246, %c0_88, %c0_89] : memref<8x8x512xbf16, #tpu.memory_space<vmem>>, vector<1x8x512xbf16>
    %248 = vector.shape_cast %247 : vector<1x8x512xbf16> to vector<8x512xbf16>
    %249 = arith.extf %248 : vector<8x512xbf16> to vector<8x512xf32>
    %250 = arith.truncf %236 : vector<8x128xf32> to vector<8x128xbf16>
    %cst_90 = arith.constant dense<0.000000e+00> : vector<8x512xf32>
    %251 = tpu.matmul %250, %4, %cst_90 {dimension_numbers = #tpu.dot_dimension_numbers<[1], [0], [0], [1], [0, 0, 1, 1], [], []>} : vector<8x128xbf16>, vector<128x512xbf16>, vector<8x512xf32> -> vector<8x512xf32>
    %252 = arith.addf %249, %251 : vector<8x512xf32>
    %253 = vector.extract_strided_slice %252 {offsets = [0, 0], sizes = [8, 128], strides = [1, 1]} : vector<8x512xf32> to vector<8x128xf32>
    %cst_91 = arith.constant 5.000000e-01 : f32
    %254 = vector.broadcast %cst_91 : f32 to vector<8x128xf32>
    %255 = arith.mulf %254, %253 : vector<8x128xf32>
    %256 = math.tanh %255 : vector<8x128xf32>
    %cst_92 = arith.constant 5.000000e-01 : f32
    %257 = vector.broadcast %cst_92 : f32 to vector<8x128xf32>
    %258 = arith.mulf %257, %256 : vector<8x128xf32>
    %cst_93 = arith.constant 5.000000e-01 : f32
    %259 = vector.broadcast %cst_93 : f32 to vector<8x128xf32>
    %260 = arith.addf %258, %259 : vector<8x128xf32>
    %261 = vector.extract_strided_slice %252 {offsets = [0, 128], sizes = [8, 128], strides = [1, 1]} : vector<8x512xf32> to vector<8x128xf32>
    %cst_94 = arith.constant 5.000000e-01 : f32
    %262 = vector.broadcast %cst_94 : f32 to vector<8x128xf32>
    %263 = arith.mulf %262, %261 : vector<8x128xf32>
    %264 = math.tanh %263 : vector<8x128xf32>
    %cst_95 = arith.constant 5.000000e-01 : f32
    %265 = vector.broadcast %cst_95 : f32 to vector<8x128xf32>
    %266 = arith.mulf %265, %264 : vector<8x128xf32>
    %cst_96 = arith.constant 5.000000e-01 : f32
    %267 = vector.broadcast %cst_96 : f32 to vector<8x128xf32>
    %268 = arith.addf %266, %267 : vector<8x128xf32>
    %269 = vector.extract_strided_slice %252 {offsets = [0, 256], sizes = [8, 128], strides = [1, 1]} : vector<8x512xf32> to vector<8x128xf32>
    %270 = math.tanh %269 : vector<8x128xf32>
    %271 = vector.extract_strided_slice %252 {offsets = [0, 384], sizes = [8, 128], strides = [1, 1]} : vector<8x512xf32> to vector<8x128xf32>
    %cst_97 = arith.constant 5.000000e-01 : f32
    %272 = vector.broadcast %cst_97 : f32 to vector<8x128xf32>
    %273 = arith.mulf %272, %271 : vector<8x128xf32>
    %274 = math.tanh %273 : vector<8x128xf32>
    %cst_98 = arith.constant 5.000000e-01 : f32
    %275 = vector.broadcast %cst_98 : f32 to vector<8x128xf32>
    %276 = arith.mulf %275, %274 : vector<8x128xf32>
    %cst_99 = arith.constant 5.000000e-01 : f32
    %277 = vector.broadcast %cst_99 : f32 to vector<8x128xf32>
    %278 = arith.addf %276, %277 : vector<8x128xf32>
    %279 = arith.mulf %268, %234 : vector<8x128xf32>
    %280 = arith.mulf %260, %270 : vector<8x128xf32>
    %281 = arith.addf %279, %280 : vector<8x128xf32>
    %282 = math.tanh %281 : vector<8x128xf32>
    %283 = arith.mulf %278, %282 : vector<8x128xf32>
    %284 = arith.truncf %283 : vector<8x128xf32> to vector<8x128xbf16>
    %285 = arith.index_cast %245 : i32 to index
    %c0_100 = arith.constant 0 : index
    %c0_101 = arith.constant 0 : index
    %286 = vector.load %arg4[%285, %c0_100, %c0_101] : memref<8x8x128xbf16, #tpu.memory_space<vmem>>, vector<1x8x128xbf16>
    %287 = vector.shape_cast %286 : vector<1x8x128xbf16> to vector<8x128xbf16>
    %288 = vector.shape_cast %284 : vector<8x128xbf16> to vector<1x8x128xbf16>
    tpu.vector_store %arg4[%285, %c0_100, %c0_101], %288 {strides = array<i32>} : memref<8x8x128xbf16, #tpu.memory_space<vmem>>, vector<1x8x128xbf16>,
    %c6_i32 = arith.constant 6 : i32
    %c2_i32_102 = arith.constant 2 : i32
    %289 = arith.muli %c2_i32_102, %c6_i32 : i32
    %c7_i32_103 = arith.constant 7 : i32
    %290 = arith.subi %c7_i32_103, %289 : i32
    %291 = arith.muli %arg0, %290 : i32
    %292 = arith.addi %c6_i32, %291 : i32
    %293 = arith.index_cast %292 : i32 to index
    %c0_104 = arith.constant 0 : index
    %c0_105 = arith.constant 0 : index
    %294 = vector.load %arg2[%293, %c0_104, %c0_105] : memref<8x8x512xbf16, #tpu.memory_space<vmem>>, vector<1x8x512xbf16>
    %295 = vector.shape_cast %294 : vector<1x8x512xbf16> to vector<8x512xbf16>
    %296 = arith.extf %295 : vector<8x512xbf16> to vector<8x512xf32>
    %297 = arith.truncf %283 : vector<8x128xf32> to vector<8x128xbf16>
    %cst_106 = arith.constant dense<0.000000e+00> : vector<8x512xf32>
    %298 = tpu.matmul %297, %4, %cst_106 {dimension_numbers = #tpu.dot_dimension_numbers<[1], [0], [0], [1], [0, 0, 1, 1], [], []>} : vector<8x128xbf16>, vector<128x512xbf16>, vector<8x512xf32> -> vector<8x512xf32>
    %299 = arith.addf %296, %298 : vector<8x512xf32>
    %300 = vector.extract_strided_slice %299 {offsets = [0, 0], sizes = [8, 128], strides = [1, 1]} : vector<8x512xf32> to vector<8x128xf32>
    %cst_107 = arith.constant 5.000000e-01 : f32
    %301 = vector.broadcast %cst_107 : f32 to vector<8x128xf32>
    %302 = arith.mulf %301, %300 : vector<8x128xf32>
    %303 = math.tanh %302 : vector<8x128xf32>
    %cst_108 = arith.constant 5.000000e-01 : f32
    %304 = vector.broadcast %cst_108 : f32 to vector<8x128xf32>
    %305 = arith.mulf %304, %303 : vector<8x128xf32>
    %cst_109 = arith.constant 5.000000e-01 : f32
    %306 = vector.broadcast %cst_109 : f32 to vector<8x128xf32>
    %307 = arith.addf %305, %306 : vector<8x128xf32>
    %308 = vector.extract_strided_slice %299 {offsets = [0, 128], sizes = [8, 128], strides = [1, 1]} : vector<8x512xf32> to vector<8x128xf32>
    %cst_110 = arith.constant 5.000000e-01 : f32
    %309 = vector.broadcast %cst_110 : f32 to vector<8x128xf32>
    %310 = arith.mulf %309, %308 : vector<8x128xf32>
    %311 = math.tanh %310 : vector<8x128xf32>
    %cst_111 = arith.constant 5.000000e-01 : f32
    %312 = vector.broadcast %cst_111 : f32 to vector<8x128xf32>
    %313 = arith.mulf %312, %311 : vector<8x128xf32>
    %cst_112 = arith.constant 5.000000e-01 : f32
    %314 = vector.broadcast %cst_112 : f32 to vector<8x128xf32>
    %315 = arith.addf %313, %314 : vector<8x128xf32>
    %316 = vector.extract_strided_slice %299 {offsets = [0, 256], sizes = [8, 128], strides = [1, 1]} : vector<8x512xf32> to vector<8x128xf32>
    %317 = math.tanh %316 : vector<8x128xf32>
    %318 = vector.extract_strided_slice %299 {offsets = [0, 384], sizes = [8, 128], strides = [1, 1]} : vector<8x512xf32> to vector<8x128xf32>
    %cst_113 = arith.constant 5.000000e-01 : f32
    %319 = vector.broadcast %cst_113 : f32 to vector<8x128xf32>
    %320 = arith.mulf %319, %318 : vector<8x128xf32>
    %321 = math.tanh %320 : vector<8x128xf32>
    %cst_114 = arith.constant 5.000000e-01 : f32
    %322 = vector.broadcast %cst_114 : f32 to vector<8x128xf32>
    %323 = arith.mulf %322, %321 : vector<8x128xf32>
    %cst_115 = arith.constant 5.000000e-01 : f32
    %324 = vector.broadcast %cst_115 : f32 to vector<8x128xf32>
    %325 = arith.addf %323, %324 : vector<8x128xf32>
    %326 = arith.mulf %315, %281 : vector<8x128xf32>
    %327 = arith.mulf %307, %317 : vector<8x128xf32>
    %328 = arith.addf %326, %327 : vector<8x128xf32>
    %329 = math.tanh %328 : vector<8x128xf32>
    %330 = arith.mulf %325, %329 : vector<8x128xf32>
    %331 = arith.truncf %330 : vector<8x128xf32> to vector<8x128xbf16>
    %332 = arith.index_cast %292 : i32 to index
    %c0_116 = arith.constant 0 : index
    %c0_117 = arith.constant 0 : index
    %333 = vector.load %arg4[%332, %c0_116, %c0_117] : memref<8x8x128xbf16, #tpu.memory_space<vmem>>, vector<1x8x128xbf16>
    %334 = vector.shape_cast %333 : vector<1x8x128xbf16> to vector<8x128xbf16>
    %335 = vector.shape_cast %331 : vector<8x128xbf16> to vector<1x8x128xbf16>
    tpu.vector_store %arg4[%332, %c0_116, %c0_117], %335 {strides = array<i32>} : memref<8x8x128xbf16, #tpu.memory_space<vmem>>, vector<1x8x128xbf16>,
    %c7_i32_118 = arith.constant 7 : i32
    %c2_i32_119 = arith.constant 2 : i32
    %336 = arith.muli %c2_i32_119, %c7_i32_118 : i32
    %c7_i32_120 = arith.constant 7 : i32
    %337 = arith.subi %c7_i32_120, %336 : i32
    %338 = arith.muli %arg0, %337 : i32
    %339 = arith.addi %c7_i32_118, %338 : i32
    %340 = arith.index_cast %339 : i32 to index
    %c0_121 = arith.constant 0 : index
    %c0_122 = arith.constant 0 : index
    %341 = vector.load %arg2[%340, %c0_121, %c0_122] : memref<8x8x512xbf16, #tpu.memory_space<vmem>>, vector<1x8x512xbf16>
    %342 = vector.shape_cast %341 : vector<1x8x512xbf16> to vector<8x512xbf16>
    %343 = arith.extf %342 : vector<8x512xbf16> to vector<8x512xf32>
    %344 = arith.truncf %330 : vector<8x128xf32> to vector<8x128xbf16>
    %cst_123 = arith.constant dense<0.000000e+00> : vector<8x512xf32>
    %345 = tpu.matmul %344, %4, %cst_123 {dimension_numbers = #tpu.dot_dimension_numbers<[1], [0], [0], [1], [0, 0, 1, 1], [], []>} : vector<8x128xbf16>, vector<128x512xbf16>, vector<8x512xf32> -> vector<8x512xf32>
    %346 = arith.addf %343, %345 : vector<8x512xf32>
    %347 = vector.extract_strided_slice %346 {offsets = [0, 0], sizes = [8, 128], strides = [1, 1]} : vector<8x512xf32> to vector<8x128xf32>
    %cst_124 = arith.constant 5.000000e-01 : f32
    %348 = vector.broadcast %cst_124 : f32 to vector<8x128xf32>
    %349 = arith.mulf %348, %347 : vector<8x128xf32>
    %350 = math.tanh %349 : vector<8x128xf32>
    %cst_125 = arith.constant 5.000000e-01 : f32
    %351 = vector.broadcast %cst_125 : f32 to vector<8x128xf32>
    %352 = arith.mulf %351, %350 : vector<8x128xf32>
    %cst_126 = arith.constant 5.000000e-01 : f32
    %353 = vector.broadcast %cst_126 : f32 to vector<8x128xf32>
    %354 = arith.addf %352, %353 : vector<8x128xf32>
    %355 = vector.extract_strided_slice %346 {offsets = [0, 128], sizes = [8, 128], strides = [1, 1]} : vector<8x512xf32> to vector<8x128xf32>
    %cst_127 = arith.constant 5.000000e-01 : f32
    %356 = vector.broadcast %cst_127 : f32 to vector<8x128xf32>
    %357 = arith.mulf %356, %355 : vector<8x128xf32>
    %358 = math.tanh %357 : vector<8x128xf32>
    %cst_128 = arith.constant 5.000000e-01 : f32
    %359 = vector.broadcast %cst_128 : f32 to vector<8x128xf32>
    %360 = arith.mulf %359, %358 : vector<8x128xf32>
    %cst_129 = arith.constant 5.000000e-01 : f32
    %361 = vector.broadcast %cst_129 : f32 to vector<8x128xf32>
    %362 = arith.addf %360, %361 : vector<8x128xf32>
    %363 = vector.extract_strided_slice %346 {offsets = [0, 256], sizes = [8, 128], strides = [1, 1]} : vector<8x512xf32> to vector<8x128xf32>
    %364 = math.tanh %363 : vector<8x128xf32>
    %365 = vector.extract_strided_slice %346 {offsets = [0, 384], sizes = [8, 128], strides = [1, 1]} : vector<8x512xf32> to vector<8x128xf32>
    %cst_130 = arith.constant 5.000000e-01 : f32
    %366 = vector.broadcast %cst_130 : f32 to vector<8x128xf32>
    %367 = arith.mulf %366, %365 : vector<8x128xf32>
    %368 = math.tanh %367 : vector<8x128xf32>
    %cst_131 = arith.constant 5.000000e-01 : f32
    %369 = vector.broadcast %cst_131 : f32 to vector<8x128xf32>
    %370 = arith.mulf %369, %368 : vector<8x128xf32>
    %cst_132 = arith.constant 5.000000e-01 : f32
    %371 = vector.broadcast %cst_132 : f32 to vector<8x128xf32>
    %372 = arith.addf %370, %371 : vector<8x128xf32>
    %373 = arith.mulf %362, %328 : vector<8x128xf32>
    %374 = arith.mulf %354, %364 : vector<8x128xf32>
    %375 = arith.addf %373, %374 : vector<8x128xf32>
    %376 = math.tanh %375 : vector<8x128xf32>
    %377 = arith.mulf %372, %376 : vector<8x128xf32>
    %378 = arith.truncf %377 : vector<8x128xf32> to vector<8x128xbf16>
    %379 = arith.index_cast %339 : i32 to index
    %c0_133 = arith.constant 0 : index
    %c0_134 = arith.constant 0 : index
    %380 = vector.load %arg4[%379, %c0_133, %c0_134] : memref<8x8x128xbf16, #tpu.memory_space<vmem>>, vector<1x8x128xbf16>
    %381 = vector.shape_cast %380 : vector<1x8x128xbf16> to vector<8x128xbf16>
    %382 = vector.shape_cast %378 : vector<8x128xbf16> to vector<1x8x128xbf16>
    tpu.vector_store %arg4[%379, %c0_133, %c0_134], %382 {strides = array<i32>} : memref<8x8x128xbf16, #tpu.memory_space<vmem>>, vector<1x8x128xbf16>,
    %c8_i32 = arith.constant 8 : i32
    %c0_135 = arith.constant 0 : index
    %c0_136 = arith.constant 0 : index
    %383 = vector.load %arg5[%c0_135, %c0_136] : memref<8x128xf32, #tpu.memory_space<vmem>>, vector<8x128xf32>
    tpu.vector_store %arg5[%c0_135, %c0_136], %377 {strides = array<i32>} : memref<8x128xf32, #tpu.memory_space<vmem>>, vector<8x128xf32>,
    %c0_137 = arith.constant 0 : index
    %c0_138 = arith.constant 0 : index
    %384 = vector.load %arg6[%c0_137, %c0_138] : memref<8x128xf32, #tpu.memory_space<vmem>>, vector<8x128xf32>
    tpu.vector_store %arg6[%c0_137, %c0_138], %375 {strides = array<i32>} : memref<8x128xf32, #tpu.memory_space<vmem>>, vector<8x128xf32>,
    return
  }
  func.func @transform_0(%arg0: i32, %arg1: i32) -> (i32, i32, i32) {
    %c2_i32 = arith.constant 2 : i32
    %0 = arith.muli %c2_i32, %arg1 : i32
    %c0_i32 = arith.constant 0 : i32
    %1 = arith.subi %c0_i32, %0 : i32
    %2 = arith.muli %arg0, %1 : i32
    %3 = arith.addi %arg1, %2 : i32
    %c0_i32_0 = arith.constant 0 : i32
    %c0_i32_1 = arith.constant 0 : i32
    return %3, %c0_i32_0, %arg0 : i32, i32, i32
  }
  func.func @transform_1(%arg0: i32, %arg1: i32) -> (i32, i32, i32) {
    %c0_i32 = arith.constant 0 : i32
    %c0_i32_0 = arith.constant 0 : i32
    %c0_i32_1 = arith.constant 0 : i32
    return %arg0, %c0_i32, %c0_i32_0 : i32, i32, i32
  }
  func.func @transform_2(%arg0: i32, %arg1: i32) -> (i32, i32, i32) {
    %c2_i32 = arith.constant 2 : i32
    %0 = arith.muli %c2_i32, %arg1 : i32
    %c0_i32 = arith.constant 0 : i32
    %1 = arith.subi %c0_i32, %0 : i32
    %2 = arith.muli %arg0, %1 : i32
    %3 = arith.addi %arg1, %2 : i32
    %c0_i32_0 = arith.constant 0 : i32
    %c0_i32_1 = arith.constant 0 : i32
    return %3, %c0_i32_0, %arg0 : i32, i32, i32
  }
}

module attributes {stable_mosaic.version = 11 : i64} {
  func.func @head_kernel(%arg0: i32, %arg1: memref<64x256xbf16, #tpu.memory_space<vmem>>, %arg2: memref<256x32xbf16, #tpu.memory_space<vmem>>, %arg3: memref<1x32xf32, #tpu.memory_space<vmem>>, %arg4: memref<1x32xf32, #tpu.memory_space<vmem>>, %arg5: memref<1x1xf32, #tpu.memory_space<vmem>>, %arg6: memref<64x1xf32, #tpu.memory_space<vmem>>) attributes {dimension_semantics = [#tpu.dimension_semantics<parallel>], iteration_bounds = array<i64: 1>, scalar_prefetch = 0 : i64, scratch_operands = 0 : i64, tpu.core_type = #tpu.core_type<tc>, window_params = [{transform_indices = @transform_0, window_bounds = array<i64: 64, 256>}, {pipeline_mode = #tpu.pipeline_mode<synchronous>, transform_indices = @transform_1, window_bounds = array<i64: 256, 32>}, {pipeline_mode = #tpu.pipeline_mode<synchronous>, transform_indices = @transform_2, window_bounds = array<i64: 1, 32>}, {pipeline_mode = #tpu.pipeline_mode<synchronous>, transform_indices = @transform_3, window_bounds = array<i64: 1, 32>}, {pipeline_mode = #tpu.pipeline_mode<synchronous>, transform_indices = @transform_4, window_bounds = array<i64: 1, 1>}, {transform_indices = @transform_5, window_bounds = array<i64: 64, 1>}]} {
    %c0 = arith.constant 0 : index
    %c0_0 = arith.constant 0 : index
    %0 = vector.load %arg1[%c0, %c0_0] : memref<64x256xbf16, #tpu.memory_space<vmem>>, vector<64x256xbf16>
    %cst = arith.constant 0.000000e+00 : bf16
    %1 = vector.broadcast %cst : bf16 to vector<64x256xbf16>
    %2 = arith.maximumf %0, %1 : vector<64x256xbf16>
    %c0_1 = arith.constant 0 : index
    %c0_2 = arith.constant 0 : index
    %3 = vector.load %arg2[%c0_1, %c0_2] : memref<256x32xbf16, #tpu.memory_space<vmem>>, vector<256x32xbf16>
    %cst_3 = arith.constant dense<0.000000e+00> : vector<64x32xf32>
    %4 = tpu.matmul %2, %3, %cst_3 {dimension_numbers = #tpu.dot_dimension_numbers<[1], [0], [0], [1], [0, 0, 1, 1], [], []>} : vector<64x256xbf16>, vector<256x32xbf16>, vector<64x32xf32> -> vector<64x32xf32>
    %c0_4 = arith.constant 0 : index
    %c0_5 = arith.constant 0 : index
    %5 = vector.load %arg3[%c0_4, %c0_5] : memref<1x32xf32, #tpu.memory_space<vmem>>, vector<1x32xf32>
    %6 = vector.broadcast %5 : vector<1x32xf32> to vector<64x32xf32>
    %7 = arith.addf %4, %6 : vector<64x32xf32>
    %cst_6 = arith.constant 0.000000e+00 : f32
    %8 = vector.broadcast %cst_6 : f32 to vector<64x32xf32>
    %9 = arith.maximumf %7, %8 : vector<64x32xf32>
    %c0_7 = arith.constant 0 : index
    %c0_8 = arith.constant 0 : index
    %10 = vector.load %arg4[%c0_7, %c0_8] : memref<1x32xf32, #tpu.memory_space<vmem>>, vector<1x32xf32>
    %11 = vector.broadcast %10 : vector<1x32xf32> to vector<64x32xf32>
    %12 = arith.mulf %9, %11 : vector<64x32xf32>
    %cst_9 = arith.constant dense<0.000000e+00> : vector<64xf32>
    %13 = vector.multi_reduction <add>, %12, %cst_9 [1] : vector<64x32xf32> to vector<64xf32>
    %14 = vector.shape_cast %13 : vector<64xf32> to vector<64x1xf32>
    %c0_10 = arith.constant 0 : index
    %c0_11 = arith.constant 0 : index
    %15 = vector.load %arg5[%c0_10, %c0_11] : memref<1x1xf32, #tpu.memory_space<vmem>>, vector<1x1xf32>
    %16 = vector.broadcast %15 : vector<1x1xf32> to vector<64x1xf32>
    %17 = arith.addf %14, %16 : vector<64x1xf32>
    %c0_12 = arith.constant 0 : index
    %c0_13 = arith.constant 0 : index
    %18 = vector.load %arg6[%c0_12, %c0_13] : memref<64x1xf32, #tpu.memory_space<vmem>>, vector<64x1xf32>
    tpu.vector_store %arg6[%c0_12, %c0_13], %17 {strides = array<i32>} : memref<64x1xf32, #tpu.memory_space<vmem>>, vector<64x1xf32>,
    return
  }
  func.func @transform_0(%arg0: i32) -> (i32, i32) {
    %c0_i32 = arith.constant 0 : i32
    %c0_i32_0 = arith.constant 0 : i32
    return %arg0, %c0_i32 : i32, i32
  }
  func.func @transform_1(%arg0: i32) -> (i32, i32) {
    %c0_i32 = arith.constant 0 : i32
    %c0_i32_0 = arith.constant 0 : i32
    %c0_i32_1 = arith.constant 0 : i32
    return %c0_i32, %c0_i32_0 : i32, i32
  }
  func.func @transform_2(%arg0: i32) -> (i32, i32) {
    %c0_i32 = arith.constant 0 : i32
    %c0_i32_0 = arith.constant 0 : i32
    %c0_i32_1 = arith.constant 0 : i32
    return %c0_i32, %c0_i32_0 : i32, i32
  }
  func.func @transform_3(%arg0: i32) -> (i32, i32) {
    %c0_i32 = arith.constant 0 : i32
    %c0_i32_0 = arith.constant 0 : i32
    %c0_i32_1 = arith.constant 0 : i32
    return %c0_i32, %c0_i32_0 : i32, i32
  }
  func.func @transform_4(%arg0: i32) -> (i32, i32) {
    %c0_i32 = arith.constant 0 : i32
    %c0_i32_0 = arith.constant 0 : i32
    %c0_i32_1 = arith.constant 0 : i32
    return %c0_i32, %c0_i32_0 : i32, i32
  }
  func.func @transform_5(%arg0: i32) -> (i32, i32) {
    %c0_i32 = arith.constant 0 : i32
    %c0_i32_0 = arith.constant 0 : i32
    return %arg0, %c0_i32 : i32, i32
  }
}

</mosaic_0001>

<bundles_post_ra>
// kernel: binary_classifier_forward.5
= control target key start
LH: loop header
LB: loop body
LE: loop exit
PB: predicated region body
PF: predicated region fallthrough
CT: control target
= control target key end

     0   :  { %v739_v3 = vmov 0   ;;  %vm117_vm0 = vcmask 130048   ;;  %v37_v29 = vlaneseq  ;;  %s1039_s1 = inlined_call_operand.vmem [shape: bf16[16,1024], index: 1, kind: input, shape index: {}]   ;;  %s1040_s0 = inlined_call_operand.vmem [shape: f32[64,16], index: 0, kind: input, shape index: {}]   ;;  %s1041_s2 = inlined_call_operand.vmem [shape: f32[1,1024], index: 2, kind: input, shape index: {}]   ;;  %s1042_s3 = inlined_call_operand.vmem [shape: bf16[64,1024], index: 3, kind: output, shape index: {}]  }
   0x1   :  { %v27_v0 = vld [vmem:[%s1039_s1] sm:$0xff]  ;;  %v28_v2 = vld [vmem:[%s1039_s1 + $0x8] sm:$0xff]  ;;  %162 = vmatprep.mubr.bf16.mxu0 %v739_v3  ;;  %235 = vmatprep.mubr.bf16.mxu1 %v739_v3  ;;  %v29_v11 = vld [vmem:[%s1039_s1 + $0x10] sm:$0xff] }
   0x2   :  { %v31_v1 = vld [vmem:[%s1039_s1 + $0x20] sm:$0xff]  ;;  %v32_v5 = vld [vmem:[%s1039_s1 + $0x28] sm:$0xff]  ;;  %v33_v12 = vld [vmem:[%s1039_s1 + $0x30] sm:$0xff]  ;;  %v840_v30 = vshrl.u32 %v37_v29, 7 }
   0x3   :  { %v651_v4 = vcombine.high %v27_v0, %v31_v1  ;;  %v650_v6 = vcombine.low %v27_v0, %v31_v1  ;;  %v15_v7 = vld [vmem:[%s1040_s0] sm:$0xff]  ;;  %v16_v8 = vld [vmem:[%s1040_s0 + $0x8] sm:$0xff]  ;;  %v653_v9 = vcombine.high %v28_v2, %v32_v5  ;;  %v652_v10 = vcombine.low %v28_v2, %v32_v5  ;;  %v30_v13 = vld [vmem:[%s1039_s1 + $0x18] sm:$0xff] }
   0x4   :  { %v23_v14 = vpack.c.bf16 %v16_v8, %v15_v7  ;;  %v655_v15 = vcombine.high %v29_v11, %v33_v12  ;;  %v34_v16 = vld [vmem:[%s1039_s1 + $0x38] sm:$0xff]  ;;  %v654_v17 = vcombine.low %v29_v11, %v33_v12  ;;  %v17_v20 = vld [vmem:[%s1040_s0 + $0x10] sm:$0xff]  ;;  %v19_v23 = vld [vmem:[%s1040_s0 + $0x20] sm:$0xff]  ;;  %v39_v31 = vsub.s32 0, %v840_v30 }
   0x5   :  { %130 = vmatprep.subr.bf16.mxu0 %v651_v4  ;;  %203 = vmatprep.subr.bf16.mxu1 %v653_v9  ;;  %v657_v18 = vcombine.high %v30_v13, %v34_v16  ;;  %v656_v19 = vcombine.low %v30_v13, %v34_v16  ;;  %v18_v21 = vld [vmem:[%s1040_s0 + $0x18] sm:$0xff]  ;;  %v20_v24 = vld [vmem:[%s1040_s0 + $0x28] sm:$0xff]  ;;  %v21_v26 = vld [vmem:[%s1040_s0 + $0x30] sm:$0xff]  ;;  %v47_v33 = vsub.s32 2, %v840_v30  ;;  %v43_v34 = vsub.s32 1, %v840_v30 }
   0x6   :  { %131 = vmatpush1.bf16.msra.mxu0 %v650_v6  ;;  %204 = vmatpush1.bf16.msra.mxu1 %v652_v10  ;;  %v24_v22 = vpack.c.bf16 %v18_v21, %v17_v20  ;;  %v25_v25 = vpack.c.bf16 %v20_v24, %v19_v23  ;;  %v22_v27 = vld [vmem:[%s1040_s0 + $0x38] sm:$0xff]  ;;  %v846_v32 = vld [vmem:[%s1041_s2] sm:$0xff]  ;;  %v51_v35 = vsub.s32 3, %v840_v30 }
   0x7   :  { %276 = vmatprep.subr.bf16.mxu0 %v655_v15  ;;  %349 = vmatprep.subr.bf16.mxu1 %v657_v18  ;;  %v26_v28 = vpack.c.bf16 %v22_v27, %v21_v26  ;;  %v852_v36 = vrot.slane %v846_v32, %v39_v31  ;;  %v855_v37 = vrot.slane %v846_v32, %v47_v33 }
   0x8   :  { %v858_v38 = vrot.slane %v846_v32, %v43_v34  ;;  %v861_v39 = vrot.slane %v846_v32, %v51_v35 }
   0x9   :  { %658 = vmatmul.mubr.msk.bf16.vlgmr.msra.gmra.mrb[0].mxu0 %vm117_vm0, %v23_v14  ;;  %662 = vmatmul.mubr.msk.bf16.vlgmr.msra.gmra.mrb[0].mxu1 %vm117_vm0, %v23_v14 }
   0xa   :  { %277 = vmatpush1.bf16.msra.mxu0 %v654_v17  ;;  %350 = vmatpush1.bf16.msra.mxu1 %v656_v19 }
   0xb   :  { %172 = vmatprep.mubr.bf16.mxu0 %v739_v3  ;;  %245 = vmatprep.mubr.bf16.mxu1 %v739_v3 }
  0x11   :  { %659 = vmatmul.mubr.msk.bf16.gmra.mrb[4].mxu0 %vm117_vm0, %v24_v22  ;;  %663 = vmatmul.mubr.msk.bf16.gmra.mrb[4].mxu1 %vm117_vm0, %v24_v22 }
  0x12   :  { %182 = vmatprep.mubr.bf16.mxu0 %v739_v3  ;;  %255 = vmatprep.mubr.bf16.mxu1 %v739_v3 }
  0x19   :  { %660 = vmatmul.mubr.msk.bf16.gmra.mrb[8].mxu0 %vm117_vm0, %v25_v25  ;;  %664 = vmatmul.mubr.msk.bf16.gmra.mrb[8].mxu1 %vm117_vm0, %v25_v25 }
  0x1a   :  { %192 = vmatprep.mubr.bf16.mxu0 %v739_v3  ;;  %265 = vmatprep.mubr.bf16.mxu1 %v739_v3 }
  0x21   :  { %661 = vmatmul.mubr.msk.bf16.gmra.mrb[12].mxu0 %vm117_vm0, %v26_v28  ;;  %665 = vmatmul.mubr.msk.bf16.gmra.mrb[12].mxu1 %vm117_vm0, %v26_v28 }
  0x22   :  { %308 = vmatprep.mubr.bf16.mxu0 %v739_v3  ;;  %381 = vmatprep.mubr.bf16.mxu1 %v739_v3 }
  0x29   :  { %666 = vmatmul.mubr.msk.bf16.vlgmr.msra.gmra.mrb[16].mxu0 %vm117_vm0, %v23_v14  ;;  %670 = vmatmul.mubr.msk.bf16.vlgmr.msra.gmra.mrb[16].mxu1 %vm117_vm0, %v23_v14 }
  0x2a   :  { %318 = vmatprep.mubr.bf16.mxu0 %v739_v3  ;;  %391 = vmatprep.mubr.bf16.mxu1 %v739_v3 }
  0x31   :  { %667 = vmatmul.mubr.msk.bf16.gmra.mrb[20].mxu0 %vm117_vm0, %v24_v22  ;;  %671 = vmatmul.mubr.msk.bf16.gmra.mrb[20].mxu1 %vm117_vm0, %v24_v22 }
  0x32   :  { %328 = vmatprep.mubr.bf16.mxu0 %v739_v3  ;;  %401 = vmatprep.mubr.bf16.mxu1 %v739_v3 }
  0x39   :  { %668 = vmatmul.mubr.msk.bf16.gmra.mrb[24].mxu0 %vm117_vm0, %v25_v25  ;;  %672 = vmatmul.mubr.msk.bf16.gmra.mrb[24].mxu1 %vm117_vm0, %v25_v25 }
  0x3a   :  { %338 = vmatprep.mubr.bf16.mxu0 %v739_v3  ;;  %411 = vmatprep.mubr.bf16.mxu1 %v739_v3 }
  0x41   :  { %669 = vmatmul.mubr.msk.bf16.gmra.mrb[28].mxu0 %vm117_vm0, %v26_v28  ;;  %673 = vmatmul.mubr.msk.bf16.gmra.mrb[28].mxu1 %vm117_vm0, %v26_v28 }
  0xdc   :  { %v164_v40 = vpop.f32.mrb[0].mxu0  ;;  %v237_v42 = vpop.f32.mrb[0].mxu1 }
  0xdd   :  { %v165_v41 = vadd.f32 %v164_v40, %v852_v36  ;;  %v166_v43 = vpop.f32.mrb[1].mxu0  ;;  %v238_v44 = vadd.f32 %v237_v42, %v855_v37  ;;  %v239_v46 = vpop.f32.mrb[1].mxu1 }
  0xde   :  { %v167_v45 = vadd.f32 %v166_v43, %v858_v38  ;;  %v168_v47 = vpop.f32.mrb[2].mxu0  ;;  %v240_v48 = vadd.f32 %v239_v46, %v861_v39  ;;  %v241_v50 = vpop.f32.mrb[2].mxu1  ;;  %v55_v46 = vsub.s32 4, %v840_v30 }
  0xdf   :  { %v169_v49 = vadd.f32 %v168_v47, %v852_v36  ;;  %v170_v51 = vpop.f32.mrb[3].mxu0  ;;  %v242_v53 = vadd.f32 %v241_v50, %v855_v37  ;;  %v243_v55 = vpop.f32.mrb[3].mxu1 }
  0xe0   :  { %v706_v52 = vpack.c.bf16 %v167_v45, %v165_v41  ;;  %v171_v54 = vadd.f32 %v170_v51, %v858_v38  ;;  %v707_v56 = vpack.c.bf16 %v240_v48, %v238_v44  ;;  %v244_v57 = vadd.f32 %v243_v55, %v861_v39 }
  0xe1   :  { %v63_v51 = vsub.s32 6, %v840_v30 }
  0xe2   :  { %614 = vst [vmem:[%s1042_s3] sm:$0xff] %v706_v52  ;;  %v710_v58 = vpack.c.bf16 %v171_v54, %v169_v49  ;;  %615 = vst [vmem:[%s1042_s3 + $0x8] sm:$0xff] %v707_v56  ;;  %v711_v59 = vpack.c.bf16 %v244_v57, %v242_v53  ;;  %v59_v52 = vsub.s32 5, %v840_v30  ;;  %v67_v57 = vsub.s32 7, %v840_v30 }
  0xe4   :  { %618 = vst [vmem:[%s1042_s3 + $0x20] sm:$0xff] %v710_v58  ;;  %v174_v60 = vpop.f32.mrb[4].mxu0  ;;  %619 = vst [vmem:[%s1042_s3 + $0x28] sm:$0xff] %v711_v59  ;;  %v247_v62 = vpop.f32.mrb[4].mxu1  ;;  %v945_v30 = vrot.slane %v846_v32, %v59_v52 }
  0xe5   :  { %v175_v61 = vadd.f32 %v174_v60, %v852_v36  ;;  %v176_v63 = vpop.f32.mrb[5].mxu0  ;;  %v248_v0 = vadd.f32 %v247_v62, %v855_v37  ;;  %v249_v2 = vpop.f32.mrb[5].mxu1 }
  0xe6   :  { %v177_v1 = vadd.f32 %v176_v63, %v858_v38  ;;  %v178_v3 = vpop.f32.mrb[6].mxu0  ;;  %v250_v4 = vadd.f32 %v249_v2, %v861_v39  ;;  %v251_v6 = vpop.f32.mrb[6].mxu1 }
  0xe7   :  { %v179_v5 = vadd.f32 %v178_v3, %v852_v36  ;;  %v180_v7 = vpop.f32.mrb[7].mxu0  ;;  %v252_v9 = vadd.f32 %v251_v6, %v855_v37  ;;  %v253_v11 = vpop.f32.mrb[7].mxu1 }
  0xe8   :  { %v714_v8 = vpack.c.bf16 %v177_v1, %v175_v61  ;;  %v181_v10 = vadd.f32 %v180_v7, %v858_v38  ;;  %v715_v12 = vpack.c.bf16 %v250_v4, %v248_v0  ;;  %v254_v13 = vadd.f32 %v253_v11, %v861_v39 }
  0xe9   :  { %v936_v0 = vrot.slane %v846_v32, %v55_v46  ;;  %v942_v1 = vrot.slane %v846_v32, %v63_v51 }
  0xea   :  { %622 = vst [vmem:[%s1042_s3 + $0x40] sm:$0xff] %v714_v8  ;;  %v718_v14 = vpack.c.bf16 %v181_v10, %v179_v5  ;;  %623 = vst [vmem:[%s1042_s3 + $0x48] sm:$0xff] %v715_v12  ;;  %v719_v15 = vpack.c.bf16 %v254_v13, %v252_v9 }
  0xec   :  { %626 = vst [vmem:[%s1042_s3 + $0x60] sm:$0xff] %v718_v14  ;;  %v184_v16 = vpop.f32.mrb[8].mxu0  ;;  %627 = vst [vmem:[%s1042_s3 + $0x68] sm:$0xff] %v719_v15  ;;  %v257_v18 = vpop.f32.mrb[8].mxu1 }
  0xed   :  { %v185_v17 = vadd.f32 %v184_v16, %v852_v36  ;;  %v186_v19 = vpop.f32.mrb[9].mxu0  ;;  %v258_v20 = vadd.f32 %v257_v18, %v855_v37  ;;  %v259_v22 = vpop.f32.mrb[9].mxu1 }
  0xee   :  { %v187_v21 = vadd.f32 %v186_v19, %v858_v38  ;;  %v188_v23 = vpop.f32.mrb[10].mxu0  ;;  %v260_v24 = vadd.f32 %v259_v22, %v861_v39  ;;  %v261_v26 = vpop.f32.mrb[10].mxu1 }
  0xef   :  { %v189_v25 = vadd.f32 %v188_v23, %v852_v36  ;;  %v190_v27 = vpop.f32.mrb[11].mxu0  ;;  %v262_v29 = vadd.f32 %v261_v26, %v855_v37  ;;  %v263_v33 = vpop.f32.mrb[11].mxu1 }
  0xf0   :  { %v722_v28 = vpack.c.bf16 %v187_v21, %v185_v17  ;;  %v191_v31 = vadd.f32 %v190_v27, %v858_v38  ;;  %v723_v34 = vpack.c.bf16 %v260_v24, %v258_v20  ;;  %v264_v35 = vadd.f32 %v263_v33, %v861_v39 }
  0xf2   :  { %630 = vst [vmem:[%s1042_s3 + $0x80] sm:$0xff] %v722_v28  ;;  %v726_v40 = vpack.c.bf16 %v191_v31, %v189_v25  ;;  %631 = vst [vmem:[%s1042_s3 + $0x88] sm:$0xff] %v723_v34  ;;  %v727_v41 = vpack.c.bf16 %v264_v35, %v262_v29 }
  0xf4   :  { %634 = vst [vmem:[%s1042_s3 + $0xa0] sm:$0xff] %v726_v40  ;;  %v194_v42 = vpop.f32.mrb[12].mxu0  ;;  %635 = vst [vmem:[%s1042_s3 + $0xa8] sm:$0xff] %v727_v41  ;;  %v267_v44 = vpop.f32.mrb[12].mxu1 }
  0xf5   :  { %v195_v43 = vadd.f32 %v194_v42, %v852_v36  ;;  %v196_v45 = vpop.f32.mrb[13].mxu0  ;;  %v268_v47 = vadd.f32 %v267_v44, %v855_v37  ;;  %v269_v49 = vpop.f32.mrb[13].mxu1 }
  0xf6   :  { %v197_v48 = vadd.f32 %v196_v45, %v858_v38  ;;  %v198_v50 = vpop.f32.mrb[14].mxu0  ;;  %v270_v53 = vadd.f32 %v269_v49, %v861_v39  ;;  %v271_v55 = vpop.f32.mrb[14].mxu1 }
  0xf7   :  { %v199_v54 = vadd.f32 %v198_v50, %v852_v36  ;;  %v200_v56 = vpop.f32.mrb[15].mxu0  ;;  %v272_v59 = vadd.f32 %v271_v55, %v855_v37  ;;  %v273_v61 = vpop.f32.mrb[15].mxu1 }
  0xf8   :  { %v730_v58 = vpack.c.bf16 %v197_v48, %v195_v43  ;;  %v201_v60 = vadd.f32 %v200_v56, %v858_v38  ;;  %v731_v62 = vpack.c.bf16 %v270_v53, %v268_v47  ;;  %v274_v63 = vadd.f32 %v273_v61, %v861_v39 }
  0xf9   :  { %v951_v38 = vrot.slane %v846_v32, %v67_v57 }
  0xfa   :  { %638 = vst [vmem:[%s1042_s3 + $0xc0] sm:$0xff] %v730_v58  ;;  %v734_v36 = vpack.c.bf16 %v201_v60, %v199_v54  ;;  %639 = vst [vmem:[%s1042_s3 + $0xc8] sm:$0xff] %v731_v62  ;;  %v735_v37 = vpack.c.bf16 %v274_v63, %v272_v59 }
  0xfc   :  { %642 = vst [vmem:[%s1042_s3 + $0xe0] sm:$0xff] %v734_v36  ;;  %v310_v39 = vpop.f32.mrb[16].mxu0  ;;  %643 = vst [vmem:[%s1042_s3 + $0xe8] sm:$0xff] %v735_v37  ;;  %v383_v3 = vpop.f32.mrb[16].mxu1 }
  0xfd   :  { %v311_v2 = vadd.f32 %v310_v39, %v936_v0  ;;  %v312_v4 = vpop.f32.mrb[17].mxu0  ;;  %v384_v5 = vadd.f32 %v383_v3, %v942_v1  ;;  %v385_v7 = vpop.f32.mrb[17].mxu1 }
  0xfe   :  { %v313_v6 = vadd.f32 %v312_v4, %v945_v30  ;;  %v314_v32 = vpop.f32.mrb[18].mxu0  ;;  %v386_v8 = vadd.f32 %v385_v7, %v951_v38  ;;  %v387_v10 = vpop.f32.mrb[18].mxu1 }
  0xff   :  { %v315_v9 = vadd.f32 %v314_v32, %v936_v0  ;;  %v316_v11 = vpop.f32.mrb[19].mxu0  ;;  %v388_v13 = vadd.f32 %v387_v10, %v942_v1  ;;  %v389_v15 = vpop.f32.mrb[19].mxu1 }
 0x100   :  { %v708_v12 = vpack.c.bf16 %v313_v6, %v311_v2  ;;  %v317_v14 = vadd.f32 %v316_v11, %v945_v30  ;;  %v709_v16 = vpack.c.bf16 %v386_v8, %v384_v5  ;;  %v390_v17 = vadd.f32 %v389_v15, %v951_v38 }
 0x102   :  { %616 = vst [vmem:[%s1042_s3 + $0x10] sm:$0xff] %v708_v12  ;;  %v712_v18 = vpack.c.bf16 %v317_v14, %v315_v9  ;;  %617 = vst [vmem:[%s1042_s3 + $0x18] sm:$0xff] %v709_v16  ;;  %v713_v19 = vpack.c.bf16 %v390_v17, %v388_v13 }
 0x104   :  { %620 = vst [vmem:[%s1042_s3 + $0x30] sm:$0xff] %v712_v18  ;;  %v320_v20 = vpop.f32.mrb[20].mxu0  ;;  %621 = vst [vmem:[%s1042_s3 + $0x38] sm:$0xff] %v713_v19  ;;  %v393_v22 = vpop.f32.mrb[20].mxu1 }
 0x105   :  { %v321_v21 = vadd.f32 %v320_v20, %v936_v0  ;;  %v322_v23 = vpop.f32.mrb[21].mxu0  ;;  %v394_v24 = vadd.f32 %v393_v22, %v942_v1  ;;  %v395_v26 = vpop.f32.mrb[21].mxu1 }
 0x106   :  { %v323_v25 = vadd.f32 %v322_v23, %v945_v30  ;;  %v324_v27 = vpop.f32.mrb[22].mxu0  ;;  %v396_v28 = vadd.f32 %v395_v26, %v951_v38  ;;  %v397_v31 = vpop.f32.mrb[22].mxu1 }
 0x107   :  { %v325_v29 = vadd.f32 %v324_v27, %v936_v0  ;;  %v326_v33 = vpop.f32.mrb[23].mxu0  ;;  %v398_v35 = vadd.f32 %v397_v31, %v942_v1  ;;  %v399_v41 = vpop.f32.mrb[23].mxu1 }
 0x108   :  { %v716_v34 = vpack.c.bf16 %v323_v25, %v321_v21  ;;  %v327_v40 = vadd.f32 %v326_v33, %v945_v30  ;;  %v717_v42 = vpack.c.bf16 %v396_v28, %v394_v24  ;;  %v400_v43 = vadd.f32 %v399_v41, %v951_v38 }
 0x10a   :  { %624 = vst [vmem:[%s1042_s3 + $0x50] sm:$0xff] %v716_v34  ;;  %v720_v44 = vpack.c.bf16 %v327_v40, %v325_v29  ;;  %625 = vst [vmem:[%s1042_s3 + $0x58] sm:$0xff] %v717_v42  ;;  %v721_v45 = vpack.c.bf16 %v400_v43, %v398_v35 }
 0x10c   :  { %628 = vst [vmem:[%s1042_s3 + $0x70] sm:$0xff] %v720_v44  ;;  %v330_v46 = vpop.f32.mrb[24].mxu0  ;;  %629 = vst [vmem:[%s1042_s3 + $0x78] sm:$0xff] %v721_v45  ;;  %v403_v48 = vpop.f32.mrb[24].mxu1 }
 0x10d   :  { %v331_v47 = vadd.f32 %v330_v46, %v936_v0  ;;  %v332_v49 = vpop.f32.mrb[25].mxu0  ;;  %v404_v50 = vadd.f32 %v403_v48, %v942_v1  ;;  %v405_v52 = vpop.f32.mrb[25].mxu1 }
 0x10e   :  { %v333_v51 = vadd.f32 %v332_v49, %v945_v30  ;;  %v334_v53 = vpop.f32.mrb[26].mxu0  ;;  %v406_v54 = vadd.f32 %v405_v52, %v951_v38  ;;  %v407_v56 = vpop.f32.mrb[26].mxu1 }
 0x10f   :  { %v335_v55 = vadd.f32 %v334_v53, %v936_v0  ;;  %v336_v57 = vpop.f32.mrb[27].mxu0  ;;  %v408_v59 = vadd.f32 %v407_v56, %v942_v1  ;;  %v409_v61 = vpop.f32.mrb[27].mxu1 }
 0x110   :  { %v724_v58 = vpack.c.bf16 %v333_v51, %v331_v47  ;;  %v337_v60 = vadd.f32 %v336_v57, %v945_v30  ;;  %v725_v62 = vpack.c.bf16 %v406_v54, %v404_v50  ;;  %v410_v63 = vadd.f32 %v409_v61, %v951_v38 }
 0x112   :  { %632 = vst [vmem:[%s1042_s3 + $0x90] sm:$0xff] %v724_v58  ;;  %v728_v36 = vpack.c.bf16 %v337_v60, %v335_v55  ;;  %633 = vst [vmem:[%s1042_s3 + $0x98] sm:$0xff] %v725_v62  ;;  %v729_v37 = vpack.c.bf16 %v410_v63, %v408_v59 }
 0x114   :  { %636 = vst [vmem:[%s1042_s3 + $0xb0] sm:$0xff] %v728_v36  ;;  %v340_v39 = vpop.f32.mrb[28].mxu0  ;;  %637 = vst [vmem:[%s1042_s3 + $0xb8] sm:$0xff] %v729_v37  ;;  %v413_v3 = vpop.f32.mrb[28].mxu1 }
 0x115   :  { %v341_v2 = vadd.f32 %v340_v39, %v936_v0  ;;  %v342_v4 = vpop.f32.mrb[29].mxu0  ;;  %v414_v5 = vadd.f32 %v413_v3, %v942_v1  ;;  %v415_v7 = vpop.f32.mrb[29].mxu1 }
 0x116   :  { %v343_v6 = vadd.f32 %v342_v4, %v945_v30  ;;  %v344_v32 = vpop.f32.mrb[30].mxu0  ;;  %v416_v8 = vadd.f32 %v415_v7, %v951_v38  ;;  %v417_v10 = vpop.f32.mrb[30].mxu1 }
 0x117   :  { %v345_v9 = vadd.f32 %v344_v32, %v936_v0  ;;  %v346_v11 = vpop.f32.mrb[31].mxu0  ;;  %v418_v13 = vadd.f32 %v417_v10, %v942_v1  ;;  %v419_v15 = vpop.f32.mrb[31].mxu1 }
 0x118   :  { %v732_v12 = vpack.c.bf16 %v343_v6, %v341_v2  ;;  %v347_v14 = vadd.f32 %v346_v11, %v945_v30  ;;  %v733_v16 = vpack.c.bf16 %v416_v8, %v414_v5  ;;  %v420_v17 = vadd.f32 %v419_v15, %v951_v38 }
 0x11a   :  { %640 = vst [vmem:[%s1042_s3 + $0xd0] sm:$0xff] %v732_v12  ;;  %v736_v18 = vpack.c.bf16 %v347_v14, %v345_v9  ;;  %641 = vst [vmem:[%s1042_s3 + $0xd8] sm:$0xff] %v733_v16  ;;  %v737_v0 = vpack.c.bf16 %v420_v17, %v418_v13 }
 0x11c   :  { %644 = vst [vmem:[%s1042_s3 + $0xf0] sm:$0xff] %v736_v18  ;;  %645 = vst [vmem:[%s1042_s3 + $0xf8] sm:$0xff] %v737_v0 }

// kernel: binary_classifier_forward.6
= control target key start
LH: loop header
LB: loop body
LE: loop exit
PB: predicated region body
PF: predicated region fallthrough
CT: control target
= control target key end

     0   :  { %7 = vsyncpa [#allocation6], 0  ;;  %s2671_s0 = inlined_call_operand.vmem [shape: bf16[8,8,1024], index: 0, kind: input, shape index: {}]   ;;  %s2672_s1 = inlined_call_operand.hbm [shape: bf16[2,128,512], index: 1, kind: input, shape index: {}]   ;;  %s2673_s2 = inlined_call_operand.vmem [shape: bf16[8,8,256], index: 2, kind: output, shape index: {}]  }
   0x1   :  { %9 = vsyncpa [#allocation6 + $0x1], 0  ;;  %s2068_s9 = smov 0   ;;  %s2070_s10 = smov 0  }
   0x2   :  { %s2072_s11 = smov 0   ;;  %s2074_s12 = smov 0  }
   0x3   :  { %s2076_s13 = smov 0   ;;  %s2078_s14 = smov 0  }
   0x4 LB: > { %s1663_s15 = sadd.s32 4294967295, %s2046_s14   ;;  %s27_s16 = sadd.s32 1, %s2042_s13  ;;  %s2046_s14 = sphi %s2078_s14, %s15_s14   ;;  %s2042_s13 = sphi %s2076_s13, %s2682_s13   ;;  %s2038_s12 = sphi %s2074_s12, %s2681_s12   ;;  %s2034_s11 = sphi %s2072_s11, %s2680_s11   ;;  %s2030_s10 = sphi %s2070_s10, %s2679_s10   ;;  %s2026_s9 = sphi %s2068_s9, %s2678_s9  }
   0x5   : > { %p29_p0 = scmp.ge.s32.totalorder %s27_s16, 2  ;;  %s44_s17 = sadd.s32 1, %s2034_s11 }
   0x6   : > { %p51_p1 = scmp.ne.s32.totalorder %s2034_s11, %s2030_s10  ;;  %p52_p2 = scmp.eq.s32.totalorder %s2046_s14, 0 }
   0x7   : > { %s2684_s16 = smov (%p29_p0, %s27_s16), 0  ;;  %p83_p4 = scmp.ne.s32.totalorder %s2030_s10, %s2026_s9 }
   0x8   : > { %p2104_p3 = por %p52_p2, %p51_p1  ;;  %s40_s19 = ssub.s32 %s2042_s13, %s2684_s16 }
   0x9   : > { %p84_p5 = scmp.eq.s32.totalorder %s1663_s15, 0  ;;  %p42_p6 = scmp.eq.s32.totalorder %s40_s19, 0 }
   0xa   : > { %p117_p7 = scmp.eq.s32.totalorder %s1663_s15, 1  ;;  %p1666_p10 = scmp.ge.s32.totalorder %s2046_s14, 2 }
   0xb   : > { %p2111_p8 = por %p84_p5, %p83_p4 }
   0xc   : > { %s2116_s21 = scalar_select %p42_p6, %s2034_s11, %s44_s17  }
   0xd   : > { %p2118_p9 = por %p117_p7, %p51_p1  ;;  %139 = sbr.rel (%p1666_p10) target bundleno = 58 (0x3a), region = 16 }
   0xf   : > { %s2676_s22 = scalar_select %p2118_p9, 1, 0 }
  0x14   : > { %142 = sbr.rel (!%p2104_p3) target bundleno = 32 (0x20), region = 20  ;;  %s144_s23 = sand.u32 (%p2104_p3), 1, %s2034_s11  }
  0x15   : > { %s1749_s24 = sshll.u32 (%p2104_p3), %s2042_s13, 4  ;;  %s1667_s25 = sshll.u32 (%p2104_p3), %s144_s23, 7 }
  0x16   : > { %s2130_s28 = scalar_lea.vmem (%p2104_p3), %s2671_s0, %s1749_s24  ;;  %s146_s29 = scalar_lea.vmem (%p2104_p3), [#allocation4], %s1667_s25 }
  0x17   : > { %v169_v0 = vld [vmem:[%s2130_s28] sm:$0xff] (%p2104_p3)  ;;  %v171_v1 = vld [vmem:[%s2130_s28 + $0x8] sm:$0xff] (%p2104_p3) }
  0x18   : > { %v173_v2 = vld [vmem:[%s2130_s28 + $0x20] sm:$0xff] (%p2104_p3)  ;;  %170 = vst [vmem:[%s146_s29] sm:$0xff] (%p2104_p3), %v169_v0  ;;  %172 = vst [vmem:[%s146_s29 + $0x8] sm:$0xff] (%p2104_p3), %v171_v1  ;;  %v175_v3 = vld [vmem:[%s2130_s28 + $0x28] sm:$0xff] (%p2104_p3) }
  0x19   : > { %174 = vst [vmem:[%s146_s29 + $0x10] sm:$0xff] (%p2104_p3), %v173_v2  ;;  %v177_v4 = vld [vmem:[%s2130_s28 + $0x40] sm:$0xff] (%p2104_p3)  ;;  %v179_v5 = vld [vmem:[%s2130_s28 + $0x48] sm:$0xff] (%p2104_p3)  ;;  %176 = vst [vmem:[%s146_s29 + $0x18] sm:$0xff] (%p2104_p3), %v175_v3 }
  0x1a   : > { %178 = vst [vmem:[%s146_s29 + $0x20] sm:$0xff] (%p2104_p3), %v177_v4  ;;  %180 = vst [vmem:[%s146_s29 + $0x28] sm:$0xff] (%p2104_p3), %v179_v5  ;;  %v181_v6 = vld [vmem:[%s2130_s28 + $0x60] sm:$0xff] (%p2104_p3)  ;;  %v183_v7 = vld [vmem:[%s2130_s28 + $0x68] sm:$0xff] (%p2104_p3) }
  0x1b   : > { %v185_v8 = vld [vmem:[%s2130_s28 + $0x80] sm:$0xff]  ;;  %182 = vst [vmem:[%s146_s29 + $0x30] sm:$0xff] %v181_v6  ;;  %184 = vst [vmem:[%s146_s29 + $0x38] sm:$0xff] %v183_v7  ;;  %v187_v9 = vld [vmem:[%s2130_s28 + $0x88] sm:$0xff] }
  0x1c   : > { %186 = vst [vmem:[%s146_s29 + $0x40] sm:$0xff] %v185_v8  ;;  %v189_v10 = vld [vmem:[%s2130_s28 + $0xa0] sm:$0xff]  ;;  %v191_v11 = vld [vmem:[%s2130_s28 + $0xa8] sm:$0xff]  ;;  %188 = vst [vmem:[%s146_s29 + $0x48] sm:$0xff] %v187_v9 }
  0x1d   : > { %190 = vst [vmem:[%s146_s29 + $0x50] sm:$0xff] %v189_v10  ;;  %192 = vst [vmem:[%s146_s29 + $0x58] sm:$0xff] %v191_v11  ;;  %v193_v12 = vld [vmem:[%s2130_s28 + $0xc0] sm:$0xff]  ;;  %v195_v13 = vld [vmem:[%s2130_s28 + $0xc8] sm:$0xff] }
  0x1e   : > { %v197_v14 = vld [vmem:[%s2130_s28 + $0xe0] sm:$0xff]  ;;  %194 = vst [vmem:[%s146_s29 + $0x60] sm:$0xff] %v193_v12  ;;  %196 = vst [vmem:[%s146_s29 + $0x68] sm:$0xff] %v195_v13  ;;  %v199_v15 = vld [vmem:[%s2130_s28 + $0xe8] sm:$0xff] }
  0x1f   : > { %198 = vst [vmem:[%s146_s29 + $0x70] sm:$0xff] %v197_v14  ;;  %200 = vst [vmem:[%s146_s29 + $0x78] sm:$0xff] %v199_v15 }
  0x20 PF: > { %s207_s30 = sand.u32 1, %s2034_s11   ;;  %s1750_s3 = sshll.u32 %s2042_s13, 12 }
  0x21   : > { %s1670_s4 = sshll.u32 %s207_s30, 8  ;;  %s2153_s7 = scalar_lea.hbm %s2672_s1, %s1750_s3 }
  0x22   : > { %s211_s8 = scalar_lea.vmem [#allocation5], %s1670_s4  ;;  %s2157_s15 = scalar_lea.sflag [#allocation6], %s207_s30 }
  0x23   : > { %s218_s9 = sshll.u32 %s211_s8, 4  ;;  %s1968_s17 = scalar_lea.hbm %s2153_s7, 4096  ;;  %s2155_s9 = int_to_ptr.vmem [resolvable:$true] %s218_s9 }
  0x24   : > { %p1969_p11 = scmp.ne.s32.totalorder %s2153_s7, %s1968_s17  ;;  %s1972_s24 = scalar_lea.hbm %s2672_s1, 8192 }
  0x25   : > { %p1973_p0 = scmp.lt.u32.totalorder %s2153_s7, %s2672_s1  ;;  %p1974_p1 = scmp.lt.u32.totalorder %s1972_s24, %s1968_s17 }
  0x26   : > { %p1970_p12 = pnand %p1969_p11, %p2104_p3  ;;  %p1976_p4 = scmp.lt.u32.totalorder %s1968_s17, %s2153_s7 }
  0x27   : > { %p1975_p2 = por %p1974_p1, %p1973_p0 }
  0x28   : > { %p1971_p13 = pneg %p1970_p12 }
  0x29   : > { %p1977_p5 = por %p1976_p4, %p1975_p2 }
  0x2b   : > { %p1978_p6 = pnand %p1977_p5, %p1971_p13 }
  0x2d   : > { %1981 = shalt.err (!%p1978_p6)
}
  0x2e   : > { %s1982_s27 = scalar_lea.vmem %s2155_s9, 4096  ;;  %s2048_s28 = smov [#allocation5]  }
  0x2f   : > { %p1983_p7 = scmp.ne.s32.totalorder %s2155_s9, %s1982_s27  ;;  %s1986_s29 = sshll.u32 %s2048_s28, 4  ;;  %s1987_s29 = int_to_ptr.vmem [resolvable:$false] %s1986_s29 }
  0x30   : > { %s1988_s30 = scalar_lea.vmem %s1987_s29, 8192  ;;  %p1989_p12 = scmp.lt.s32.totalorder %s2155_s9, %s1987_s29 }
  0x31   : > { %p1984_p10 = pnand %p1983_p7, %p2104_p3  ;;  %p1990_p9 = scmp.lt.s32.totalorder %s1988_s30, %s1982_s27 }
  0x33   : > { %p1985_p11 = pneg %p1984_p10  ;;  %p1991_p0 = por %p1990_p9, %p1989_p12 }
  0x35   : > { %p1992_p1 = pnand %p1991_p0, %p1985_p11 }
  0x37   : > { %1995 = shalt.err (!%p1992_p1)
}
  0x38   : > { %s2049_s3 = smov 256   ;;  %s2050_s4 = smov 16  }
  0x39   : > { %1754 = dma.hbm_to_vmem [thread:$0]  (%p2104_p3), %s2153_s7, 4096, %s2155_s9, %s2157_s15, %s2049_s3, %s2049_s3, %s2050_s4  }
  0x3a PF: > { %p1673_p13 = scmp.ge.s32.totalorder %s2046_s14, 1  ;;  %p226_p2 = scmp.lt.s32.totalorder %s2046_s14, 3 }
  0x3c   : > { %p227_p4 = pnand %p1673_p13, %p226_p2 }
  0x3d   : > { %s2184_s5 = sand.u32 (!%p227_p4), 1, %s2030_s10  }
  0x3e   : > { %230 = sbr.rel (%p227_p4) target bundleno = 2125 (0x84d), region = 47  ;;  %s1674_s6 = sshll.u32 (!%p227_p4), %s2184_s5, 7 }
  0x3f   : > { %s1675_s8 = sshll.u32 (!%p227_p4), %s2184_s5, 8  ;;  %s2188_s17 = scalar_lea.vmem (!%p227_p4), [#allocation4], %s1674_s6 }
  0x40   : > { %s240_s18 = scalar_lea.sflag (!%p227_p4), [#allocation6], %s2184_s5  ;;  %s2191_s7 = scalar_lea.vmem (!%p227_p4), [#allocation5], %s1675_s8 }
  0x45   : > { %2021 = dma.done.wait (%p2111_p8), %s240_s18, 4096  }
  0x46   : > { %2023 = vsyncadd (%p2111_p8), %s240_s18, 4294963200  ;;  %v2051_v16 = vmov 0   ;;  %v2200_v17 = vld [vmem:[%s2191_s7 + $0x4] ss:$16 sps:$4 sm:$0xff]   ;;  %v2203_v18 = vld [vmem:[%s2191_s7] ss:$16 sps:$4 sm:$0xff]  }
  0x47   : > { %522 = vmatprep.mubr.bf16.mxu0 %v2051_v16  ;;  %563 = vmatprep.mubr.bf16.mxu1 %v2051_v16  ;;  %v2207_v19 = vld [vmem:[%s2191_s7 + $0x24] ss:$16 sps:$4 sm:$0xff]   ;;  %v2211_v20 = vld [vmem:[%s2191_s7 + $0xc] ss:$16 sps:$4 sm:$0xff]   ;;  %v2214_v21 = vld [vmem:[%s2191_s7 + $0x20] ss:$16 sps:$4 sm:$0xff]  }
  0x48   : > { %490 = vmatprep.subr.bf16.mxu0 %v2200_v17  ;;  %v2217_v22 = vld [vmem:[%s2191_s7 + $0x8] ss:$16 sps:$4 sm:$0xff]   ;;  %v2221_v23 = vld [vmem:[%s2191_s7 + $0x44] ss:$16 sps:$4 sm:$0xff]   ;;  %531 = vmatprep.subr.bf16.mxu1 %v2211_v20  ;;  %v2225_v24 = vld [vmem:[%s2191_s7 + $0x2c] ss:$16 sps:$4 sm:$0xff]  }
  0x49   : > { %491 = vmatpush1.bf16.msra.mxu0 %v2203_v18  ;;  %532 = vmatpush1.bf16.msra.mxu1 %v2217_v22  ;;  %v2229_v25 = vld [vmem:[%s2191_s7 + $0x28] ss:$16 sps:$4 sm:$0xff]   ;;  %v2234_v26 = vld [vmem:[%s2191_s7 + $0x40] ss:$16 sps:$4 sm:$0xff]   ;;  %v2238_v27 = vld [vmem:[%s2191_s7 + $0x64] ss:$16 sps:$4 sm:$0xff]  }
  0x4a   : > { %492 = vmatprep.subr.bf16.mxu0 %v2207_v19  ;;  %533 = vmatprep.subr.bf16.mxu1 %v2225_v24  ;;  %v2241_v28 = vld [vmem:[%s2191_s7 + $0x4c] ss:$16 sps:$4 sm:$0xff]   ;;  %v2245_v29 = vld [vmem:[%s2191_s7 + $0x48] ss:$16 sps:$4 sm:$0xff]   ;;  %v2250_v30 = vld [vmem:[%s2191_s7 + $0x60] ss:$16 sps:$4 sm:$0xff]  }
  0x4b   : > { %v2253_v31 = vld [vmem:[%s2191_s7 + $0x6c] ss:$16 sps:$4 sm:$0xff]   ;;  %v2257_v32 = vld [vmem:[%s2191_s7 + $0x84] ss:$16 sps:$4 sm:$0xff]   ;;  %v2261_v33 = vld [vmem:[%s2191_s7 + $0x80] ss:$16 sps:$4 sm:$0xff]  }
  0x4c   : > { %v2264_v34 = vld [vmem:[%s2191_s7 + $0x68] ss:$16 sps:$4 sm:$0xff]   ;;  %v2269_v35 = vld [vmem:[%s2191_s7 + $0x8c] ss:$16 sps:$4 sm:$0xff]   ;;  %v2273_v36 = vld [vmem:[%s2191_s7 + $0xa4] ss:$16 sps:$4 sm:$0xff]  }
  0x4d   : > { %493 = vmatpush1.bf16.msra.mxu0 %v2214_v21  ;;  %534 = vmatpush1.bf16.msra.mxu1 %v2229_v25  ;;  %v2277_v37 = vld [vmem:[%s2191_s7 + $0x88] ss:$16 sps:$4 sm:$0xff]   ;;  %v2282_v38 = vld [vmem:[%s2191_s7 + $0xa0] ss:$16 sps:$4 sm:$0xff]   ;;  %v2285_v39 = vld [vmem:[%s2191_s7 + $0xac] ss:$16 sps:$4 sm:$0xff]  }
  0x4e   : > { %494 = vmatprep.subr.bf16.mxu0 %v2221_v23  ;;  %535 = vmatprep.subr.bf16.mxu1 %v2241_v28  ;;  %v2289_v40 = vld [vmem:[%s2191_s7 + $0xc4] ss:$16 sps:$4 sm:$0xff]   ;;  %v2293_v41 = vld [vmem:[%s2191_s7 + $0xa8] ss:$16 sps:$4 sm:$0xff]   ;;  %v2298_v42 = vld [vmem:[%s2191_s7 + $0xc0] ss:$16 sps:$4 sm:$0xff]  }
  0x4f   : > { %v2301_v43 = vld [vmem:[%s2191_s7 + $0xcc] ss:$16 sps:$4 sm:$0xff]   ;;  %v2305_v44 = vld [vmem:[%s2191_s7 + $0xe4] ss:$16 sps:$4 sm:$0xff]   ;;  %v2309_v45 = vld [vmem:[%s2191_s7 + $0xc8] ss:$16 sps:$4 sm:$0xff]  }
  0x50   : > { %v2314_v46 = vld [vmem:[%s2191_s7 + $0xe0] ss:$16 sps:$4 sm:$0xff]   ;;  %v2317_v47 = vld [vmem:[%s2191_s7 + $0xec] ss:$16 sps:$4 sm:$0xff]   ;;  %v2322_v48 = vld [vmem:[%s2191_s7 + $0xe8] ss:$16 sps:$4 sm:$0xff]  }
  0x51   : > { %495 = vmatpush1.bf16.msra.mxu0 %v2234_v26  ;;  %536 = vmatpush1.bf16.msra.mxu1 %v2245_v29  ;;  %v2052_v49 = vmov 0.0|0.0   ;;  %s1751_s20 = smul.u32 112, %s2038_s12  ;;  %s1676_s15 = sshll.u32 %s2184_s5, 5 }
  0x52   : > { %496 = vmatprep.subr.bf16.mxu0 %v2238_v27  ;;  %537 = vmatprep.subr.bf16.mxu1 %v2253_v31  ;;  %s1752_s19 = smul.u32 28, %s2038_s12  ;;  %s2370_s23 = scalar_lea.vmem [#allocation7], %s1676_s15 }
  0x53   : > { %s322_s9 = scalar_lea.vmem %s2188_s17, %s1751_s20 [#allocation4]  ;;  %s1712_s25 = smul.u32 80, %s2038_s12 }
  0x54   : > { %v323_v50 = vld [vmem:[%s322_s9] sm:$0xff]  ;;  %v324_v52 = vld [vmem:[%s322_s9 + $0x8] sm:$0xff]  ;;  %s596_s24 = scalar_lea.vmem %s2370_s23, %s1752_s19 [#allocation7]  ;;  %s1715_s27 = smul.u32 20, %s2038_s12 }
  0x55   : > { %497 = vmatpush1.bf16.msra.mxu0 %v2250_v30  ;;  %538 = vmatpush1.bf16.msra.mxu1 %v2264_v34  ;;  %v325_v51 = vunpack.c.l.bf16 %v323_v50  ;;  %v326_v53 = vunpack.c.h.bf16 %v323_v50  ;;  %v327_v55 = vunpack.c.l.bf16 %v324_v52  ;;  %v328_v2 = vunpack.c.h.bf16 %v324_v52  ;;  %s1560_s26 = scalar_lea.vmem %s2188_s17, %s1712_s25 [#allocation4]  ;;  %s1717_s29 = smul.u32 48, %s2038_s12 }
  0x56   : > { %498 = vmatprep.subr.bf16.mxu0 %v2257_v32  ;;  %539 = vmatprep.subr.bf16.mxu1 %v2269_v35  ;;  %s1564_s28 = scalar_lea.vmem %s2370_s23, %s1715_s27 [#allocation7]  ;;  %s1720_s3 = smul.u32 12, %s2038_s12 }
  0x57   : > { %s1568_s30 = scalar_lea.vmem %s2188_s17, %s1717_s29 [#allocation4]  ;;  %s1722_s5 = sshll.u32 %s2038_s12, 4 }
  0x58   : > { %s1572_s4 = scalar_lea.vmem %s2370_s23, %s1720_s3 [#allocation7]  ;;  %s1575_s6 = scalar_lea.vmem %s2188_s17, %s1722_s5 [#allocation4] }
  0x59   : > { %499 = vmatpush1.bf16.msra.mxu0 %v2261_v33  ;;  %540 = vmatpush1.bf16.msra.mxu1 %v2277_v37  ;;  %s1725_s8 = sshll.u32 %s2038_s12, 2  ;;  %s954_s20 = ssub.s32 4, %s2038_s12 }
  0x5a   : > { %500 = vmatprep.subr.bf16.mxu0 %v2273_v36  ;;  %541 = vmatprep.subr.bf16.mxu1 %v2285_v39  ;;  %s1578_s18 = scalar_lea.vmem %s2370_s23, %s1725_s8 [#allocation7]  ;;  %s1753_s9 = sshll.u32 %s954_s20, 4 }
  0x5b   : > { %s957_s15 = scalar_lea.vmem %s2188_s17, %s1753_s9 [#allocation4]  ;;  %s1729_s19 = sshll.u32 %s954_s20, 2 }
  0x5c   : > { %s1730_s25 = smul.u32 4294967248, %s2038_s12  ;;  %p2677_p3 = scmp.ne.s32.totalorder %s2676_s22, 0 }
  0x5d   : > { %501 = vmatpush1.bf16.msra.mxu0 %v2282_v38  ;;  %542 = vmatpush1.bf16.msra.mxu1 %v2293_v41  ;;  %s1733_s27 = smul.u32 4294967284, %s2038_s12  ;;  %s1446_s9 = scalar_lea.vmem (%p2677_p3), %s2673_s2, %s1725_s8 }
  0x5e   : > { %502 = vmatprep.subr.bf16.mxu0 %v2289_v40  ;;  %543 = vmatprep.subr.bf16.mxu1 %v2301_v43  ;;  %s1735_s29 = smul.u32 4294967216, %s2038_s12 }
  0x61   : > { %503 = vmatpush1.bf16.msra.mxu0 %v2298_v42  ;;  %544 = vmatpush1.bf16.msra.mxu1 %v2309_v45 }
  0x62   : > { %504 = vmatprep.subr.bf16.mxu0 %v2305_v44  ;;  %545 = vmatprep.subr.bf16.mxu1 %v2317_v47 }
  0x65   : > { %505 = vmatpush1.bf16.msra.mxu0 %v2314_v46  ;;  %546 = vmatpush1.bf16.msra.mxu1 %v2322_v48 }
  0x66   : > { %609 = vmatprep.subr.bf16.mxu0 %v2200_v17  ;;  %650 = vmatprep.subr.bf16.mxu1 %v2211_v20 }
  0x68   : > { %523 = vmatmul.mubr.bf16.vlgmr.msra.gmra.mrb[0].mxu0 %v2052_v49  ;;  %564 = vmatmul.mubr.bf16.vlgmr.msra.gmra.mrb[0].mxu1 %v2052_v49 }
  0x69   : > { %610 = vmatpush1.bf16.msra.mxu0 %v2203_v18  ;;  %641 = vmatprep.mubr.bf16.mxu0 %v2051_v16 }
  0x6a   : > { %611 = vmatprep.subr.bf16.mxu0 %v2207_v19  ;;  %651 = vmatpush1.bf16.msra.mxu1 %v2217_v22 }
  0x6b   : > { %682 = vmatprep.mubr.bf16.mxu1 %v2051_v16  ;;  %652 = vmatprep.subr.bf16.mxu1 %v2225_v24 }
  0x6d   : > { %612 = vmatpush1.bf16.msra.mxu0 %v2214_v21 }
  0x6e   : > { %613 = vmatprep.subr.bf16.mxu0 %v2221_v23  ;;  %653 = vmatpush1.bf16.msra.mxu1 %v2229_v25 }
  0x6f   : > { %654 = vmatprep.subr.bf16.mxu1 %v2241_v28 }
  0x71   : > { %614 = vmatpush1.bf16.msra.mxu0 %v2234_v26 }
  0x72   : > { %615 = vmatprep.subr.bf16.mxu0 %v2238_v27  ;;  %655 = vmatpush1.bf16.msra.mxu1 %v2245_v29 }
  0x73   : > { %656 = vmatprep.subr.bf16.mxu1 %v2253_v31 }
  0x75   : > { %616 = vmatpush1.bf16.msra.mxu0 %v2250_v30 }
  0x76   : > { %617 = vmatprep.subr.bf16.mxu0 %v2257_v32  ;;  %657 = vmatpush1.bf16.msra.mxu1 %v2264_v34 }
  0x77   : > { %658 = vmatprep.subr.bf16.mxu1 %v2269_v35 }
  0x79   : > { %618 = vmatpush1.bf16.msra.mxu0 %v2261_v33 }
  0x7a   : > { %619 = vmatprep.subr.bf16.mxu0 %v2273_v36  ;;  %659 = vmatpush1.bf16.msra.mxu1 %v2277_v37 }
  0x7b   : > { %660 = vmatprep.subr.bf16.mxu1 %v2285_v39 }
  0x7d   : > { %620 = vmatpush1.bf16.msra.mxu0 %v2282_v38 }
  0x7e   : > { %621 = vmatprep.subr.bf16.mxu0 %v2289_v40  ;;  %661 = vmatpush1.bf16.msra.mxu1 %v2293_v41 }
  0x7f   : > { %662 = vmatprep.subr.bf16.mxu1 %v2301_v43 }
  0x81   : > { %622 = vmatpush1.bf16.msra.mxu0 %v2298_v42 }
  0x82   : > { %623 = vmatprep.subr.bf16.mxu0 %v2305_v44  ;;  %663 = vmatpush1.bf16.msra.mxu1 %v2309_v45 }
  0x83   : > { %664 = vmatprep.subr.bf16.mxu1 %v2317_v47 }
  0x85   : > { %624 = vmatpush1.bf16.msra.mxu0 %v2314_v46 }
  0x86   : > { %728 = vmatprep.subr.bf16.mxu0 %v2200_v17  ;;  %665 = vmatpush1.bf16.msra.mxu1 %v2322_v48 }
  0x87   : > { %769 = vmatprep.subr.bf16.mxu1 %v2211_v20 }
 0x13b   : > { %v524_v54 = vpop.f32.mrb[0].mxu0  ;;  %v565_v62 = vpop.f32.mrb[0].mxu1 }
 0x13c   : > { %v572_v56 = vadd.f32 %v524_v54, %v325_v51  ;;  %v526_v57 = vpop.f32.mrb[1].mxu0  ;;  %v574_v0 = vadd.f32 %v565_v62, %v327_v55  ;;  %v567_v1 = vpop.f32.mrb[1].mxu1 }
 0x13d   : > { %v573_v58 = vadd.f32 %v526_v57, %v326_v53  ;;  %v528_v59 = vpop.f32.mrb[2].mxu0  ;;  %v569_v3 = vpop.f32.mrb[2].mxu1  ;;  %v575_v5 = vadd.f32 %v567_v1, %v328_v2 }
 0x13e   : > { %v576_v60 = vmul.f32 0.5, %v572_v56  ;;  %v529_v61 = vpop.f32.mrb[3].mxu0  ;;  %v570_v4 = vpop.f32.mrb[3].mxu1  ;;  %v1713_v56 = vld [vmem:[%s1560_s26 + $0x10] sm:$0xff] }
 0x13f   : > { %v580_v63 = vmul.f32 0.5, %v573_v58  ;;  %v585_v6 = vmul.f32 0.5, %v575_v5  ;;  %v605_v57 = vunpack.c.l.bf16 %v1713_v56  ;;  %v1714_v58 = vld [vmem:[%s1560_s26 + $0x18] sm:$0xff]  ;;  %v606_v59 = vunpack.c.h.bf16 %v1713_v56  ;;  %s1586_s26 = scalar_lea.vmem %s2188_s17, %s1730_s25 [#allocation4] }
 0x140   : > { %1856 = vtanh.f32 %v576_v60 }
 0x141   : > { %1858 = vtanh.f32 %v580_v63  ;;  %v607_v63 = vunpack.c.l.bf16 %v1714_v58 }
 0x142   : > { %1860 = vtanh.f32 %v574_v0 }
 0x143   : > { %1862 = vtanh.f32 %v585_v6 }
 0x14a   : > { %v1857_v7 = vpop.eup %1856 }
 0x14b   : > { %v1859_v8 = vpop.eup %1858  ;;  %v578_v9 = vmul.f32 0.5, %v1857_v7 }
 0x14c   : > { %v1861_v10 = vpop.eup %1860  ;;  %v582_v11 = vmul.f32 0.5, %v1859_v8 }
 0x14d   : > { %v579_v12 = vadd.f32 0.5, %v578_v9  ;;  %v1863_v50 = vpop.eup %1862 }
 0x14e   : > { %v583_v13 = vadd.f32 0.5, %v582_v11  ;;  %v587_v51 = vmul.f32 0.5, %v1863_v50 }
 0x14f   : > { %v590_v14 = vmul.f32 %v1861_v10, %v579_v12  ;;  %v608_v10 = vunpack.c.h.bf16 %v1714_v58 }
 0x150   : > { %v589_v15 = vmul.f32 0.0, %v583_v13  ;;  %v588_v52 = vadd.f32 0.5, %v587_v51 }
 0x152   : > { %v2365_v49 = vadd.f32 %v590_v14, %v589_v15 }
 0x154   : > { %1864 = vtanh.f32 %v2365_v49 }
 0x15e   : > { %v1865_v53 = vpop.eup %1864 }
 0x15f   : > { %v593_v54 = vmul.f32 %v1865_v53, %v588_v52 }
 0x161   : > { %v594_v55 = vpack.c.bf16 %v593_v54, %v593_v54 }
 0x163   : > { %597 = vst [vmem:[%s596_s24] sm:$0xf] %v594_v55  ;;  %642 = vmatmul.mubr.bf16.vlgmr.msra.gmra.mrb[4].mxu0 %v594_v55  ;;  %683 = vmatmul.mubr.bf16.vlgmr.msra.gmra.mrb[4].mxu1 %v594_v55  ;;  %s1070_s24 = scalar_lea.vmem %s2370_s23, %s1729_s19 [#allocation7] }
 0x164   : > { %729 = vmatpush1.bf16.msra.mxu0 %v2203_v18  ;;  %770 = vmatpush1.bf16.msra.mxu1 %v2217_v22 }
 0x165   : > { %730 = vmatprep.subr.bf16.mxu0 %v2207_v19  ;;  %771 = vmatprep.subr.bf16.mxu1 %v2225_v24 }
 0x166   : > { %760 = vmatprep.mubr.bf16.mxu0 %v2051_v16  ;;  %801 = vmatprep.mubr.bf16.mxu1 %v2051_v16 }
 0x168   : > { %731 = vmatpush1.bf16.msra.mxu0 %v2214_v21  ;;  %772 = vmatpush1.bf16.msra.mxu1 %v2229_v25 }
 0x169   : > { %732 = vmatprep.subr.bf16.mxu0 %v2221_v23  ;;  %773 = vmatprep.subr.bf16.mxu1 %v2241_v28 }
 0x16c   : > { %733 = vmatpush1.bf16.msra.mxu0 %v2234_v26  ;;  %774 = vmatpush1.bf16.msra.mxu1 %v2245_v29 }
 0x16d   : > { %734 = vmatprep.subr.bf16.mxu0 %v2238_v27  ;;  %775 = vmatprep.subr.bf16.mxu1 %v2253_v31 }
 0x170   : > { %735 = vmatpush1.bf16.msra.mxu0 %v2250_v30  ;;  %776 = vmatpush1.bf16.msra.mxu1 %v2264_v34 }
 0x171   : > { %736 = vmatprep.subr.bf16.mxu0 %v2257_v32  ;;  %777 = vmatprep.subr.bf16.mxu1 %v2269_v35 }
 0x174   : > { %737 = vmatpush1.bf16.msra.mxu0 %v2261_v33  ;;  %778 = vmatpush1.bf16.msra.mxu1 %v2277_v37 }
 0x175   : > { %738 = vmatprep.subr.bf16.mxu0 %v2273_v36  ;;  %779 = vmatprep.subr.bf16.mxu1 %v2285_v39 }
 0x178   : > { %739 = vmatpush1.bf16.msra.mxu0 %v2282_v38  ;;  %780 = vmatpush1.bf16.msra.mxu1 %v2293_v41 }
 0x179   : > { %740 = vmatprep.subr.bf16.mxu0 %v2289_v40  ;;  %781 = vmatprep.subr.bf16.mxu1 %v2301_v43 }
 0x17c   : > { %741 = vmatpush1.bf16.msra.mxu0 %v2298_v42  ;;  %782 = vmatpush1.bf16.msra.mxu1 %v2309_v45 }
 0x17d   : > { %742 = vmatprep.subr.bf16.mxu0 %v2305_v44  ;;  %783 = vmatprep.subr.bf16.mxu1 %v2317_v47 }
 0x180   : > { %743 = vmatpush1.bf16.msra.mxu0 %v2314_v46  ;;  %784 = vmatpush1.bf16.msra.mxu1 %v2322_v48 }
 0x181   : > { %846 = vmatprep.subr.bf16.mxu0 %v2200_v17  ;;  %887 = vmatprep.subr.bf16.mxu1 %v2211_v20 }
 0x236   : > { %v643_v60 = vpop.f32.mrb[4].mxu0  ;;  %v684_v61 = vpop.f32.mrb[4].mxu1 }
 0x237   : > { %v691_v62 = vadd.f32 %v643_v60, %v605_v57  ;;  %v645_v0 = vpop.f32.mrb[5].mxu0  ;;  %v686_v1 = vpop.f32.mrb[5].mxu1  ;;  %v693_v9 = vadd.f32 %v684_v61, %v607_v63 }
 0x238   : > { %v692_v2 = vadd.f32 %v645_v0, %v606_v59  ;;  %v647_v3 = vpop.f32.mrb[6].mxu0  ;;  %v688_v4 = vpop.f32.mrb[6].mxu1  ;;  %v694_v11 = vadd.f32 %v686_v1, %v608_v10  ;;  %v1719_v0 = vld [vmem:[%s1568_s30 + $0x28] sm:$0xff] }
 0x239   : > { %v695_v5 = vmul.f32 0.5, %v691_v62  ;;  %v648_v6 = vpop.f32.mrb[7].mxu0  ;;  %v689_v7 = vpop.f32.mrb[7].mxu1 }
 0x23a   : > { %v699_v8 = vmul.f32 0.5, %v692_v2  ;;  %v704_v12 = vmul.f32 0.5, %v694_v11 }
 0x23b   : > { %1866 = vtanh.f32 %v695_v5  ;;  %v726_v5 = vunpack.c.l.bf16 %v1719_v0 }
 0x23c   : > { %1868 = vtanh.f32 %v699_v8 }
 0x23d   : > { %1870 = vtanh.f32 %v693_v9 }
 0x23e   : > { %1872 = vtanh.f32 %v704_v12 }
 0x245   : > { %v1867_v13 = vpop.eup %1866 }
 0x246   : > { %v1869_v14 = vpop.eup %1868  ;;  %v697_v15 = vmul.f32 0.5, %v1867_v13 }
 0x247   : > { %v701_v50 = vmul.f32 0.5, %v1869_v14  ;;  %v1871_v52 = vpop.eup %1870 }
 0x248   : > { %v698_v51 = vadd.f32 0.5, %v697_v15  ;;  %v1873_v57 = vpop.eup %1872 }
 0x249   : > { %v702_v53 = vadd.f32 0.5, %v701_v50  ;;  %v706_v58 = vmul.f32 0.5, %v1873_v57  ;;  %v727_v50 = vunpack.c.h.bf16 %v1719_v0 }
 0x24a   : > { %v709_v54 = vmul.f32 %v1871_v52, %v698_v51 }
 0x24b   : > { %v708_v55 = vmul.f32 %v702_v53, %v2365_v49  ;;  %v707_v59 = vadd.f32 0.5, %v706_v58  ;;  %v1718_v49 = vld [vmem:[%s1568_s30 + $0x20] sm:$0xff]  ;;  %s1594_s30 = scalar_lea.vmem %s2188_s17, %s1735_s29 [#allocation4] }
 0x24c   : > { %v724_v63 = vunpack.c.l.bf16 %v1718_v49  ;;  %v725_v1 = vunpack.c.h.bf16 %v1718_v49 }
 0x24d   : > { %v2410_v56 = vadd.f32 %v709_v54, %v708_v55 }
 0x24f   : > { %1874 = vtanh.f32 %v2410_v56 }
 0x259   : > { %v1875_v60 = vpop.eup %1874 }
 0x25a   : > { %v712_v61 = vmul.f32 %v1875_v60, %v707_v59 }
 0x25c   : > { %v713_v62 = vpack.c.bf16 %v712_v61, %v712_v61 }
 0x25e   : > { %1716 = vst [vmem:[%s1564_s28 + $0x4] sm:$0xf] %v713_v62  ;;  %761 = vmatmul.mubr.bf16.vlgmr.msra.gmra.mrb[8].mxu0 %v713_v62  ;;  %802 = vmatmul.mubr.bf16.vlgmr.msra.gmra.mrb[8].mxu1 %v713_v62  ;;  %s1590_s28 = scalar_lea.vmem %s2370_s23, %s1733_s27 [#allocation7] }
 0x25f   : > { %847 = vmatpush1.bf16.msra.mxu0 %v2203_v18  ;;  %888 = vmatpush1.bf16.msra.mxu1 %v2217_v22 }
 0x260   : > { %848 = vmatprep.subr.bf16.mxu0 %v2207_v19  ;;  %889 = vmatprep.subr.bf16.mxu1 %v2225_v24 }
 0x261   : > { %878 = vmatprep.mubr.bf16.mxu0 %v2051_v16  ;;  %919 = vmatprep.mubr.bf16.mxu1 %v2051_v16 }
 0x263   : > { %849 = vmatpush1.bf16.msra.mxu0 %v2214_v21  ;;  %890 = vmatpush1.bf16.msra.mxu1 %v2229_v25 }
 0x264   : > { %850 = vmatprep.subr.bf16.mxu0 %v2221_v23  ;;  %891 = vmatprep.subr.bf16.mxu1 %v2241_v28 }
 0x267   : > { %851 = vmatpush1.bf16.msra.mxu0 %v2234_v26  ;;  %892 = vmatpush1.bf16.msra.mxu1 %v2245_v29 }
 0x268   : > { %852 = vmatprep.subr.bf16.mxu0 %v2238_v27  ;;  %893 = vmatprep.subr.bf16.mxu1 %v2253_v31 }
 0x26b   : > { %853 = vmatpush1.bf16.msra.mxu0 %v2250_v30  ;;  %894 = vmatpush1.bf16.msra.mxu1 %v2264_v34 }
 0x26c   : > { %854 = vmatprep.subr.bf16.mxu0 %v2257_v32  ;;  %895 = vmatprep.subr.bf16.mxu1 %v2269_v35 }
 0x26f   : > { %855 = vmatpush1.bf16.msra.mxu0 %v2261_v33  ;;  %896 = vmatpush1.bf16.msra.mxu1 %v2277_v37 }
 0x270   : > { %856 = vmatprep.subr.bf16.mxu0 %v2273_v36  ;;  %897 = vmatprep.subr.bf16.mxu1 %v2285_v39 }
 0x273   : > { %857 = vmatpush1.bf16.msra.mxu0 %v2282_v38  ;;  %898 = vmatpush1.bf16.msra.mxu1 %v2293_v41 }
 0x274   : > { %858 = vmatprep.subr.bf16.mxu0 %v2289_v40  ;;  %899 = vmatprep.subr.bf16.mxu1 %v2301_v43 }
 0x277   : > { %859 = vmatpush1.bf16.msra.mxu0 %v2298_v42  ;;  %900 = vmatpush1.bf16.msra.mxu1 %v2309_v45 }
 0x278   : > { %860 = vmatprep.subr.bf16.mxu0 %v2305_v44  ;;  %901 = vmatprep.subr.bf16.mxu1 %v2317_v47 }
 0x27b   : > { %861 = vmatpush1.bf16.msra.mxu0 %v2314_v46  ;;  %902 = vmatpush1.bf16.msra.mxu1 %v2322_v48 }
 0x27c   : > { %964 = vmatprep.subr.bf16.mxu0 %v2200_v17  ;;  %1005 = vmatprep.subr.bf16.mxu1 %v2211_v20 }
 0x331   : > { %v762_v2 = vpop.f32.mrb[8].mxu0  ;;  %v803_v3 = vpop.f32.mrb[8].mxu1 }
 0x332   : > { %v810_v4 = vadd.f32 %v762_v2, %v724_v63  ;;  %v764_v6 = vpop.f32.mrb[9].mxu0  ;;  %v805_v7 = vpop.f32.mrb[9].mxu1  ;;  %v812_v15 = vadd.f32 %v803_v3, %v726_v5 }
 0x333   : > { %v811_v8 = vadd.f32 %v764_v6, %v725_v1  ;;  %v766_v9 = vpop.f32.mrb[10].mxu0  ;;  %v807_v10 = vpop.f32.mrb[10].mxu1  ;;  %v813_v51 = vadd.f32 %v805_v7, %v727_v50  ;;  %v1724_v6 = vld [vmem:[%s1575_s6 + $0x38] sm:$0xff] }
 0x334   : > { %v814_v11 = vmul.f32 0.5, %v810_v4  ;;  %v767_v12 = vpop.f32.mrb[11].mxu0  ;;  %v808_v13 = vpop.f32.mrb[11].mxu1 }
 0x335   : > { %v818_v14 = vmul.f32 0.5, %v811_v8  ;;  %v823_v52 = vmul.f32 0.5, %v813_v51 }
 0x336   : > { %1876 = vtanh.f32 %v814_v11  ;;  %v844_v11 = vunpack.c.l.bf16 %v1724_v6 }
 0x337   : > { %1878 = vtanh.f32 %v818_v14 }
 0x338   : > { %1880 = vtanh.f32 %v812_v15 }
 0x339   : > { %1882 = vtanh.f32 %v823_v52 }
 0x340   : > { %v1877_v53 = vpop.eup %1876 }
 0x341   : > { %v1879_v54 = vpop.eup %1878  ;;  %v816_v55 = vmul.f32 0.5, %v1877_v53 }
 0x342   : > { %v820_v57 = vmul.f32 0.5, %v1879_v54  ;;  %v1881_v59 = vpop.eup %1880 }
 0x343   : > { %v817_v58 = vadd.f32 0.5, %v816_v55  ;;  %v1883_v63 = vpop.eup %1882 }
 0x344   : > { %v821_v60 = vadd.f32 0.5, %v820_v57  ;;  %v825_v0 = vmul.f32 0.5, %v1883_v63  ;;  %v845_v57 = vunpack.c.h.bf16 %v1724_v6 }
 0x345   : > { %v828_v61 = vmul.f32 %v1881_v59, %v817_v58 }
 0x346   : > { %v827_v62 = vmul.f32 %v821_v60, %v2410_v56  ;;  %v826_v1 = vadd.f32 0.5, %v825_v0  ;;  %v1723_v56 = vld [vmem:[%s1575_s6 + $0x30] sm:$0xff] }
 0x347   : > { %v842_v5 = vunpack.c.l.bf16 %v1723_v56  ;;  %v843_v7 = vunpack.c.h.bf16 %v1723_v56 }
 0x348   : > { %v2452_v49 = vadd.f32 %v828_v61, %v827_v62 }
 0x34a   : > { %1884 = vtanh.f32 %v2452_v49 }
 0x354   : > { %v1885_v2 = vpop.eup %1884 }
 0x355   : > { %v831_v3 = vmul.f32 %v1885_v2, %v826_v1 }
 0x357   : > { %v832_v4 = vpack.c.bf16 %v831_v3, %v831_v3 }
 0x359   : > { %1721 = vst [vmem:[%s1572_s4 + $0x8] sm:$0xf] %v832_v4  ;;  %879 = vmatmul.mubr.bf16.vlgmr.msra.gmra.mrb[12].mxu0 %v832_v4  ;;  %920 = vmatmul.mubr.bf16.vlgmr.msra.gmra.mrb[12].mxu1 %v832_v4  ;;  %s1740_s4 = smul.u32 4294967184, %s2038_s12 }
 0x35a   : > { %965 = vmatpush1.bf16.msra.mxu0 %v2203_v18  ;;  %1006 = vmatpush1.bf16.msra.mxu1 %v2217_v22 }
 0x35b   : > { %966 = vmatprep.subr.bf16.mxu0 %v2207_v19  ;;  %1007 = vmatprep.subr.bf16.mxu1 %v2225_v24  ;;  %s1602_s5 = scalar_lea.vmem %s2188_s17, %s1740_s4 [#allocation4]  ;;  %s1743_s17 = smul.u32 4294967268, %s2038_s12 }
 0x35c   : > { %996 = vmatprep.mubr.bf16.mxu0 %v2051_v16  ;;  %1037 = vmatprep.mubr.bf16.mxu1 %v2051_v16 }
 0x35d   : > { %s1606_s6 = scalar_lea.vmem %s2370_s23, %s1743_s17 [#allocation7] }
 0x35e   : > { %967 = vmatpush1.bf16.msra.mxu0 %v2214_v21  ;;  %1008 = vmatpush1.bf16.msra.mxu1 %v2229_v25 }
 0x35f   : > { %968 = vmatprep.subr.bf16.mxu0 %v2221_v23  ;;  %1009 = vmatprep.subr.bf16.mxu1 %v2241_v28 }
 0x362   : > { %969 = vmatpush1.bf16.msra.mxu0 %v2234_v26  ;;  %1010 = vmatpush1.bf16.msra.mxu1 %v2245_v29 }
 0x363   : > { %970 = vmatprep.subr.bf16.mxu0 %v2238_v27  ;;  %1011 = vmatprep.subr.bf16.mxu1 %v2253_v31 }
 0x366   : > { %971 = vmatpush1.bf16.msra.mxu0 %v2250_v30  ;;  %1012 = vmatpush1.bf16.msra.mxu1 %v2264_v34 }
 0x367   : > { %972 = vmatprep.subr.bf16.mxu0 %v2257_v32  ;;  %1013 = vmatprep.subr.bf16.mxu1 %v2269_v35 }
 0x36a   : > { %973 = vmatpush1.bf16.msra.mxu0 %v2261_v33  ;;  %1014 = vmatpush1.bf16.msra.mxu1 %v2277_v37 }
 0x36b   : > { %974 = vmatprep.subr.bf16.mxu0 %v2273_v36  ;;  %1015 = vmatprep.subr.bf16.mxu1 %v2285_v39 }
 0x36e   : > { %975 = vmatpush1.bf16.msra.mxu0 %v2282_v38  ;;  %1016 = vmatpush1.bf16.msra.mxu1 %v2293_v41 }
 0x36f   : > { %976 = vmatprep.subr.bf16.mxu0 %v2289_v40  ;;  %1017 = vmatprep.subr.bf16.mxu1 %v2301_v43 }
 0x372   : > { %977 = vmatpush1.bf16.msra.mxu0 %v2298_v42  ;;  %1018 = vmatpush1.bf16.msra.mxu1 %v2309_v45 }
 0x373   : > { %978 = vmatprep.subr.bf16.mxu0 %v2305_v44  ;;  %1019 = vmatprep.subr.bf16.mxu1 %v2317_v47 }
 0x376   : > { %979 = vmatpush1.bf16.msra.mxu0 %v2314_v46  ;;  %1020 = vmatpush1.bf16.msra.mxu1 %v2322_v48 }
 0x377   : > { %1083 = vmatprep.subr.bf16.mxu0 %v2200_v17  ;;  %1124 = vmatprep.subr.bf16.mxu1 %v2211_v20 }
 0x42c   : > { %v880_v8 = vpop.f32.mrb[12].mxu0  ;;  %v921_v9 = vpop.f32.mrb[12].mxu1 }
 0x42d   : > { %v928_v10 = vadd.f32 %v880_v8, %v842_v5  ;;  %v882_v12 = vpop.f32.mrb[13].mxu0  ;;  %v923_v13 = vpop.f32.mrb[13].mxu1  ;;  %v930_v55 = vadd.f32 %v921_v9, %v844_v11 }
 0x42e   : > { %v929_v14 = vadd.f32 %v882_v12, %v843_v7  ;;  %v884_v15 = vpop.f32.mrb[14].mxu0  ;;  %v925_v50 = vpop.f32.mrb[14].mxu1  ;;  %v931_v58 = vadd.f32 %v923_v13, %v845_v57 }
 0x42f   : > { %v932_v51 = vmul.f32 0.5, %v928_v10  ;;  %v885_v52 = vpop.f32.mrb[15].mxu0  ;;  %v926_v53 = vpop.f32.mrb[15].mxu1 }
 0x430   : > { %v936_v54 = vmul.f32 0.5, %v929_v14  ;;  %v941_v59 = vmul.f32 0.5, %v931_v58 }
 0x431   : > { %1886 = vtanh.f32 %v932_v51 }
 0x432   : > { %1888 = vtanh.f32 %v936_v54 }
 0x433   : > { %1890 = vtanh.f32 %v930_v55 }
 0x434   : > { %1892 = vtanh.f32 %v941_v59 }
 0x43b   : > { %v1887_v60 = vpop.eup %1886 }
 0x43c   : > { %v1889_v61 = vpop.eup %1888  ;;  %v934_v62 = vmul.f32 0.5, %v1887_v60 }
 0x43d   : > { %v938_v63 = vmul.f32 0.5, %v1889_v61  ;;  %v1891_v1 = vpop.eup %1890 }
 0x43e   : > { %v935_v0 = vadd.f32 0.5, %v934_v62  ;;  %v1893_v5 = vpop.eup %1892 }
 0x43f   : > { %v939_v2 = vadd.f32 0.5, %v938_v63  ;;  %v943_v6 = vmul.f32 0.5, %v1893_v5 }
 0x440   : > { %v946_v3 = vmul.f32 %v1891_v1, %v935_v0 }
 0x441   : > { %v945_v4 = vmul.f32 %v939_v2, %v2452_v49  ;;  %v944_v7 = vadd.f32 0.5, %v943_v6 }
 0x443   : > { %v2494_v56 = vadd.f32 %v946_v3, %v945_v4 }
 0x445   : > { %1894 = vtanh.f32 %v2494_v56 }
 0x44f   : > { %v1895_v8 = vpop.eup %1894 }
 0x450   : > { %v949_v9 = vmul.f32 %v1895_v8, %v944_v7 }
 0x452   : > { %v950_v10 = vpack.c.bf16 %v949_v9, %v949_v9 }
 0x454   : > { %1726 = vst [vmem:[%s1578_s18 + $0xc] sm:$0xf] %v950_v10  ;;  %997 = vmatmul.mubr.bf16.vlgmr.msra.gmra.mrb[16].mxu0 %v950_v10  ;;  %1038 = vmatmul.mubr.bf16.vlgmr.msra.gmra.mrb[16].mxu1 %v950_v10 }
 0x455   : > { %1084 = vmatpush1.bf16.msra.mxu0 %v2203_v18  ;;  %1125 = vmatpush1.bf16.msra.mxu1 %v2217_v22  ;;  %v958_v18 = vld [vmem:[%s957_s15] sm:$0xff] }
 0x456   : > { %1085 = vmatprep.subr.bf16.mxu0 %v2207_v19  ;;  %1126 = vmatprep.subr.bf16.mxu1 %v2225_v24  ;;  %v960_v19 = vunpack.c.l.bf16 %v958_v18  ;;  %v961_v49 = vunpack.c.h.bf16 %v958_v18 }
 0x457   : > { %1115 = vmatprep.mubr.bf16.mxu0 %v2051_v16  ;;  %1156 = vmatprep.mubr.bf16.mxu1 %v2051_v16 }
 0x459   : > { %1086 = vmatpush1.bf16.msra.mxu0 %v2214_v21  ;;  %1127 = vmatpush1.bf16.msra.mxu1 %v2229_v25  ;;  %v959_v21 = vld [vmem:[%s957_s15 + $0x8] sm:$0xff] }
 0x45a   : > { %1087 = vmatprep.subr.bf16.mxu0 %v2221_v23  ;;  %1128 = vmatprep.subr.bf16.mxu1 %v2241_v28  ;;  %v962_v14 = vunpack.c.l.bf16 %v959_v21  ;;  %v963_v58 = vunpack.c.h.bf16 %v959_v21  ;;  %v2547_v21 = vld [vmem:[%s2191_s7] ss:$16 sps:$4 sm:$0xff]  }
 0x45d   : > { %1088 = vmatpush1.bf16.msra.mxu0 %v2234_v26  ;;  %1129 = vmatpush1.bf16.msra.mxu1 %v2245_v29 }
 0x45e   : > { %1089 = vmatprep.subr.bf16.mxu0 %v2238_v27  ;;  %1130 = vmatprep.subr.bf16.mxu1 %v2253_v31 }
 0x461   : > { %1090 = vmatpush1.bf16.msra.mxu0 %v2250_v30  ;;  %1131 = vmatpush1.bf16.msra.mxu1 %v2264_v34 }
 0x462   : > { %1091 = vmatprep.subr.bf16.mxu0 %v2257_v32  ;;  %1132 = vmatprep.subr.bf16.mxu1 %v2269_v35 }
 0x465   : > { %1092 = vmatpush1.bf16.msra.mxu0 %v2261_v33  ;;  %1133 = vmatpush1.bf16.msra.mxu1 %v2277_v37 }
 0x466   : > { %1093 = vmatprep.subr.bf16.mxu0 %v2273_v36  ;;  %1134 = vmatprep.subr.bf16.mxu1 %v2285_v39 }
 0x469   : > { %1094 = vmatpush1.bf16.msra.mxu0 %v2282_v38  ;;  %1135 = vmatpush1.bf16.msra.mxu1 %v2293_v41 }
 0x46a   : > { %1095 = vmatprep.subr.bf16.mxu0 %v2289_v40  ;;  %1136 = vmatprep.subr.bf16.mxu1 %v2301_v43 }
 0x46d   : > { %1096 = vmatpush1.bf16.msra.mxu0 %v2298_v42  ;;  %1137 = vmatpush1.bf16.msra.mxu1 %v2309_v45 }
 0x46e   : > { %1097 = vmatprep.subr.bf16.mxu0 %v2305_v44  ;;  %1138 = vmatprep.subr.bf16.mxu1 %v2317_v47 }
 0x471   : > { %1098 = vmatpush1.bf16.msra.mxu0 %v2314_v46  ;;  %1139 = vmatpush1.bf16.msra.mxu1 %v2322_v48 }
 0x472   : > { %1202 = vmatprep.subr.bf16.mxu0 %v2200_v17  ;;  %1243 = vmatprep.subr.bf16.mxu1 %v2211_v20 }
 0x527   : > { %v998_v11 = vpop.f32.mrb[16].mxu0  ;;  %v1039_v12 = vpop.f32.mrb[16].mxu1 }
 0x528   : > { %v1046_v13 = vadd.f32 %v998_v11, %v960_v19  ;;  %v1000_v15 = vpop.f32.mrb[17].mxu0  ;;  %v1041_v50 = vpop.f32.mrb[17].mxu1  ;;  %v1048_v57 = vadd.f32 %v1039_v12, %v962_v14 }
 0x529   : > { %v1047_v51 = vadd.f32 %v1000_v15, %v961_v49  ;;  %v1002_v52 = vpop.f32.mrb[18].mxu0  ;;  %v1043_v53 = vpop.f32.mrb[18].mxu1  ;;  %v1049_v59 = vadd.f32 %v1041_v50, %v963_v58  ;;  %v2559_v49 = vld [vmem:[%s2191_s7 + $0x20] ss:$16 sps:$4 sm:$0xff]   ;;  %v1943_v58 = vld [vmem:[%s2191_s7 + $0x28] ss:$16 sps:$4 sm:$0xff]  }
 0x52a   : > { %v1050_v17 = vmul.f32 0.5, %v1046_v13  ;;  %v1003_v54 = vpop.f32.mrb[19].mxu0  ;;  %v1044_v20 = vpop.f32.mrb[19].mxu1 }
 0x52b   : > { %v1054_v55 = vmul.f32 0.5, %v1047_v51  ;;  %v1059_v60 = vmul.f32 0.5, %v1049_v59  ;;  %v1944_v59 = vld [vmem:[%s2191_s7 + $0x44] ss:$16 sps:$4 sm:$0xff]  }
 0x52c   : > { %1896 = vtanh.f32 %v1050_v17 }
 0x52d   : > { %1898 = vtanh.f32 %v1054_v55  ;;  %v1941_v55 = vld [vmem:[%s2191_s7 + $0x8] ss:$16 sps:$4 sm:$0xff]  }
 0x52e   : > { %1900 = vtanh.f32 %v1048_v57  ;;  %v1942_v57 = vld [vmem:[%s2191_s7 + $0x2c] ss:$16 sps:$4 sm:$0xff]  }
 0x52f   : > { %1902 = vtanh.f32 %v1059_v60  ;;  %v1945_v60 = vld [vmem:[%s2191_s7 + $0x4c] ss:$16 sps:$4 sm:$0xff]  }
 0x536   : > { %v1897_v61 = vpop.eup %1896 }
 0x537   : > { %v1899_v62 = vpop.eup %1898  ;;  %v1052_v63 = vmul.f32 0.5, %v1897_v61  ;;  %v1946_v61 = vld [vmem:[%s2191_s7 + $0x40] ss:$16 sps:$4 sm:$0xff]  }
 0x538   : > { %v1056_v0 = vmul.f32 0.5, %v1899_v62  ;;  %v1901_v2 = vpop.eup %1900  ;;  %v1947_v62 = vld [vmem:[%s2191_s7 + $0x48] ss:$16 sps:$4 sm:$0xff]  }
 0x539   : > { %v1053_v1 = vadd.f32 0.5, %v1052_v63  ;;  %v1903_v7 = vpop.eup %1902  ;;  %v1948_v63 = vld [vmem:[%s2191_s7 + $0x64] ss:$16 sps:$4 sm:$0xff]  }
 0x53a   : > { %v1057_v3 = vadd.f32 0.5, %v1056_v0  ;;  %v1061_v8 = vmul.f32 0.5, %v1903_v7  ;;  %v1950_v0 = vld [vmem:[%s2191_s7 + $0x60] ss:$16 sps:$4 sm:$0xff]   ;;  %v1957_v7 = vld [vmem:[%s2191_s7 + $0xac] ss:$16 sps:$4 sm:$0xff]  }
 0x53b   : > { %v1064_v4 = vmul.f32 %v1901_v2, %v1053_v1  ;;  %v1951_v1 = vld [vmem:[%s2191_s7 + $0x68] ss:$16 sps:$4 sm:$0xff]   ;;  %v1952_v2 = vld [vmem:[%s2191_s7 + $0x84] ss:$16 sps:$4 sm:$0xff]  }
 0x53c   : > { %v1063_v5 = vmul.f32 %v1057_v3, %v2494_v56  ;;  %v1062_v9 = vadd.f32 0.5, %v1061_v8  ;;  %v2552_v56 = vld [vmem:[%s2191_s7 + $0x24] ss:$16 sps:$4 sm:$0xff]   ;;  %v1953_v3 = vld [vmem:[%s2191_s7 + $0x8c] ss:$16 sps:$4 sm:$0xff]  }
 0x53d   : > { %v1958_v8 = vld [vmem:[%s2191_s7 + $0xa0] ss:$16 sps:$4 sm:$0xff]  }
 0x53e   : > { %v2540_v6 = vadd.f32 %v1064_v4, %v1063_v5  ;;  %v1954_v4 = vld [vmem:[%s2191_s7 + $0x80] ss:$16 sps:$4 sm:$0xff]   ;;  %v1955_v5 = vld [vmem:[%s2191_s7 + $0x88] ss:$16 sps:$4 sm:$0xff]  }
 0x540   : > { %1904 = vtanh.f32 %v2540_v6 }
 0x54a   : > { %v1905_v10 = vpop.eup %1904 }
 0x54b   : > { %v1067_v18 = vmul.f32 %v1905_v10, %v1062_v9  ;;  %v1959_v9 = vld [vmem:[%s2191_s7 + $0xa8] ss:$16 sps:$4 sm:$0xff]   ;;  %v1960_v10 = vld [vmem:[%s2191_s7 + $0xc4] ss:$16 sps:$4 sm:$0xff]  }
 0x54d   : > { %v1068_v19 = vpack.c.bf16 %v1067_v18, %v1067_v18  ;;  %v1961_v18 = vld [vmem:[%s2191_s7 + $0xcc] ss:$16 sps:$4 sm:$0xff]  }
 0x54f   : > { %1071 = vst [vmem:[%s1070_s24] sm:$0xf] %v1068_v19  ;;  %1116 = vmatmul.mubr.bf16.vlgmr.msra.gmra.mrb[20].mxu0 %v1068_v19  ;;  %1157 = vmatmul.mubr.bf16.vlgmr.msra.gmra.mrb[20].mxu1 %v1068_v19  ;;  %v1962_v19 = vld [vmem:[%s2191_s7 + $0xc0] ss:$16 sps:$4 sm:$0xff]  }
 0x550   : > { %1203 = vmatpush1.bf16.msra.mxu0 %v2547_v21  ;;  %1244 = vmatpush1.bf16.msra.mxu1 %v2217_v22  ;;  %v1939_v22 = vld [vmem:[%s2191_s7 + $0x4] ss:$16 sps:$4 sm:$0xff]  }
 0x551   : > { %1204 = vmatprep.subr.bf16.mxu0 %v2552_v56  ;;  %1245 = vmatprep.subr.bf16.mxu1 %v2225_v24  ;;  %v1731_v24 = vld [vmem:[%s1586_s26 + $0x50] sm:$0xff] }
 0x552   : > { %1234 = vmatprep.mubr.bf16.mxu0 %v2051_v16  ;;  %1275 = vmatprep.mubr.bf16.mxu1 %v2051_v16 }
 0x554   : > { %1205 = vmatpush1.bf16.msra.mxu0 %v2559_v49  ;;  %1246 = vmatpush1.bf16.msra.mxu1 %v2229_v25  ;;  %v1079_v25 = vunpack.c.l.bf16 %v1731_v24 }
 0x555   : > { %1206 = vmatprep.subr.bf16.mxu0 %v2221_v23  ;;  %1247 = vmatprep.subr.bf16.mxu1 %v2241_v28  ;;  %v1940_v23 = vld [vmem:[%s2191_s7 + $0xc] ss:$16 sps:$4 sm:$0xff]  }
 0x558   : > { %1207 = vmatpush1.bf16.msra.mxu0 %v2234_v26  ;;  %1248 = vmatpush1.bf16.msra.mxu1 %v2245_v29  ;;  %v1732_v26 = vld [vmem:[%s1586_s26 + $0x58] sm:$0xff] }
 0x559   : > { %1208 = vmatprep.subr.bf16.mxu0 %v2238_v27  ;;  %1249 = vmatprep.subr.bf16.mxu1 %v2253_v31  ;;  %v1080_v27 = vunpack.c.h.bf16 %v1731_v24  ;;  %v1081_v31 = vunpack.c.l.bf16 %v1732_v26  ;;  %v1736_v24 = vld [vmem:[%s1594_s30 + $0x60] sm:$0xff] }
 0x55c   : > { %1209 = vmatpush1.bf16.msra.mxu0 %v2250_v30  ;;  %1250 = vmatpush1.bf16.msra.mxu1 %v2264_v34 }
 0x55d   : > { %1210 = vmatprep.subr.bf16.mxu0 %v2257_v32  ;;  %1251 = vmatprep.subr.bf16.mxu1 %v2269_v35 }
 0x560   : > { %1211 = vmatpush1.bf16.msra.mxu0 %v2261_v33  ;;  %1252 = vmatpush1.bf16.msra.mxu1 %v2277_v37 }
 0x561   : > { %1212 = vmatprep.subr.bf16.mxu0 %v2273_v36  ;;  %1253 = vmatprep.subr.bf16.mxu1 %v2285_v39 }
 0x564   : > { %1213 = vmatpush1.bf16.msra.mxu0 %v2282_v38  ;;  %1254 = vmatpush1.bf16.msra.mxu1 %v2293_v41 }
 0x565   : > { %1214 = vmatprep.subr.bf16.mxu0 %v2289_v40  ;;  %1255 = vmatprep.subr.bf16.mxu1 %v2301_v43 }
 0x568   : > { %1215 = vmatpush1.bf16.msra.mxu0 %v2298_v42  ;;  %1256 = vmatpush1.bf16.msra.mxu1 %v2309_v45  ;;  %v1082_v42 = vunpack.c.h.bf16 %v1732_v26  ;;  %v1737_v26 = vld [vmem:[%s1594_s30 + $0x68] sm:$0xff] }
 0x569   : > { %1216 = vmatprep.subr.bf16.mxu0 %v2305_v44  ;;  %1257 = vmatprep.subr.bf16.mxu1 %v2317_v47 }
 0x56c   : > { %1217 = vmatpush1.bf16.msra.mxu0 %v2314_v46  ;;  %1258 = vmatpush1.bf16.msra.mxu1 %v2322_v48 }
 0x56d   : > { %1321 = vmatprep.subr.bf16.mxu0 %v1939_v22  ;;  %1362 = vmatprep.subr.bf16.mxu1 %v1940_v23  ;;  %v1966_v22 = vld [vmem:[%s2191_s7 + $0xe0] ss:$16 sps:$4 sm:$0xff]   ;;  %v1967_v23 = vld [vmem:[%s2191_s7 + $0xe8] ss:$16 sps:$4 sm:$0xff]  }
 0x622   : > { %v1117_v28 = vpop.f32.mrb[20].mxu0  ;;  %v1158_v29 = vpop.f32.mrb[20].mxu1 }
 0x623   : > { %v1165_v30 = vadd.f32 %v1117_v28, %v1079_v25  ;;  %v1119_v32 = vpop.f32.mrb[21].mxu0  ;;  %v1160_v33 = vpop.f32.mrb[21].mxu1  ;;  %v1167_v41 = vadd.f32 %v1158_v29, %v1081_v31  ;;  %v1198_v25 = vunpack.c.l.bf16 %v1736_v24  ;;  %v1200_v31 = vunpack.c.l.bf16 %v1737_v26 }
 0x624   : > { %v1166_v34 = vadd.f32 %v1119_v32, %v1080_v27  ;;  %v1121_v35 = vpop.f32.mrb[22].mxu0  ;;  %v1162_v36 = vpop.f32.mrb[22].mxu1  ;;  %v1168_v43 = vadd.f32 %v1160_v33, %v1082_v42  ;;  %v1199_v27 = vunpack.c.h.bf16 %v1736_v24  ;;  %v1201_v42 = vunpack.c.h.bf16 %v1737_v26 }
 0x625   : > { %v1169_v37 = vmul.f32 0.5, %v1165_v30  ;;  %v1122_v38 = vpop.f32.mrb[23].mxu0  ;;  %v1163_v39 = vpop.f32.mrb[23].mxu1 }
 0x626   : > { %v1173_v40 = vmul.f32 0.5, %v1166_v34  ;;  %v1178_v44 = vmul.f32 0.5, %v1168_v43 }
 0x627   : > { %1906 = vtanh.f32 %v1169_v37 }
 0x628   : > { %1908 = vtanh.f32 %v1173_v40 }
 0x629   : > { %1910 = vtanh.f32 %v1167_v41 }
 0x62a   : > { %1912 = vtanh.f32 %v1178_v44 }
 0x631   : > { %v1907_v45 = vpop.eup %1906 }
 0x632   : > { %v1909_v46 = vpop.eup %1908  ;;  %v1171_v47 = vmul.f32 0.5, %v1907_v45 }
 0x633   : > { %v1175_v48 = vmul.f32 0.5, %v1909_v46  ;;  %v1911_v12 = vpop.eup %1910 }
 0x634   : > { %v1172_v11 = vadd.f32 0.5, %v1171_v47  ;;  %v1913_v51 = vpop.eup %1912 }
 0x635   : > { %v1176_v13 = vadd.f32 0.5, %v1175_v48  ;;  %v1180_v52 = vmul.f32 0.5, %v1913_v51 }
 0x636   : > { %v1183_v14 = vmul.f32 %v1911_v12, %v1172_v11 }
 0x637   : > { %v1182_v15 = vmul.f32 %v1176_v13, %v2540_v6  ;;  %v1181_v53 = vadd.f32 0.5, %v1180_v52  ;;  %v1956_v6 = vld [vmem:[%s2191_s7 + $0xa4] ss:$16 sps:$4 sm:$0xff]  }
 0x639   : > { %v2592_v50 = vadd.f32 %v1183_v14, %v1182_v15 }
 0x63b   : > { %1914 = vtanh.f32 %v2592_v50 }
 0x645   : > { %v1915_v17 = vpop.eup %1914 }
 0x646   : > { %v1186_v54 = vmul.f32 %v1915_v17, %v1181_v53 }
 0x648   : > { %v1187_v20 = vpack.c.bf16 %v1186_v54, %v1186_v54 }
 0x64a   : > { %1734 = vst [vmem:[%s1590_s28 + $0x14] sm:$0xf] %v1187_v20  ;;  %1235 = vmatmul.mubr.bf16.vlgmr.msra.gmra.mrb[24].mxu0 %v1187_v20  ;;  %1276 = vmatmul.mubr.bf16.vlgmr.msra.gmra.mrb[24].mxu1 %v1187_v20 }
 0x64b   : > { %1322 = vmatpush1.bf16.msra.mxu0 %v2547_v21  ;;  %1363 = vmatpush1.bf16.msra.mxu1 %v1941_v55  ;;  %v1963_v21 = vld [vmem:[%s2191_s7 + $0xc8] ss:$16 sps:$4 sm:$0xff]  }
 0x64c   : > { %1323 = vmatprep.subr.bf16.mxu0 %v2552_v56  ;;  %1364 = vmatprep.subr.bf16.mxu1 %v1942_v57  ;;  %v1964_v56 = vld [vmem:[%s2191_s7 + $0xe4] ss:$16 sps:$4 sm:$0xff]  }
 0x64d   : > { %1353 = vmatprep.mubr.bf16.mxu0 %v2051_v16  ;;  %1394 = vmatprep.mubr.bf16.mxu1 %v2051_v16  ;;  %v1949_v16 = vld [vmem:[%s2191_s7 + $0x6c] ss:$16 sps:$4 sm:$0xff]   ;;  %v1741_v57 = vld [vmem:[%s1602_s5 + $0x70] sm:$0xff] }
 0x64f   : > { %1324 = vmatpush1.bf16.msra.mxu0 %v2559_v49  ;;  %1365 = vmatpush1.bf16.msra.mxu1 %v1943_v58  ;;  %v1965_v49 = vld [vmem:[%s2191_s7 + $0xec] ss:$16 sps:$4 sm:$0xff]   ;;  %s1738_s7 = smul.u32 4294967276, %s2038_s12  ;;  %v1317_v58 = vunpack.c.l.bf16 %v1741_v57 }
 0x650   : > { %1325 = vmatprep.subr.bf16.mxu0 %v1944_v59  ;;  %1366 = vmatprep.subr.bf16.mxu1 %v1945_v60  ;;  %v1742_v59 = vld [vmem:[%s1602_s5 + $0x78] sm:$0xff]  ;;  %v1318_v60 = vunpack.c.h.bf16 %v1741_v57 }
 0x651   : > { %s1598_s3 = scalar_lea.vmem %s2370_s23, %s1738_s7 [#allocation7] }
 0x653   : > { %1326 = vmatpush1.bf16.msra.mxu0 %v1946_v61  ;;  %1367 = vmatpush1.bf16.msra.mxu1 %v1947_v62 }
 0x654   : > { %1327 = vmatprep.subr.bf16.mxu0 %v1948_v63  ;;  %1368 = vmatprep.subr.bf16.mxu1 %v1949_v16  ;;  %v1319_v63 = vunpack.c.l.bf16 %v1742_v59 }
 0x657   : > { %1328 = vmatpush1.bf16.msra.mxu0 %v1950_v0  ;;  %1369 = vmatpush1.bf16.msra.mxu1 %v1951_v1 }
 0x658   : > { %1329 = vmatprep.subr.bf16.mxu0 %v1952_v2  ;;  %1370 = vmatprep.subr.bf16.mxu1 %v1953_v3 }
 0x65b   : > { %1330 = vmatpush1.bf16.msra.mxu0 %v1954_v4  ;;  %1371 = vmatpush1.bf16.msra.mxu1 %v1955_v5 }
 0x65c   : > { %1331 = vmatprep.subr.bf16.mxu0 %v1956_v6  ;;  %1372 = vmatprep.subr.bf16.mxu1 %v1957_v7 }
 0x65f   : > { %1332 = vmatpush1.bf16.msra.mxu0 %v1958_v8  ;;  %1373 = vmatpush1.bf16.msra.mxu1 %v1959_v9  ;;  %v1320_v9 = vunpack.c.h.bf16 %v1742_v59 }
 0x660   : > { %1333 = vmatprep.subr.bf16.mxu0 %v1960_v10  ;;  %1374 = vmatprep.subr.bf16.mxu1 %v1961_v18 }
 0x663   : > { %1334 = vmatpush1.bf16.msra.mxu0 %v1962_v19  ;;  %1375 = vmatpush1.bf16.msra.mxu1 %v1963_v21 }
 0x664   : > { %1335 = vmatprep.subr.bf16.mxu0 %v1964_v56  ;;  %1376 = vmatprep.subr.bf16.mxu1 %v1965_v49 }
 0x667   : > { %1336 = vmatpush1.bf16.msra.mxu0 %v1966_v22  ;;  %1377 = vmatpush1.bf16.msra.mxu1 %v1967_v23 }
 0x71d   : > { %v1236_v28 = vpop.f32.mrb[24].mxu0  ;;  %v1277_v29 = vpop.f32.mrb[24].mxu1 }
 0x71e   : > { %v1284_v30 = vadd.f32 %v1236_v28, %v1198_v25  ;;  %v1238_v32 = vpop.f32.mrb[25].mxu0  ;;  %v1279_v33 = vpop.f32.mrb[25].mxu1  ;;  %v1286_v41 = vadd.f32 %v1277_v29, %v1200_v31 }
 0x71f   : > { %v1285_v34 = vadd.f32 %v1238_v32, %v1199_v27  ;;  %v1240_v35 = vpop.f32.mrb[26].mxu0  ;;  %v1281_v36 = vpop.f32.mrb[26].mxu1  ;;  %v1287_v43 = vadd.f32 %v1279_v33, %v1201_v42 }
 0x720   : > { %v1288_v37 = vmul.f32 0.5, %v1284_v30  ;;  %v1241_v38 = vpop.f32.mrb[27].mxu0  ;;  %v1282_v39 = vpop.f32.mrb[27].mxu1 }
 0x721   : > { %v1292_v40 = vmul.f32 0.5, %v1285_v34  ;;  %v1297_v44 = vmul.f32 0.5, %v1287_v43 }
 0x722   : > { %1916 = vtanh.f32 %v1288_v37 }
 0x723   : > { %1918 = vtanh.f32 %v1292_v40 }
 0x724   : > { %1920 = vtanh.f32 %v1286_v41 }
 0x725   : > { %1922 = vtanh.f32 %v1297_v44 }
 0x72c   : > { %v1917_v45 = vpop.eup %1916 }
 0x72d   : > { %v1919_v46 = vpop.eup %1918  ;;  %v1290_v47 = vmul.f32 0.5, %v1917_v45 }
 0x72e   : > { %v1294_v48 = vmul.f32 0.5, %v1919_v46  ;;  %v1921_v12 = vpop.eup %1920 }
 0x72f   : > { %v1291_v11 = vadd.f32 0.5, %v1290_v47  ;;  %v1923_v52 = vpop.eup %1922 }
 0x730   : > { %v1295_v13 = vadd.f32 0.5, %v1294_v48  ;;  %v1299_v53 = vmul.f32 0.5, %v1923_v52 }
 0x731   : > { %v1302_v14 = vmul.f32 %v1921_v12, %v1291_v11 }
 0x732   : > { %v1301_v15 = vmul.f32 %v1295_v13, %v2592_v50  ;;  %v1300_v17 = vadd.f32 0.5, %v1299_v53 }
 0x734   : > { %v1303_v51 = vadd.f32 %v1302_v14, %v1301_v15 }
 0x736   : > { %1924 = vtanh.f32 %v1303_v51 }
 0x740   : > { %v1925_v54 = vpop.eup %1924 }
 0x741   : > { %v1305_v20 = vmul.f32 %v1925_v54, %v1300_v17 }
 0x743   : > { %v1306_v55 = vpack.c.bf16 %v1305_v20, %v1305_v20 }
 0x745   : > { %1739 = vst [vmem:[%s1598_s3 + $0x18] sm:$0xf] %v1306_v55  ;;  %1354 = vmatmul.mubr.bf16.vlgmr.msra.gmra.mrb[28].mxu0 %v1306_v55  ;;  %1395 = vmatmul.mubr.bf16.vlgmr.msra.gmra.mrb[28].mxu1 %v1306_v55 }
 0x818   : > { %v1355_v50 = vpop.f32.mrb[28].mxu0  ;;  %v1396_v61 = vpop.f32.mrb[28].mxu1 }
 0x819   : > { %v1403_v62 = vadd.f32 %v1355_v50, %v1317_v58  ;;  %v1357_v16 = vpop.f32.mrb[29].mxu0  ;;  %v1398_v0 = vpop.f32.mrb[29].mxu1  ;;  %v1405_v8 = vadd.f32 %v1396_v61, %v1319_v63 }
 0x81a   : > { %v1404_v1 = vadd.f32 %v1357_v16, %v1318_v60  ;;  %v1359_v2 = vpop.f32.mrb[30].mxu0  ;;  %v1400_v3 = vpop.f32.mrb[30].mxu1  ;;  %v1406_v10 = vadd.f32 %v1398_v0, %v1320_v9 }
 0x81b   : > { %v1407_v4 = vmul.f32 0.5, %v1403_v62  ;;  %v1360_v5 = vpop.f32.mrb[31].mxu0  ;;  %v1401_v6 = vpop.f32.mrb[31].mxu1 }
 0x81c   : > { %v1411_v7 = vmul.f32 0.5, %v1404_v1  ;;  %v1416_v18 = vmul.f32 0.5, %v1406_v10 }
 0x81d   : > { %1926 = vtanh.f32 %v1407_v4 }
 0x81e   : > { %1928 = vtanh.f32 %v1411_v7 }
 0x81f   : > { %1930 = vtanh.f32 %v1405_v8 }
 0x820   : > { %1932 = vtanh.f32 %v1416_v18 }
 0x827   : > { %v1927_v19 = vpop.eup %1926 }
 0x828   : > { %v1929_v21 = vpop.eup %1928  ;;  %v1409_v56 = vmul.f32 0.5, %v1927_v19 }
 0x829   : > { %v1413_v49 = vmul.f32 0.5, %v1929_v21  ;;  %v1931_v23 = vpop.eup %1930 }
 0x82a   : > { %v1410_v22 = vadd.f32 0.5, %v1409_v56  ;;  %v1933_v28 = vpop.eup %1932 }
 0x82b   : > { %v1414_v24 = vadd.f32 0.5, %v1413_v49  ;;  %v1418_v29 = vmul.f32 0.5, %v1933_v28 }
 0x82c   : > { %v1421_v25 = vmul.f32 %v1931_v23, %v1410_v22 }
 0x82d   : > { %v1420_v26 = vmul.f32 %v1414_v24, %v1303_v51  ;;  %v1419_v30 = vadd.f32 0.5, %v1418_v29 }
 0x82f   : > { %v1422_v27 = vadd.f32 %v1421_v25, %v1420_v26 }
 0x831   : > { %1934 = vtanh.f32 %v1422_v27 }
 0x83a   : > { %1437 = sbr.rel (!%p2677_p3) target bundleno = 2125 (0x84d), region = 63 }
 0x83b   : > { %v1935_v31 = vpop.eup %1934 }
 0x83c   : > { %v1424_v32 = vmul.f32 %v1935_v31, %v1419_v30 }
 0x83e   : > { %v1425_v33 = vpack.c.bf16 %v1424_v32, %v1424_v32 }
 0x840   : > { %1744 = vst [vmem:[%s1606_s6 + $0x1c] sm:$0xf] %v1425_v33 }
 0x847   : > { %v1462_v34 = vld [vmem:[%s2370_s23] sm:$0xf]  ;;  %v1464_v35 = vld [vmem:[%s2370_s23 + $0x4] sm:$0xf]  ;;  %v1466_v36 = vld [vmem:[%s2370_s23 + $0x8] sm:$0xf] }
 0x848   : > { %1463 = vst [vmem:[%s1446_s9] sm:$0xf] %v1462_v34  ;;  %1465 = vst [vmem:[%s1446_s9 + $0x8] sm:$0xf] %v1464_v35  ;;  %v1468_v37 = vld [vmem:[%s2370_s23 + $0xc] sm:$0xf] }
 0x849   : > { %1467 = vst [vmem:[%s1446_s9 + $0x10] sm:$0xf] %v1466_v36  ;;  %v1470_v38 = vld [vmem:[%s2370_s23 + $0x10] sm:$0xf]  ;;  %v1472_v39 = vld [vmem:[%s2370_s23 + $0x14] sm:$0xf] }
 0x84a   : > { %1469 = vst [vmem:[%s1446_s9 + $0x18] sm:$0xf] %v1468_v37  ;;  %1471 = vst [vmem:[%s1446_s9 + $0x20] sm:$0xf] %v1470_v38  ;;  %v1474_v40 = vld [vmem:[%s2370_s23 + $0x18] sm:$0xf] }
 0x84b   : > { %1473 = vst [vmem:[%s1446_s9 + $0x28] sm:$0xf] %v1472_v39  ;;  %v1476_v41 = vld [vmem:[%s2370_s23 + $0x1c] sm:$0xf]  ;;  %1475 = vst [vmem:[%s1446_s9 + $0x30] sm:$0xf] %v1474_v40 }
 0x84c   : > { %1477 = vst [vmem:[%s1446_s9 + $0x38] sm:$0xf] %v1476_v41 }
 0x84d PF: > { %s15_s14 = sadd.s32 1, %s2046_s14   ;;  %s2678_s9 = smov %s2030_s10 }
 0x84e   : > { %p12_p8 = scmp.ge.s32.totalorder %s15_s14, 4   ;;  %s2679_s10 = smov %s2034_s11 }
 0x84f   : > { %s2680_s11 = smov %s2116_s21  ;;  %s2681_s12 = smov %s2042_s13 }
 0x850   : > { %s2682_s13 = smov %s2684_s16  ;;  %14 = sbr.rel (!%p12_p8) target bundleno = 4 (0x4), region = 160 }
 0x857   :  { %1526 = vsyncpa [#allocation6], 1 }
 0x858   :  { %1528 = vsyncpa [#allocation6 + $0x1], 1 }

// kernel: binary_classifier_forward.8
= control target key start
LH: loop header
LB: loop body
LE: loop exit
PB: predicated region body
PF: predicated region fallthrough
CT: control target
= control target key end

     0   :  { %s1980_s9 = smov 0   ;;  %s1982_s10 = smov 0   ;;  %s2535_s0 = inlined_call_operand.vmem [shape: bf16[8,8,1024], index: 0, kind: input, shape index: {}]   ;;  %s2536_s1 = inlined_call_operand.vmem [shape: bf16[2,128,512], index: 1, kind: input, shape index: {}]   ;;  %s2537_s2 = inlined_call_operand.vmem [shape: bf16[8,8,256], index: 2, kind: output, shape index: {}]  }
   0x1   :  { %s1984_s11 = smov 0   ;;  %s1986_s12 = smov 0  }
   0x2   :  { %s1988_s13 = smov 0  }
   0x3 LB: > { %s24_s14 = sadd.s32 1, %s1957_s12  ;;  %s1632_s15 = sadd.s32 4294967295, %s1961_s13   ;;  %s1961_s13 = sphi %s1988_s13, %s12_s13   ;;  %s1957_s12 = sphi %s1986_s12, %s2542_s12   ;;  %s1953_s11 = sphi %s1984_s11, %s2541_s11   ;;  %s1949_s10 = sphi %s1982_s10, %s2540_s10   ;;  %s1945_s9 = sphi %s1980_s9, %s2539_s9  }
   0x4   : > { %p26_p0 = scmp.ge.s32.totalorder %s24_s14, 2  ;;  %p48_p1 = scmp.ne.s32.totalorder %s1949_s10, %s1945_s9 }
   0x5   : > { %p49_p2 = scmp.eq.s32.totalorder %s1961_s13, 0  ;;  %p114_p4 = scmp.eq.s32.totalorder %s1632_s15, 1 }
   0x6   : > { %s2544_s14 = smov (%p26_p0, %s24_s14), 0  ;;  %s41_s17 = sadd.s32 1, %s1949_s10 }
   0x7   : > { %p50_p3 = por %p49_p2, %p48_p1  ;;  %s37_s16 = ssub.s32 %s1957_s12, %s2544_s14 }
   0x8   : > { %p39_p5 = scmp.eq.s32.totalorder %s37_s16, 0  ;;  %p2015_p6 = por %p114_p4, %p48_p1 }
   0x9   : > { %p1635_p7 = scmp.ge.s32.totalorder %s1961_s13, 2 }
   0xa   : > { %s2020_s19 = scalar_select %p39_p5, %s1949_s10, %s41_s17  }
   0xb   : > { %136 = sbr.rel (%p1635_p7) target bundleno = 30 (0x1e), region = 16 }
  0x12   : > { %139 = sbr.rel (!%p50_p3) target bundleno = 30 (0x1e), region = 20  ;;  %s141_s20 = sand.u32 (%p50_p3), 1, %s1949_s10  }
  0x13   : > { %s1716_s21 = sshll.u32 (%p50_p3), %s1957_s12, 4  ;;  %s1636_s22 = sshll.u32 (%p50_p3), %s141_s20, 7 }
  0x14   : > { %s2028_s25 = scalar_lea.vmem (%p50_p3), %s2535_s0, %s1716_s21  ;;  %s143_s26 = scalar_lea.vmem (%p50_p3), [#allocation4], %s1636_s22 }
  0x15   : > { %v166_v0 = vld [vmem:[%s2028_s25] sm:$0xff] (%p50_p3)  ;;  %v168_v1 = vld [vmem:[%s2028_s25 + $0x8] sm:$0xff] (%p50_p3) }
  0x16   : > { %v170_v2 = vld [vmem:[%s2028_s25 + $0x20] sm:$0xff] (%p50_p3)  ;;  %167 = vst [vmem:[%s143_s26] sm:$0xff] (%p50_p3), %v166_v0  ;;  %169 = vst [vmem:[%s143_s26 + $0x8] sm:$0xff] (%p50_p3), %v168_v1  ;;  %v172_v3 = vld [vmem:[%s2028_s25 + $0x28] sm:$0xff] (%p50_p3) }
  0x17   : > { %171 = vst [vmem:[%s143_s26 + $0x10] sm:$0xff] (%p50_p3), %v170_v2  ;;  %v174_v4 = vld [vmem:[%s2028_s25 + $0x40] sm:$0xff] (%p50_p3)  ;;  %v176_v5 = vld [vmem:[%s2028_s25 + $0x48] sm:$0xff] (%p50_p3)  ;;  %173 = vst [vmem:[%s143_s26 + $0x18] sm:$0xff] (%p50_p3), %v172_v3 }
  0x18   : > { %175 = vst [vmem:[%s143_s26 + $0x20] sm:$0xff] (%p50_p3), %v174_v4  ;;  %177 = vst [vmem:[%s143_s26 + $0x28] sm:$0xff] (%p50_p3), %v176_v5  ;;  %v178_v6 = vld [vmem:[%s2028_s25 + $0x60] sm:$0xff] (%p50_p3)  ;;  %v180_v7 = vld [vmem:[%s2028_s25 + $0x68] sm:$0xff] (%p50_p3) }
  0x19   : > { %v182_v8 = vld [vmem:[%s2028_s25 + $0x80] sm:$0xff]  ;;  %179 = vst [vmem:[%s143_s26 + $0x30] sm:$0xff] %v178_v6  ;;  %181 = vst [vmem:[%s143_s26 + $0x38] sm:$0xff] %v180_v7  ;;  %v184_v9 = vld [vmem:[%s2028_s25 + $0x88] sm:$0xff] }
  0x1a   : > { %183 = vst [vmem:[%s143_s26 + $0x40] sm:$0xff] %v182_v8  ;;  %v186_v10 = vld [vmem:[%s2028_s25 + $0xa0] sm:$0xff]  ;;  %v188_v11 = vld [vmem:[%s2028_s25 + $0xa8] sm:$0xff]  ;;  %185 = vst [vmem:[%s143_s26 + $0x48] sm:$0xff] %v184_v9 }
  0x1b   : > { %187 = vst [vmem:[%s143_s26 + $0x50] sm:$0xff] %v186_v10  ;;  %189 = vst [vmem:[%s143_s26 + $0x58] sm:$0xff] %v188_v11  ;;  %v190_v12 = vld [vmem:[%s2028_s25 + $0xc0] sm:$0xff]  ;;  %v192_v13 = vld [vmem:[%s2028_s25 + $0xc8] sm:$0xff] }
  0x1c   : > { %v194_v14 = vld [vmem:[%s2028_s25 + $0xe0] sm:$0xff]  ;;  %191 = vst [vmem:[%s143_s26 + $0x60] sm:$0xff] %v190_v12  ;;  %193 = vst [vmem:[%s143_s26 + $0x68] sm:$0xff] %v192_v13  ;;  %v196_v15 = vld [vmem:[%s2028_s25 + $0xe8] sm:$0xff] }
  0x1d   : > { %195 = vst [vmem:[%s143_s26 + $0x70] sm:$0xff] %v194_v14  ;;  %197 = vst [vmem:[%s143_s26 + $0x78] sm:$0xff] %v196_v15 }
  0x1e PF: > { %p1639_p8 = scmp.ge.s32.totalorder %s1961_s13, 1  ;;  %p210_p9 = scmp.lt.s32.totalorder %s1961_s13, 3 }
  0x20   : > { %p211_p10 = pnand %p1639_p8, %p210_p9 }
  0x21   : > { %p248_p11 = scmp.lt.s32.totalorder (!%p211_p10), %s1953_s11, 1  ;;  %v1963_v16 = vmov (!%p211_p10), 0   ;;  %v1964_v49 = vmov (!%p211_p10), 0.0|0.0   ;;  %s217_s4 = sand.u32 (!%p211_p10), 1, %s1945_s9  }
  0x22   : > { %214 = sbr.rel (%p211_p10) target bundleno = 2099 (0x833), region = 47  ;;  %502 = vmatprep.mubr.bf16.mxu0 (!%p211_p10), %v1963_v16  ;;  %543 = vmatprep.mubr.bf16.mxu1 (!%p211_p10), %v1963_v16  ;;  %s1640_s5 = sshll.u32 (!%p211_p10), %s217_s4, 7 }
  0x23   : > { %s1718_s6 = smul.u32 (!%p211_p10), 112, %s1953_s11  ;;  %s2225_s7 = scalar_lea.vmem (!%p211_p10), [#allocation4], %s1640_s5 }
  0x24   : > { %s1641_s15 = sshll.u32 (!%p211_p10), %s217_s4, 5  ;;  %s1719_s16 = smul.u32 (!%p211_p10), 28, %s1953_s11 }
  0x25   : > { %s302_s8 = scalar_lea.vmem (!%p211_p10), %s2225_s7, %s1718_s6 [#allocation4]  ;;  %s2234_s17 = scalar_lea.vmem (!%p211_p10), [#allocation5], %s1641_s15 }
  0x26   : > { %v303_v50 = vld [vmem:[%s302_s8] sm:$0xff] (!%p211_p10)  ;;  %v304_v52 = vld [vmem:[%s302_s8 + $0x8] sm:$0xff] (!%p211_p10)  ;;  %s576_s20 = scalar_lea.vmem (!%p211_p10), %s2234_s17, %s1719_s16 [#allocation5]  ;;  %s1679_s9 = smul.u32 (!%p211_p10), 80, %s1953_s11 }
  0x27   : > { %v305_v51 = vunpack.c.l.bf16 (!%p211_p10), %v303_v50  ;;  %v306_v53 = vunpack.c.h.bf16 (!%p211_p10), %v303_v50  ;;  %v307_v55 = vunpack.c.l.bf16 (!%p211_p10), %v304_v52  ;;  %v308_v2 = vunpack.c.h.bf16 (!%p211_p10), %v304_v52  ;;  %s1682_s22 = smul.u32 (!%p211_p10), 20, %s1953_s11  ;;  %s1692_s30 = sshll.u32 (!%p211_p10), %s1953_s11, 2 }
  0x28   : > { %s1532_s21 = scalar_lea.vmem (!%p211_p10), %s2225_s7, %s1679_s9 [#allocation4]  ;;  %s1684_s24 = smul.u32 (!%p211_p10), 48, %s1953_s11 }
  0x29   : > { %s249_s27 = scalar_select %p248_p11, %s1953_s11, 1 }
  0x2a   : > { %s1536_s23 = scalar_lea.vmem %s2234_s17, %s1682_s22 [#allocation5]  ;;  %s1540_s25 = scalar_lea.vmem %s2225_s7, %s1684_s24 [#allocation4] }
  0x2b   : > { %s1717_s28 = sshll.u32 %s249_s27, 8  ;;  %s1687_s26 = smul.u32 12, %s1953_s11 }
  0x2c   : > { %s2055_s3 = scalar_lea.vmem %s2536_s1, %s1717_s28  ;;  %s1689_s28 = sshll.u32 %s1953_s11, 4 }
  0x2d   : > { %v2058_v17 = vld [vmem:[%s2055_s3 + $0x4] ss:$16 sps:$4 sm:$0xff]   ;;  %v2061_v18 = vld [vmem:[%s2055_s3] ss:$16 sps:$4 sm:$0xff]   ;;  %v2069_v20 = vld [vmem:[%s2055_s3 + $0xc] ss:$16 sps:$4 sm:$0xff]   ;;  %s1544_s27 = scalar_lea.vmem %s2234_s17, %s1687_s26 [#allocation5]  ;;  %s1547_s29 = scalar_lea.vmem %s2225_s7, %s1689_s28 [#allocation4] }
  0x2e   : > { %470 = vmatprep.subr.bf16.mxu0 %v2058_v17  ;;  %v2065_v19 = vld [vmem:[%s2055_s3 + $0x24] ss:$16 sps:$4 sm:$0xff]   ;;  %v2072_v21 = vld [vmem:[%s2055_s3 + $0x20] ss:$16 sps:$4 sm:$0xff]   ;;  %v2075_v22 = vld [vmem:[%s2055_s3 + $0x8] ss:$16 sps:$4 sm:$0xff]   ;;  %511 = vmatprep.subr.bf16.mxu1 %v2069_v20  ;;  %s1550_s4 = scalar_lea.vmem %s2234_s17, %s1692_s30 [#allocation5] }
  0x2f   : > { %471 = vmatpush1.bf16.msra.mxu0 %v2061_v18  ;;  %v2079_v23 = vld [vmem:[%s2055_s3 + $0x44] ss:$16 sps:$4 sm:$0xff]   ;;  %v2083_v24 = vld [vmem:[%s2055_s3 + $0x2c] ss:$16 sps:$4 sm:$0xff]   ;;  %512 = vmatpush1.bf16.msra.mxu1 %v2075_v22  ;;  %v2087_v25 = vld [vmem:[%s2055_s3 + $0x28] ss:$16 sps:$4 sm:$0xff]  }
  0x30   : > { %472 = vmatprep.subr.bf16.mxu0 %v2065_v19  ;;  %513 = vmatprep.subr.bf16.mxu1 %v2083_v24  ;;  %v2092_v26 = vld [vmem:[%s2055_s3 + $0x40] ss:$16 sps:$4 sm:$0xff]   ;;  %v2096_v27 = vld [vmem:[%s2055_s3 + $0x64] ss:$16 sps:$4 sm:$0xff]   ;;  %v2099_v28 = vld [vmem:[%s2055_s3 + $0x4c] ss:$16 sps:$4 sm:$0xff]  }
  0x31   : > { %v2103_v29 = vld [vmem:[%s2055_s3 + $0x48] ss:$16 sps:$4 sm:$0xff]   ;;  %v2108_v30 = vld [vmem:[%s2055_s3 + $0x60] ss:$16 sps:$4 sm:$0xff]   ;;  %v2111_v31 = vld [vmem:[%s2055_s3 + $0x6c] ss:$16 sps:$4 sm:$0xff]  }
  0x32   : > { %v2115_v32 = vld [vmem:[%s2055_s3 + $0x84] ss:$16 sps:$4 sm:$0xff]   ;;  %v2119_v33 = vld [vmem:[%s2055_s3 + $0x80] ss:$16 sps:$4 sm:$0xff]   ;;  %v2122_v34 = vld [vmem:[%s2055_s3 + $0x68] ss:$16 sps:$4 sm:$0xff]  }
  0x33   : > { %473 = vmatpush1.bf16.msra.mxu0 %v2072_v21  ;;  %514 = vmatpush1.bf16.msra.mxu1 %v2087_v25  ;;  %v2127_v35 = vld [vmem:[%s2055_s3 + $0x8c] ss:$16 sps:$4 sm:$0xff]   ;;  %v2131_v36 = vld [vmem:[%s2055_s3 + $0xa4] ss:$16 sps:$4 sm:$0xff]   ;;  %v2135_v37 = vld [vmem:[%s2055_s3 + $0x88] ss:$16 sps:$4 sm:$0xff]  }
  0x34   : > { %474 = vmatprep.subr.bf16.mxu0 %v2079_v23  ;;  %515 = vmatprep.subr.bf16.mxu1 %v2099_v28  ;;  %v2140_v38 = vld [vmem:[%s2055_s3 + $0xa0] ss:$16 sps:$4 sm:$0xff]   ;;  %v2143_v39 = vld [vmem:[%s2055_s3 + $0xac] ss:$16 sps:$4 sm:$0xff]   ;;  %v2147_v40 = vld [vmem:[%s2055_s3 + $0xc4] ss:$16 sps:$4 sm:$0xff]  }
  0x35   : > { %v2151_v41 = vld [vmem:[%s2055_s3 + $0xa8] ss:$16 sps:$4 sm:$0xff]   ;;  %v2156_v42 = vld [vmem:[%s2055_s3 + $0xc0] ss:$16 sps:$4 sm:$0xff]   ;;  %v2159_v43 = vld [vmem:[%s2055_s3 + $0xcc] ss:$16 sps:$4 sm:$0xff]  }
  0x36   : > { %v2163_v44 = vld [vmem:[%s2055_s3 + $0xe4] ss:$16 sps:$4 sm:$0xff]   ;;  %v2167_v45 = vld [vmem:[%s2055_s3 + $0xc8] ss:$16 sps:$4 sm:$0xff]   ;;  %v2172_v46 = vld [vmem:[%s2055_s3 + $0xe0] ss:$16 sps:$4 sm:$0xff]  }
  0x37   : > { %475 = vmatpush1.bf16.msra.mxu0 %v2092_v26  ;;  %516 = vmatpush1.bf16.msra.mxu1 %v2103_v29  ;;  %v2175_v47 = vld [vmem:[%s2055_s3 + $0xec] ss:$16 sps:$4 sm:$0xff]   ;;  %v2180_v48 = vld [vmem:[%s2055_s3 + $0xe8] ss:$16 sps:$4 sm:$0xff]   ;;  %s934_s5 = ssub.s32 4, %s1953_s11  ;;  %s1707_s26 = smul.u32 4294967184, %s1953_s11 }
  0x38   : > { %476 = vmatprep.subr.bf16.mxu0 %v2096_v27  ;;  %517 = vmatprep.subr.bf16.mxu1 %v2111_v31  ;;  %s1720_s6 = sshll.u32 %s934_s5, 4  ;;  %s1696_s15 = sshll.u32 %s934_s5, 2 }
  0x39   : > { %s937_s8 = scalar_lea.vmem %s2225_s7, %s1720_s6 [#allocation4]  ;;  %s1050_s16 = scalar_lea.vmem %s2234_s17, %s1696_s15 [#allocation5] }
  0x3a   : > { %s1426_s5 = scalar_lea.vmem (%p2015_p6), %s2537_s2, %s1692_s30 }
  0x3b   : > { %477 = vmatpush1.bf16.msra.mxu0 %v2108_v30  ;;  %518 = vmatpush1.bf16.msra.mxu1 %v2122_v34 }
  0x3c   : > { %478 = vmatprep.subr.bf16.mxu0 %v2115_v32  ;;  %519 = vmatprep.subr.bf16.mxu1 %v2127_v35 }
  0x3f   : > { %479 = vmatpush1.bf16.msra.mxu0 %v2119_v33  ;;  %520 = vmatpush1.bf16.msra.mxu1 %v2135_v37 }
  0x40   : > { %480 = vmatprep.subr.bf16.mxu0 %v2131_v36  ;;  %521 = vmatprep.subr.bf16.mxu1 %v2143_v39 }
  0x43   : > { %481 = vmatpush1.bf16.msra.mxu0 %v2140_v38  ;;  %522 = vmatpush1.bf16.msra.mxu1 %v2151_v41 }
  0x44   : > { %482 = vmatprep.subr.bf16.mxu0 %v2147_v40  ;;  %523 = vmatprep.subr.bf16.mxu1 %v2159_v43 }
  0x47   : > { %483 = vmatpush1.bf16.msra.mxu0 %v2156_v42  ;;  %524 = vmatpush1.bf16.msra.mxu1 %v2167_v45 }
  0x48   : > { %484 = vmatprep.subr.bf16.mxu0 %v2163_v44  ;;  %525 = vmatprep.subr.bf16.mxu1 %v2175_v47 }
  0x4b   : > { %485 = vmatpush1.bf16.msra.mxu0 %v2172_v46  ;;  %526 = vmatpush1.bf16.msra.mxu1 %v2180_v48 }
  0x4c   : > { %589 = vmatprep.subr.bf16.mxu0 %v2058_v17  ;;  %630 = vmatprep.subr.bf16.mxu1 %v2069_v20 }
  0x4e   : > { %503 = vmatmul.mubr.bf16.vlgmr.msra.gmra.mrb[0].mxu0 %v1964_v49  ;;  %544 = vmatmul.mubr.bf16.vlgmr.msra.gmra.mrb[0].mxu1 %v1964_v49 }
  0x4f   : > { %590 = vmatpush1.bf16.msra.mxu0 %v2061_v18  ;;  %621 = vmatprep.mubr.bf16.mxu0 %v1963_v16 }
  0x50   : > { %591 = vmatprep.subr.bf16.mxu0 %v2065_v19  ;;  %631 = vmatpush1.bf16.msra.mxu1 %v2075_v22 }
  0x51   : > { %662 = vmatprep.mubr.bf16.mxu1 %v1963_v16  ;;  %632 = vmatprep.subr.bf16.mxu1 %v2083_v24 }
  0x53   : > { %592 = vmatpush1.bf16.msra.mxu0 %v2072_v21 }
  0x54   : > { %593 = vmatprep.subr.bf16.mxu0 %v2079_v23  ;;  %633 = vmatpush1.bf16.msra.mxu1 %v2087_v25 }
  0x55   : > { %634 = vmatprep.subr.bf16.mxu1 %v2099_v28 }
  0x57   : > { %594 = vmatpush1.bf16.msra.mxu0 %v2092_v26 }
  0x58   : > { %595 = vmatprep.subr.bf16.mxu0 %v2096_v27  ;;  %635 = vmatpush1.bf16.msra.mxu1 %v2103_v29 }
  0x59   : > { %636 = vmatprep.subr.bf16.mxu1 %v2111_v31 }
  0x5b   : > { %596 = vmatpush1.bf16.msra.mxu0 %v2108_v30 }
  0x5c   : > { %597 = vmatprep.subr.bf16.mxu0 %v2115_v32  ;;  %637 = vmatpush1.bf16.msra.mxu1 %v2122_v34 }
  0x5d   : > { %638 = vmatprep.subr.bf16.mxu1 %v2127_v35 }
  0x5f   : > { %598 = vmatpush1.bf16.msra.mxu0 %v2119_v33 }
  0x60   : > { %599 = vmatprep.subr.bf16.mxu0 %v2131_v36  ;;  %639 = vmatpush1.bf16.msra.mxu1 %v2135_v37 }
  0x61   : > { %640 = vmatprep.subr.bf16.mxu1 %v2143_v39 }
  0x63   : > { %600 = vmatpush1.bf16.msra.mxu0 %v2140_v38 }
  0x64   : > { %601 = vmatprep.subr.bf16.mxu0 %v2147_v40  ;;  %641 = vmatpush1.bf16.msra.mxu1 %v2151_v41 }
  0x65   : > { %642 = vmatprep.subr.bf16.mxu1 %v2159_v43 }
  0x67   : > { %602 = vmatpush1.bf16.msra.mxu0 %v2156_v42 }
  0x68   : > { %603 = vmatprep.subr.bf16.mxu0 %v2163_v44  ;;  %643 = vmatpush1.bf16.msra.mxu1 %v2167_v45 }
  0x69   : > { %644 = vmatprep.subr.bf16.mxu1 %v2175_v47 }
  0x6b   : > { %604 = vmatpush1.bf16.msra.mxu0 %v2172_v46 }
  0x6c   : > { %708 = vmatprep.subr.bf16.mxu0 %v2058_v17  ;;  %645 = vmatpush1.bf16.msra.mxu1 %v2180_v48 }
  0x6d   : > { %749 = vmatprep.subr.bf16.mxu1 %v2069_v20 }
 0x121   : > { %v504_v54 = vpop.f32.mrb[0].mxu0  ;;  %v545_v62 = vpop.f32.mrb[0].mxu1 }
 0x122   : > { %v552_v56 = vadd.f32 %v504_v54, %v305_v51  ;;  %v506_v57 = vpop.f32.mrb[1].mxu0  ;;  %v554_v0 = vadd.f32 %v545_v62, %v307_v55  ;;  %v547_v1 = vpop.f32.mrb[1].mxu1 }
 0x123   : > { %v553_v58 = vadd.f32 %v506_v57, %v306_v53  ;;  %v508_v59 = vpop.f32.mrb[2].mxu0  ;;  %v549_v3 = vpop.f32.mrb[2].mxu1  ;;  %v555_v5 = vadd.f32 %v547_v1, %v308_v2 }
 0x124   : > { %v556_v60 = vmul.f32 0.5, %v552_v56  ;;  %v509_v61 = vpop.f32.mrb[3].mxu0  ;;  %v550_v4 = vpop.f32.mrb[3].mxu1  ;;  %v1680_v56 = vld [vmem:[%s1532_s21 + $0x10] sm:$0xff] }
 0x125   : > { %v560_v63 = vmul.f32 0.5, %v553_v58  ;;  %v565_v6 = vmul.f32 0.5, %v555_v5  ;;  %v585_v57 = vunpack.c.l.bf16 %v1680_v56  ;;  %v1681_v58 = vld [vmem:[%s1532_s21 + $0x18] sm:$0xff]  ;;  %v586_v59 = vunpack.c.h.bf16 %v1680_v56  ;;  %s1700_s21 = smul.u32 4294967284, %s1953_s11 }
 0x126   : > { %1811 = vtanh.f32 %v556_v60 }
 0x127   : > { %1813 = vtanh.f32 %v560_v63  ;;  %v587_v63 = vunpack.c.l.bf16 %v1681_v58  ;;  %s1562_s22 = scalar_lea.vmem %s2234_s17, %s1700_s21 [#allocation5] }
 0x128   : > { %1815 = vtanh.f32 %v554_v0 }
 0x129   : > { %1817 = vtanh.f32 %v565_v6 }
 0x130   : > { %v1812_v7 = vpop.eup %1811 }
 0x131   : > { %v1814_v8 = vpop.eup %1813  ;;  %v558_v9 = vmul.f32 0.5, %v1812_v7 }
 0x132   : > { %v1816_v10 = vpop.eup %1815  ;;  %v562_v11 = vmul.f32 0.5, %v1814_v8 }
 0x133   : > { %v559_v12 = vadd.f32 0.5, %v558_v9  ;;  %v1818_v50 = vpop.eup %1817 }
 0x134   : > { %v563_v13 = vadd.f32 0.5, %v562_v11  ;;  %v567_v51 = vmul.f32 0.5, %v1818_v50 }
 0x135   : > { %v570_v14 = vmul.f32 %v1816_v10, %v559_v12  ;;  %v588_v10 = vunpack.c.h.bf16 %v1681_v58 }
 0x136   : > { %v569_v15 = vmul.f32 0.0, %v563_v13  ;;  %v568_v52 = vadd.f32 0.5, %v567_v51 }
 0x138   : > { %v2228_v49 = vadd.f32 %v570_v14, %v569_v15 }
 0x13a   : > { %1819 = vtanh.f32 %v2228_v49 }
 0x144   : > { %v1820_v53 = vpop.eup %1819 }
 0x145   : > { %v573_v54 = vmul.f32 %v1820_v53, %v568_v52 }
 0x147   : > { %v574_v55 = vpack.c.bf16 %v573_v54, %v573_v54 }
 0x149   : > { %577 = vst [vmem:[%s576_s20] sm:$0xf] %v574_v55  ;;  %622 = vmatmul.mubr.bf16.vlgmr.msra.gmra.mrb[4].mxu0 %v574_v55  ;;  %663 = vmatmul.mubr.bf16.vlgmr.msra.gmra.mrb[4].mxu1 %v574_v55  ;;  %s1697_s20 = smul.u32 4294967248, %s1953_s11 }
 0x14a   : > { %709 = vmatpush1.bf16.msra.mxu0 %v2061_v18  ;;  %750 = vmatpush1.bf16.msra.mxu1 %v2075_v22 }
 0x14b   : > { %710 = vmatprep.subr.bf16.mxu0 %v2065_v19  ;;  %751 = vmatprep.subr.bf16.mxu1 %v2083_v24  ;;  %s1558_s9 = scalar_lea.vmem %s2225_s7, %s1697_s20 [#allocation4] }
 0x14c   : > { %740 = vmatprep.mubr.bf16.mxu0 %v1963_v16  ;;  %781 = vmatprep.mubr.bf16.mxu1 %v1963_v16 }
 0x14e   : > { %711 = vmatpush1.bf16.msra.mxu0 %v2072_v21  ;;  %752 = vmatpush1.bf16.msra.mxu1 %v2087_v25 }
 0x14f   : > { %712 = vmatprep.subr.bf16.mxu0 %v2079_v23  ;;  %753 = vmatprep.subr.bf16.mxu1 %v2099_v28 }
 0x152   : > { %713 = vmatpush1.bf16.msra.mxu0 %v2092_v26  ;;  %754 = vmatpush1.bf16.msra.mxu1 %v2103_v29 }
 0x153   : > { %714 = vmatprep.subr.bf16.mxu0 %v2096_v27  ;;  %755 = vmatprep.subr.bf16.mxu1 %v2111_v31 }
 0x156   : > { %715 = vmatpush1.bf16.msra.mxu0 %v2108_v30  ;;  %756 = vmatpush1.bf16.msra.mxu1 %v2122_v34 }
 0x157   : > { %716 = vmatprep.subr.bf16.mxu0 %v2115_v32  ;;  %757 = vmatprep.subr.bf16.mxu1 %v2127_v35 }
 0x15a   : > { %717 = vmatpush1.bf16.msra.mxu0 %v2119_v33  ;;  %758 = vmatpush1.bf16.msra.mxu1 %v2135_v37 }
 0x15b   : > { %718 = vmatprep.subr.bf16.mxu0 %v2131_v36  ;;  %759 = vmatprep.subr.bf16.mxu1 %v2143_v39 }
 0x15e   : > { %719 = vmatpush1.bf16.msra.mxu0 %v2140_v38  ;;  %760 = vmatpush1.bf16.msra.mxu1 %v2151_v41 }
 0x15f   : > { %720 = vmatprep.subr.bf16.mxu0 %v2147_v40  ;;  %761 = vmatprep.subr.bf16.mxu1 %v2159_v43 }
 0x162   : > { %721 = vmatpush1.bf16.msra.mxu0 %v2156_v42  ;;  %762 = vmatpush1.bf16.msra.mxu1 %v2167_v45 }
 0x163   : > { %722 = vmatprep.subr.bf16.mxu0 %v2163_v44  ;;  %763 = vmatprep.subr.bf16.mxu1 %v2175_v47 }
 0x166   : > { %723 = vmatpush1.bf16.msra.mxu0 %v2172_v46  ;;  %764 = vmatpush1.bf16.msra.mxu1 %v2180_v48 }
 0x167   : > { %826 = vmatprep.subr.bf16.mxu0 %v2058_v17  ;;  %867 = vmatprep.subr.bf16.mxu1 %v2069_v20 }
 0x21c   : > { %v623_v60 = vpop.f32.mrb[4].mxu0  ;;  %v664_v61 = vpop.f32.mrb[4].mxu1 }
 0x21d   : > { %v671_v62 = vadd.f32 %v623_v60, %v585_v57  ;;  %v625_v0 = vpop.f32.mrb[5].mxu0  ;;  %v666_v1 = vpop.f32.mrb[5].mxu1  ;;  %v673_v9 = vadd.f32 %v664_v61, %v587_v63 }
 0x21e   : > { %v672_v2 = vadd.f32 %v625_v0, %v586_v59  ;;  %v627_v3 = vpop.f32.mrb[6].mxu0  ;;  %v668_v4 = vpop.f32.mrb[6].mxu1  ;;  %v674_v11 = vadd.f32 %v666_v1, %v588_v10  ;;  %v1686_v0 = vld [vmem:[%s1540_s25 + $0x28] sm:$0xff] }
 0x21f   : > { %v675_v5 = vmul.f32 0.5, %v671_v62  ;;  %v628_v6 = vpop.f32.mrb[7].mxu0  ;;  %v669_v7 = vpop.f32.mrb[7].mxu1 }
 0x220   : > { %v679_v8 = vmul.f32 0.5, %v672_v2  ;;  %v684_v12 = vmul.f32 0.5, %v674_v11 }
 0x221   : > { %1821 = vtanh.f32 %v675_v5  ;;  %v706_v5 = vunpack.c.l.bf16 %v1686_v0 }
 0x222   : > { %1823 = vtanh.f32 %v679_v8 }
 0x223   : > { %1825 = vtanh.f32 %v673_v9 }
 0x224   : > { %1827 = vtanh.f32 %v684_v12 }
 0x22b   : > { %v1822_v13 = vpop.eup %1821 }
 0x22c   : > { %v1824_v14 = vpop.eup %1823  ;;  %v677_v15 = vmul.f32 0.5, %v1822_v13 }
 0x22d   : > { %v681_v50 = vmul.f32 0.5, %v1824_v14  ;;  %v1826_v52 = vpop.eup %1825 }
 0x22e   : > { %v678_v51 = vadd.f32 0.5, %v677_v15  ;;  %v1828_v57 = vpop.eup %1827 }
 0x22f   : > { %v682_v53 = vadd.f32 0.5, %v681_v50  ;;  %v686_v58 = vmul.f32 0.5, %v1828_v57  ;;  %v707_v50 = vunpack.c.h.bf16 %v1686_v0 }
 0x230   : > { %v689_v54 = vmul.f32 %v1826_v52, %v678_v51 }
 0x231   : > { %v688_v55 = vmul.f32 %v682_v53, %v2228_v49  ;;  %v687_v59 = vadd.f32 0.5, %v686_v58  ;;  %v1685_v49 = vld [vmem:[%s1540_s25 + $0x20] sm:$0xff] }
 0x232   : > { %v704_v63 = vunpack.c.l.bf16 %v1685_v49  ;;  %v705_v1 = vunpack.c.h.bf16 %v1685_v49 }
 0x233   : > { %v2274_v56 = vadd.f32 %v689_v54, %v688_v55 }
 0x235   : > { %1829 = vtanh.f32 %v2274_v56 }
 0x23f   : > { %v1830_v60 = vpop.eup %1829 }
 0x240   : > { %v692_v61 = vmul.f32 %v1830_v60, %v687_v59 }
 0x242   : > { %v693_v62 = vpack.c.bf16 %v692_v61, %v692_v61 }
 0x244   : > { %1683 = vst [vmem:[%s1536_s23 + $0x4] sm:$0xf] %v693_v62  ;;  %741 = vmatmul.mubr.bf16.vlgmr.msra.gmra.mrb[8].mxu0 %v693_v62  ;;  %782 = vmatmul.mubr.bf16.vlgmr.msra.gmra.mrb[8].mxu1 %v693_v62  ;;  %s1702_s23 = smul.u32 4294967216, %s1953_s11 }
 0x245   : > { %827 = vmatpush1.bf16.msra.mxu0 %v2061_v18  ;;  %868 = vmatpush1.bf16.msra.mxu1 %v2075_v22 }
 0x246   : > { %828 = vmatprep.subr.bf16.mxu0 %v2065_v19  ;;  %869 = vmatprep.subr.bf16.mxu1 %v2083_v24  ;;  %s1566_s24 = scalar_lea.vmem %s2225_s7, %s1702_s23 [#allocation4] }
 0x247   : > { %858 = vmatprep.mubr.bf16.mxu0 %v1963_v16  ;;  %899 = vmatprep.mubr.bf16.mxu1 %v1963_v16 }
 0x249   : > { %829 = vmatpush1.bf16.msra.mxu0 %v2072_v21  ;;  %870 = vmatpush1.bf16.msra.mxu1 %v2087_v25 }
 0x24a   : > { %830 = vmatprep.subr.bf16.mxu0 %v2079_v23  ;;  %871 = vmatprep.subr.bf16.mxu1 %v2099_v28 }
 0x24d   : > { %831 = vmatpush1.bf16.msra.mxu0 %v2092_v26  ;;  %872 = vmatpush1.bf16.msra.mxu1 %v2103_v29 }
 0x24e   : > { %832 = vmatprep.subr.bf16.mxu0 %v2096_v27  ;;  %873 = vmatprep.subr.bf16.mxu1 %v2111_v31 }
 0x251   : > { %833 = vmatpush1.bf16.msra.mxu0 %v2108_v30  ;;  %874 = vmatpush1.bf16.msra.mxu1 %v2122_v34 }
 0x252   : > { %834 = vmatprep.subr.bf16.mxu0 %v2115_v32  ;;  %875 = vmatprep.subr.bf16.mxu1 %v2127_v35 }
 0x255   : > { %835 = vmatpush1.bf16.msra.mxu0 %v2119_v33  ;;  %876 = vmatpush1.bf16.msra.mxu1 %v2135_v37 }
 0x256   : > { %836 = vmatprep.subr.bf16.mxu0 %v2131_v36  ;;  %877 = vmatprep.subr.bf16.mxu1 %v2143_v39 }
 0x259   : > { %837 = vmatpush1.bf16.msra.mxu0 %v2140_v38  ;;  %878 = vmatpush1.bf16.msra.mxu1 %v2151_v41 }
 0x25a   : > { %838 = vmatprep.subr.bf16.mxu0 %v2147_v40  ;;  %879 = vmatprep.subr.bf16.mxu1 %v2159_v43 }
 0x25d   : > { %839 = vmatpush1.bf16.msra.mxu0 %v2156_v42  ;;  %880 = vmatpush1.bf16.msra.mxu1 %v2167_v45 }
 0x25e   : > { %840 = vmatprep.subr.bf16.mxu0 %v2163_v44  ;;  %881 = vmatprep.subr.bf16.mxu1 %v2175_v47 }
 0x261   : > { %841 = vmatpush1.bf16.msra.mxu0 %v2172_v46  ;;  %882 = vmatpush1.bf16.msra.mxu1 %v2180_v48 }
 0x262   : > { %944 = vmatprep.subr.bf16.mxu0 %v2058_v17  ;;  %985 = vmatprep.subr.bf16.mxu1 %v2069_v20 }
 0x317   : > { %v742_v2 = vpop.f32.mrb[8].mxu0  ;;  %v783_v3 = vpop.f32.mrb[8].mxu1 }
 0x318   : > { %v790_v4 = vadd.f32 %v742_v2, %v704_v63  ;;  %v744_v6 = vpop.f32.mrb[9].mxu0  ;;  %v785_v7 = vpop.f32.mrb[9].mxu1  ;;  %v792_v15 = vadd.f32 %v783_v3, %v706_v5 }
 0x319   : > { %v791_v8 = vadd.f32 %v744_v6, %v705_v1  ;;  %v746_v9 = vpop.f32.mrb[10].mxu0  ;;  %v787_v10 = vpop.f32.mrb[10].mxu1  ;;  %v793_v51 = vadd.f32 %v785_v7, %v707_v50  ;;  %v1691_v6 = vld [vmem:[%s1547_s29 + $0x38] sm:$0xff] }
 0x31a   : > { %v794_v11 = vmul.f32 0.5, %v790_v4  ;;  %v747_v12 = vpop.f32.mrb[11].mxu0  ;;  %v788_v13 = vpop.f32.mrb[11].mxu1 }
 0x31b   : > { %v798_v14 = vmul.f32 0.5, %v791_v8  ;;  %v803_v52 = vmul.f32 0.5, %v793_v51 }
 0x31c   : > { %1831 = vtanh.f32 %v794_v11  ;;  %v824_v11 = vunpack.c.l.bf16 %v1691_v6 }
 0x31d   : > { %1833 = vtanh.f32 %v798_v14 }
 0x31e   : > { %1835 = vtanh.f32 %v792_v15 }
 0x31f   : > { %1837 = vtanh.f32 %v803_v52 }
 0x326   : > { %v1832_v53 = vpop.eup %1831 }
 0x327   : > { %v1834_v54 = vpop.eup %1833  ;;  %v796_v55 = vmul.f32 0.5, %v1832_v53 }
 0x328   : > { %v800_v57 = vmul.f32 0.5, %v1834_v54  ;;  %v1836_v59 = vpop.eup %1835 }
 0x329   : > { %v797_v58 = vadd.f32 0.5, %v796_v55  ;;  %v1838_v63 = vpop.eup %1837 }
 0x32a   : > { %v801_v60 = vadd.f32 0.5, %v800_v57  ;;  %v805_v0 = vmul.f32 0.5, %v1838_v63  ;;  %v825_v57 = vunpack.c.h.bf16 %v1691_v6 }
 0x32b   : > { %v808_v61 = vmul.f32 %v1836_v59, %v797_v58 }
 0x32c   : > { %v807_v62 = vmul.f32 %v801_v60, %v2274_v56  ;;  %v806_v1 = vadd.f32 0.5, %v805_v0  ;;  %v1690_v56 = vld [vmem:[%s1547_s29 + $0x30] sm:$0xff] }
 0x32d   : > { %v822_v5 = vunpack.c.l.bf16 %v1690_v56  ;;  %v823_v7 = vunpack.c.h.bf16 %v1690_v56 }
 0x32e   : > { %v2316_v49 = vadd.f32 %v808_v61, %v807_v62 }
 0x330   : > { %1839 = vtanh.f32 %v2316_v49 }
 0x33a   : > { %v1840_v2 = vpop.eup %1839 }
 0x33b   : > { %v811_v3 = vmul.f32 %v1840_v2, %v806_v1 }
 0x33d   : > { %v812_v4 = vpack.c.bf16 %v811_v3, %v811_v3 }
 0x33f   : > { %1688 = vst [vmem:[%s1544_s27 + $0x8] sm:$0xf] %v812_v4  ;;  %859 = vmatmul.mubr.bf16.vlgmr.msra.gmra.mrb[12].mxu0 %v812_v4  ;;  %900 = vmatmul.mubr.bf16.vlgmr.msra.gmra.mrb[12].mxu1 %v812_v4  ;;  %s1574_s27 = scalar_lea.vmem %s2225_s7, %s1707_s26 [#allocation4]  ;;  %s1710_s7 = smul.u32 4294967268, %s1953_s11 }
 0x340   : > { %945 = vmatpush1.bf16.msra.mxu0 %v2061_v18  ;;  %986 = vmatpush1.bf16.msra.mxu1 %v2075_v22 }
 0x341   : > { %946 = vmatprep.subr.bf16.mxu0 %v2065_v19  ;;  %987 = vmatprep.subr.bf16.mxu1 %v2083_v24  ;;  %s1578_s28 = scalar_lea.vmem %s2234_s17, %s1710_s7 [#allocation5] }
 0x342   : > { %976 = vmatprep.mubr.bf16.mxu0 %v1963_v16  ;;  %1017 = vmatprep.mubr.bf16.mxu1 %v1963_v16 }
 0x344   : > { %947 = vmatpush1.bf16.msra.mxu0 %v2072_v21  ;;  %988 = vmatpush1.bf16.msra.mxu1 %v2087_v25 }
 0x345   : > { %948 = vmatprep.subr.bf16.mxu0 %v2079_v23  ;;  %989 = vmatprep.subr.bf16.mxu1 %v2099_v28 }
 0x348   : > { %949 = vmatpush1.bf16.msra.mxu0 %v2092_v26  ;;  %990 = vmatpush1.bf16.msra.mxu1 %v2103_v29 }
 0x349   : > { %950 = vmatprep.subr.bf16.mxu0 %v2096_v27  ;;  %991 = vmatprep.subr.bf16.mxu1 %v2111_v31 }
 0x34c   : > { %951 = vmatpush1.bf16.msra.mxu0 %v2108_v30  ;;  %992 = vmatpush1.bf16.msra.mxu1 %v2122_v34 }
 0x34d   : > { %952 = vmatprep.subr.bf16.mxu0 %v2115_v32  ;;  %993 = vmatprep.subr.bf16.mxu1 %v2127_v35 }
 0x350   : > { %953 = vmatpush1.bf16.msra.mxu0 %v2119_v33  ;;  %994 = vmatpush1.bf16.msra.mxu1 %v2135_v37 }
 0x351   : > { %954 = vmatprep.subr.bf16.mxu0 %v2131_v36  ;;  %995 = vmatprep.subr.bf16.mxu1 %v2143_v39 }
 0x354   : > { %955 = vmatpush1.bf16.msra.mxu0 %v2140_v38  ;;  %996 = vmatpush1.bf16.msra.mxu1 %v2151_v41 }
 0x355   : > { %956 = vmatprep.subr.bf16.mxu0 %v2147_v40  ;;  %997 = vmatprep.subr.bf16.mxu1 %v2159_v43 }
 0x358   : > { %957 = vmatpush1.bf16.msra.mxu0 %v2156_v42  ;;  %998 = vmatpush1.bf16.msra.mxu1 %v2167_v45 }
 0x359   : > { %958 = vmatprep.subr.bf16.mxu0 %v2163_v44  ;;  %999 = vmatprep.subr.bf16.mxu1 %v2175_v47 }
 0x35c   : > { %959 = vmatpush1.bf16.msra.mxu0 %v2172_v46  ;;  %1000 = vmatpush1.bf16.msra.mxu1 %v2180_v48 }
 0x35d   : > { %1063 = vmatprep.subr.bf16.mxu0 %v2058_v17  ;;  %1104 = vmatprep.subr.bf16.mxu1 %v2069_v20 }
 0x412   : > { %v860_v8 = vpop.f32.mrb[12].mxu0  ;;  %v901_v9 = vpop.f32.mrb[12].mxu1 }
 0x413   : > { %v908_v10 = vadd.f32 %v860_v8, %v822_v5  ;;  %v862_v12 = vpop.f32.mrb[13].mxu0  ;;  %v903_v13 = vpop.f32.mrb[13].mxu1  ;;  %v910_v55 = vadd.f32 %v901_v9, %v824_v11 }
 0x414   : > { %v909_v14 = vadd.f32 %v862_v12, %v823_v7  ;;  %v864_v15 = vpop.f32.mrb[14].mxu0  ;;  %v905_v50 = vpop.f32.mrb[14].mxu1  ;;  %v911_v58 = vadd.f32 %v903_v13, %v825_v57 }
 0x415   : > { %v912_v51 = vmul.f32 0.5, %v908_v10  ;;  %v865_v52 = vpop.f32.mrb[15].mxu0  ;;  %v906_v53 = vpop.f32.mrb[15].mxu1 }
 0x416   : > { %v916_v54 = vmul.f32 0.5, %v909_v14  ;;  %v921_v59 = vmul.f32 0.5, %v911_v58 }
 0x417   : > { %1841 = vtanh.f32 %v912_v51 }
 0x418   : > { %1843 = vtanh.f32 %v916_v54 }
 0x419   : > { %1845 = vtanh.f32 %v910_v55 }
 0x41a   : > { %1847 = vtanh.f32 %v921_v59 }
 0x421   : > { %v1842_v60 = vpop.eup %1841 }
 0x422   : > { %v1844_v61 = vpop.eup %1843  ;;  %v914_v62 = vmul.f32 0.5, %v1842_v60 }
 0x423   : > { %v918_v63 = vmul.f32 0.5, %v1844_v61  ;;  %v1846_v1 = vpop.eup %1845 }
 0x424   : > { %v915_v0 = vadd.f32 0.5, %v914_v62  ;;  %v1848_v5 = vpop.eup %1847 }
 0x425   : > { %v919_v2 = vadd.f32 0.5, %v918_v63  ;;  %v923_v6 = vmul.f32 0.5, %v1848_v5 }
 0x426   : > { %v926_v3 = vmul.f32 %v1846_v1, %v915_v0 }
 0x427   : > { %v925_v4 = vmul.f32 %v919_v2, %v2316_v49  ;;  %v924_v7 = vadd.f32 0.5, %v923_v6 }
 0x429   : > { %v2358_v56 = vadd.f32 %v926_v3, %v925_v4 }
 0x42b   : > { %1849 = vtanh.f32 %v2358_v56 }
 0x435   : > { %v1850_v8 = vpop.eup %1849 }
 0x436   : > { %v929_v9 = vmul.f32 %v1850_v8, %v924_v7 }
 0x438   : > { %v930_v10 = vpack.c.bf16 %v929_v9, %v929_v9 }
 0x43a   : > { %1693 = vst [vmem:[%s1550_s4 + $0xc] sm:$0xf] %v930_v10  ;;  %977 = vmatmul.mubr.bf16.vlgmr.msra.gmra.mrb[16].mxu0 %v930_v10  ;;  %1018 = vmatmul.mubr.bf16.vlgmr.msra.gmra.mrb[16].mxu1 %v930_v10 }
 0x43b   : > { %1064 = vmatpush1.bf16.msra.mxu0 %v2061_v18  ;;  %1105 = vmatpush1.bf16.msra.mxu1 %v2075_v22  ;;  %v938_v18 = vld [vmem:[%s937_s8] sm:$0xff] }
 0x43c   : > { %1065 = vmatprep.subr.bf16.mxu0 %v2065_v19  ;;  %1106 = vmatprep.subr.bf16.mxu1 %v2083_v24  ;;  %v940_v19 = vunpack.c.l.bf16 %v938_v18 }
 0x43d   : > { %1095 = vmatprep.mubr.bf16.mxu0 %v1963_v16  ;;  %1136 = vmatprep.mubr.bf16.mxu1 %v1963_v16 }
 0x43f   : > { %1066 = vmatpush1.bf16.msra.mxu0 %v2072_v21  ;;  %1107 = vmatpush1.bf16.msra.mxu1 %v2087_v25  ;;  %v939_v21 = vld [vmem:[%s937_s8 + $0x8] sm:$0xff] }
 0x440   : > { %1067 = vmatprep.subr.bf16.mxu0 %v2079_v23  ;;  %1108 = vmatprep.subr.bf16.mxu1 %v2099_v28  ;;  %v941_v23 = vunpack.c.h.bf16 %v938_v18  ;;  %v942_v13 = vunpack.c.l.bf16 %v939_v21  ;;  %v943_v57 = vunpack.c.h.bf16 %v939_v21  ;;  %v2423_v21 = vld [vmem:[%s2055_s3 + $0x20] ss:$16 sps:$4 sm:$0xff]  }
 0x443   : > { %1068 = vmatpush1.bf16.msra.mxu0 %v2092_v26  ;;  %1109 = vmatpush1.bf16.msra.mxu1 %v2103_v29 }
 0x444   : > { %1069 = vmatprep.subr.bf16.mxu0 %v2096_v27  ;;  %1110 = vmatprep.subr.bf16.mxu1 %v2111_v31 }
 0x447   : > { %1070 = vmatpush1.bf16.msra.mxu0 %v2108_v30  ;;  %1111 = vmatpush1.bf16.msra.mxu1 %v2122_v34 }
 0x448   : > { %1071 = vmatprep.subr.bf16.mxu0 %v2115_v32  ;;  %1112 = vmatprep.subr.bf16.mxu1 %v2127_v35 }
 0x44b   : > { %1072 = vmatpush1.bf16.msra.mxu0 %v2119_v33  ;;  %1113 = vmatpush1.bf16.msra.mxu1 %v2135_v37 }
 0x44c   : > { %1073 = vmatprep.subr.bf16.mxu0 %v2131_v36  ;;  %1114 = vmatprep.subr.bf16.mxu1 %v2143_v39 }
 0x44f   : > { %1074 = vmatpush1.bf16.msra.mxu0 %v2140_v38  ;;  %1115 = vmatpush1.bf16.msra.mxu1 %v2151_v41 }
 0x450   : > { %1075 = vmatprep.subr.bf16.mxu0 %v2147_v40  ;;  %1116 = vmatprep.subr.bf16.mxu1 %v2159_v43 }
 0x453   : > { %1076 = vmatpush1.bf16.msra.mxu0 %v2156_v42  ;;  %1117 = vmatpush1.bf16.msra.mxu1 %v2167_v45 }
 0x454   : > { %1077 = vmatprep.subr.bf16.mxu0 %v2163_v44  ;;  %1118 = vmatprep.subr.bf16.mxu1 %v2175_v47 }
 0x457   : > { %1078 = vmatpush1.bf16.msra.mxu0 %v2172_v46  ;;  %1119 = vmatpush1.bf16.msra.mxu1 %v2180_v48 }
 0x458   : > { %1182 = vmatprep.subr.bf16.mxu0 %v2058_v17  ;;  %1223 = vmatprep.subr.bf16.mxu1 %v2069_v20 }
 0x50d   : > { %v978_v49 = vpop.f32.mrb[16].mxu0  ;;  %v1019_v11 = vpop.f32.mrb[16].mxu1 }
 0x50e   : > { %v1026_v12 = vadd.f32 %v978_v49, %v940_v19  ;;  %v980_v14 = vpop.f32.mrb[17].mxu0  ;;  %v1021_v15 = vpop.f32.mrb[17].mxu1  ;;  %v1028_v55 = vadd.f32 %v1019_v11, %v942_v13  ;;  %v2416_v19 = vld [vmem:[%s2055_s3 + $0x24] ss:$16 sps:$4 sm:$0xff]  }
 0x50f   : > { %v1027_v50 = vadd.f32 %v980_v14, %v941_v23  ;;  %v982_v51 = vpop.f32.mrb[18].mxu0  ;;  %v1023_v52 = vpop.f32.mrb[18].mxu1  ;;  %v1029_v58 = vadd.f32 %v1021_v15, %v943_v57  ;;  %v2428_v23 = vld [vmem:[%s2055_s3 + $0x44] ss:$16 sps:$4 sm:$0xff]   ;;  %v1898_v57 = vld [vmem:[%s2055_s3 + $0x2c] ss:$16 sps:$4 sm:$0xff]  }
 0x510   : > { %v1030_v17 = vmul.f32 0.5, %v1026_v12  ;;  %v983_v53 = vpop.f32.mrb[19].mxu0  ;;  %v1024_v20 = vpop.f32.mrb[19].mxu1 }
 0x511   : > { %v1034_v54 = vmul.f32 0.5, %v1027_v50  ;;  %v1039_v59 = vmul.f32 0.5, %v1029_v58  ;;  %v1899_v58 = vld [vmem:[%s2055_s3 + $0x28] ss:$16 sps:$4 sm:$0xff]  }
 0x512   : > { %1851 = vtanh.f32 %v1030_v17 }
 0x513   : > { %1853 = vtanh.f32 %v1034_v54 }
 0x514   : > { %1855 = vtanh.f32 %v1028_v55  ;;  %v1897_v55 = vld [vmem:[%s2055_s3 + $0x8] ss:$16 sps:$4 sm:$0xff]  }
 0x515   : > { %1857 = vtanh.f32 %v1039_v59  ;;  %v1900_v59 = vld [vmem:[%s2055_s3 + $0x4c] ss:$16 sps:$4 sm:$0xff]  }
 0x51c   : > { %v1852_v60 = vpop.eup %1851 }
 0x51d   : > { %v1854_v61 = vpop.eup %1853  ;;  %v1032_v62 = vmul.f32 0.5, %v1852_v60  ;;  %v1901_v60 = vld [vmem:[%s2055_s3 + $0x40] ss:$16 sps:$4 sm:$0xff]  }
 0x51e   : > { %v1036_v63 = vmul.f32 0.5, %v1854_v61  ;;  %v1856_v1 = vpop.eup %1855  ;;  %v1902_v61 = vld [vmem:[%s2055_s3 + $0x48] ss:$16 sps:$4 sm:$0xff]  }
 0x51f   : > { %v1033_v0 = vadd.f32 0.5, %v1032_v62  ;;  %v1858_v6 = vpop.eup %1857  ;;  %v1903_v62 = vld [vmem:[%s2055_s3 + $0x64] ss:$16 sps:$4 sm:$0xff]  }
 0x520   : > { %v1037_v2 = vadd.f32 0.5, %v1036_v63  ;;  %v1041_v7 = vmul.f32 0.5, %v1858_v6  ;;  %v1905_v63 = vld [vmem:[%s2055_s3 + $0x60] ss:$16 sps:$4 sm:$0xff]   ;;  %v1912_v6 = vld [vmem:[%s2055_s3 + $0xac] ss:$16 sps:$4 sm:$0xff]  }
 0x521   : > { %v1044_v3 = vmul.f32 %v1856_v1, %v1033_v0  ;;  %v1906_v0 = vld [vmem:[%s2055_s3 + $0x68] ss:$16 sps:$4 sm:$0xff]   ;;  %v1907_v1 = vld [vmem:[%s2055_s3 + $0x84] ss:$16 sps:$4 sm:$0xff]  }
 0x522   : > { %v1043_v4 = vmul.f32 %v1037_v2, %v2358_v56  ;;  %v1042_v8 = vadd.f32 0.5, %v1041_v7  ;;  %v2411_v56 = vld [vmem:[%s2055_s3] ss:$16 sps:$4 sm:$0xff]   ;;  %v1908_v2 = vld [vmem:[%s2055_s3 + $0x8c] ss:$16 sps:$4 sm:$0xff]  }
 0x523   : > { %v1913_v7 = vld [vmem:[%s2055_s3 + $0xa0] ss:$16 sps:$4 sm:$0xff]  }
 0x524   : > { %v2404_v5 = vadd.f32 %v1044_v3, %v1043_v4  ;;  %v1909_v3 = vld [vmem:[%s2055_s3 + $0x80] ss:$16 sps:$4 sm:$0xff]   ;;  %v1910_v4 = vld [vmem:[%s2055_s3 + $0x88] ss:$16 sps:$4 sm:$0xff]  }
 0x526   : > { %1859 = vtanh.f32 %v2404_v5 }
 0x530   : > { %v1860_v9 = vpop.eup %1859 }
 0x531   : > { %v1047_v10 = vmul.f32 %v1860_v9, %v1042_v8  ;;  %v1914_v8 = vld [vmem:[%s2055_s3 + $0xa8] ss:$16 sps:$4 sm:$0xff]   ;;  %v1915_v9 = vld [vmem:[%s2055_s3 + $0xc4] ss:$16 sps:$4 sm:$0xff]  }
 0x533   : > { %v1048_v18 = vpack.c.bf16 %v1047_v10, %v1047_v10  ;;  %v1916_v10 = vld [vmem:[%s2055_s3 + $0xcc] ss:$16 sps:$4 sm:$0xff]  }
 0x535   : > { %1051 = vst [vmem:[%s1050_s16] sm:$0xf] %v1048_v18  ;;  %1096 = vmatmul.mubr.bf16.vlgmr.msra.gmra.mrb[20].mxu0 %v1048_v18  ;;  %1137 = vmatmul.mubr.bf16.vlgmr.msra.gmra.mrb[20].mxu1 %v1048_v18  ;;  %v1917_v18 = vld [vmem:[%s2055_s3 + $0xc0] ss:$16 sps:$4 sm:$0xff]  }
 0x536   : > { %1183 = vmatpush1.bf16.msra.mxu0 %v2411_v56  ;;  %1224 = vmatpush1.bf16.msra.mxu1 %v2075_v22  ;;  %v1895_v22 = vld [vmem:[%s2055_s3 + $0x4] ss:$16 sps:$4 sm:$0xff]  }
 0x537   : > { %1184 = vmatprep.subr.bf16.mxu0 %v2416_v19  ;;  %1225 = vmatprep.subr.bf16.mxu1 %v2083_v24  ;;  %v1896_v24 = vld [vmem:[%s2055_s3 + $0xc] ss:$16 sps:$4 sm:$0xff]  }
 0x538   : > { %1214 = vmatprep.mubr.bf16.mxu0 %v1963_v16  ;;  %1255 = vmatprep.mubr.bf16.mxu1 %v1963_v16 }
 0x53a   : > { %1185 = vmatpush1.bf16.msra.mxu0 %v2423_v21  ;;  %1226 = vmatpush1.bf16.msra.mxu1 %v2087_v25  ;;  %v1698_v25 = vld [vmem:[%s1558_s9 + $0x50] sm:$0xff] }
 0x53b   : > { %1186 = vmatprep.subr.bf16.mxu0 %v2428_v23  ;;  %1227 = vmatprep.subr.bf16.mxu1 %v2099_v28  ;;  %v1060_v28 = vunpack.c.h.bf16 %v1698_v25 }
 0x53e   : > { %1187 = vmatpush1.bf16.msra.mxu0 %v2092_v26  ;;  %1228 = vmatpush1.bf16.msra.mxu1 %v2103_v29  ;;  %v1059_v26 = vunpack.c.l.bf16 %v1698_v25 }
 0x53f   : > { %1188 = vmatprep.subr.bf16.mxu0 %v2096_v27  ;;  %1229 = vmatprep.subr.bf16.mxu1 %v2111_v31  ;;  %v1699_v27 = vld [vmem:[%s1558_s9 + $0x58] sm:$0xff] }
 0x542   : > { %1189 = vmatpush1.bf16.msra.mxu0 %v2108_v30  ;;  %1230 = vmatpush1.bf16.msra.mxu1 %v2122_v34 }
 0x543   : > { %1190 = vmatprep.subr.bf16.mxu0 %v2115_v32  ;;  %1231 = vmatprep.subr.bf16.mxu1 %v2127_v35  ;;  %v1061_v32 = vunpack.c.l.bf16 %v1699_v27 }
 0x546   : > { %1191 = vmatpush1.bf16.msra.mxu0 %v2119_v33  ;;  %1232 = vmatpush1.bf16.msra.mxu1 %v2135_v37 }
 0x547   : > { %1192 = vmatprep.subr.bf16.mxu0 %v2131_v36  ;;  %1233 = vmatprep.subr.bf16.mxu1 %v2143_v39 }
 0x54a   : > { %1193 = vmatpush1.bf16.msra.mxu0 %v2140_v38  ;;  %1234 = vmatpush1.bf16.msra.mxu1 %v2151_v41 }
 0x54b   : > { %1194 = vmatprep.subr.bf16.mxu0 %v2147_v40  ;;  %1235 = vmatprep.subr.bf16.mxu1 %v2159_v43  ;;  %v1062_v43 = vunpack.c.h.bf16 %v1699_v27 }
 0x54e   : > { %1195 = vmatpush1.bf16.msra.mxu0 %v2156_v42  ;;  %1236 = vmatpush1.bf16.msra.mxu1 %v2167_v45 }
 0x54f   : > { %1196 = vmatprep.subr.bf16.mxu0 %v2163_v44  ;;  %1237 = vmatprep.subr.bf16.mxu1 %v2175_v47 }
 0x552   : > { %1197 = vmatpush1.bf16.msra.mxu0 %v2172_v46  ;;  %1238 = vmatpush1.bf16.msra.mxu1 %v2180_v48 }
 0x553   : > { %1301 = vmatprep.subr.bf16.mxu0 %v1895_v22  ;;  %1342 = vmatprep.subr.bf16.mxu1 %v1896_v24  ;;  %v1922_v22 = vld [vmem:[%s2055_s3 + $0xe8] ss:$16 sps:$4 sm:$0xff]   ;;  %v1703_v24 = vld [vmem:[%s1566_s24 + $0x60] sm:$0xff] }
 0x554   : > { %v1178_v25 = vunpack.c.l.bf16 %v1703_v24  ;;  %v1179_v27 = vunpack.c.h.bf16 %v1703_v24 }
 0x608   : > { %v1097_v29 = vpop.f32.mrb[20].mxu0  ;;  %v1138_v30 = vpop.f32.mrb[20].mxu1 }
 0x609   : > { %v1145_v31 = vadd.f32 %v1097_v29, %v1059_v26  ;;  %v1099_v33 = vpop.f32.mrb[21].mxu0  ;;  %v1140_v34 = vpop.f32.mrb[21].mxu1  ;;  %v1147_v42 = vadd.f32 %v1138_v30, %v1061_v32  ;;  %v1704_v26 = vld [vmem:[%s1566_s24 + $0x68] sm:$0xff] }
 0x60a   : > { %v1146_v35 = vadd.f32 %v1099_v33, %v1060_v28  ;;  %v1101_v36 = vpop.f32.mrb[22].mxu0  ;;  %v1142_v37 = vpop.f32.mrb[22].mxu1  ;;  %v1148_v44 = vadd.f32 %v1140_v34, %v1062_v43 }
 0x60b   : > { %v1149_v38 = vmul.f32 0.5, %v1145_v31  ;;  %v1102_v39 = vpop.f32.mrb[23].mxu0  ;;  %v1143_v40 = vpop.f32.mrb[23].mxu1  ;;  %v1180_v31 = vunpack.c.l.bf16 %v1704_v26 }
 0x60c   : > { %v1153_v41 = vmul.f32 0.5, %v1146_v35  ;;  %v1158_v45 = vmul.f32 0.5, %v1148_v44 }
 0x60d   : > { %1861 = vtanh.f32 %v1149_v38 }
 0x60e   : > { %1863 = vtanh.f32 %v1153_v41 }
 0x60f   : > { %1865 = vtanh.f32 %v1147_v42  ;;  %v1181_v42 = vunpack.c.h.bf16 %v1704_v26 }
 0x610   : > { %1867 = vtanh.f32 %v1158_v45 }
 0x617   : > { %v1862_v46 = vpop.eup %1861 }
 0x618   : > { %v1864_v47 = vpop.eup %1863  ;;  %v1151_v48 = vmul.f32 0.5, %v1862_v46 }
 0x619   : > { %v1155_v49 = vmul.f32 0.5, %v1864_v47  ;;  %v1866_v12 = vpop.eup %1865 }
 0x61a   : > { %v1152_v11 = vadd.f32 0.5, %v1151_v48  ;;  %v1868_v51 = vpop.eup %1867 }
 0x61b   : > { %v1156_v13 = vadd.f32 0.5, %v1155_v49  ;;  %v1160_v52 = vmul.f32 0.5, %v1868_v51 }
 0x61c   : > { %v1163_v14 = vmul.f32 %v1866_v12, %v1152_v11 }
 0x61d   : > { %v1162_v15 = vmul.f32 %v1156_v13, %v2404_v5  ;;  %v1161_v17 = vadd.f32 0.5, %v1160_v52  ;;  %v1911_v5 = vld [vmem:[%s2055_s3 + $0xa4] ss:$16 sps:$4 sm:$0xff]  }
 0x61f   : > { %v2459_v50 = vadd.f32 %v1163_v14, %v1162_v15 }
 0x621   : > { %1869 = vtanh.f32 %v2459_v50 }
 0x62b   : > { %v1870_v53 = vpop.eup %1869 }
 0x62c   : > { %v1166_v20 = vmul.f32 %v1870_v53, %v1161_v17 }
 0x62e   : > { %v1167_v54 = vpack.c.bf16 %v1166_v20, %v1166_v20 }
 0x630   : > { %1701 = vst [vmem:[%s1562_s22 + $0x14] sm:$0xf] %v1167_v54  ;;  %1215 = vmatmul.mubr.bf16.vlgmr.msra.gmra.mrb[24].mxu0 %v1167_v54  ;;  %1256 = vmatmul.mubr.bf16.vlgmr.msra.gmra.mrb[24].mxu1 %v1167_v54 }
 0x631   : > { %1302 = vmatpush1.bf16.msra.mxu0 %v2411_v56  ;;  %1343 = vmatpush1.bf16.msra.mxu1 %v1897_v55  ;;  %v1918_v56 = vld [vmem:[%s2055_s3 + $0xc8] ss:$16 sps:$4 sm:$0xff]   ;;  %v1708_v55 = vld [vmem:[%s1574_s27 + $0x70] sm:$0xff] }
 0x632   : > { %1303 = vmatprep.subr.bf16.mxu0 %v2416_v19  ;;  %1344 = vmatprep.subr.bf16.mxu1 %v1898_v57  ;;  %v1919_v19 = vld [vmem:[%s2055_s3 + $0xe4] ss:$16 sps:$4 sm:$0xff]   ;;  %v1297_v57 = vunpack.c.l.bf16 %v1708_v55 }
 0x633   : > { %1333 = vmatprep.mubr.bf16.mxu0 %v1963_v16  ;;  %1374 = vmatprep.mubr.bf16.mxu1 %v1963_v16  ;;  %v1904_v16 = vld [vmem:[%s2055_s3 + $0x6c] ss:$16 sps:$4 sm:$0xff]  }
 0x635   : > { %1304 = vmatpush1.bf16.msra.mxu0 %v2423_v21  ;;  %1345 = vmatpush1.bf16.msra.mxu1 %v1899_v58  ;;  %v1920_v21 = vld [vmem:[%s2055_s3 + $0xec] ss:$16 sps:$4 sm:$0xff]  }
 0x636   : > { %1305 = vmatprep.subr.bf16.mxu0 %v2428_v23  ;;  %1346 = vmatprep.subr.bf16.mxu1 %v1900_v59  ;;  %v1921_v23 = vld [vmem:[%s2055_s3 + $0xe0] ss:$16 sps:$4 sm:$0xff]   ;;  %s1705_s3 = smul.u32 4294967276, %s1953_s11  ;;  %v1709_v58 = vld [vmem:[%s1574_s27 + $0x78] sm:$0xff]  ;;  %v1298_v59 = vunpack.c.h.bf16 %v1708_v55 }
 0x638   : > { %s1570_s25 = scalar_lea.vmem %s2234_s17, %s1705_s3 [#allocation5] }
 0x639   : > { %1306 = vmatpush1.bf16.msra.mxu0 %v1901_v60  ;;  %1347 = vmatpush1.bf16.msra.mxu1 %v1902_v61 }
 0x63a   : > { %1307 = vmatprep.subr.bf16.mxu0 %v1903_v62  ;;  %1348 = vmatprep.subr.bf16.mxu1 %v1904_v16  ;;  %v1299_v62 = vunpack.c.l.bf16 %v1709_v58 }
 0x63d   : > { %1308 = vmatpush1.bf16.msra.mxu0 %v1905_v63  ;;  %1349 = vmatpush1.bf16.msra.mxu1 %v1906_v0 }
 0x63e   : > { %1309 = vmatprep.subr.bf16.mxu0 %v1907_v1  ;;  %1350 = vmatprep.subr.bf16.mxu1 %v1908_v2 }
 0x641   : > { %1310 = vmatpush1.bf16.msra.mxu0 %v1909_v3  ;;  %1351 = vmatpush1.bf16.msra.mxu1 %v1910_v4 }
 0x642   : > { %1311 = vmatprep.subr.bf16.mxu0 %v1911_v5  ;;  %1352 = vmatprep.subr.bf16.mxu1 %v1912_v6 }
 0x645   : > { %1312 = vmatpush1.bf16.msra.mxu0 %v1913_v7  ;;  %1353 = vmatpush1.bf16.msra.mxu1 %v1914_v8  ;;  %v1300_v8 = vunpack.c.h.bf16 %v1709_v58 }
 0x646   : > { %1313 = vmatprep.subr.bf16.mxu0 %v1915_v9  ;;  %1354 = vmatprep.subr.bf16.mxu1 %v1916_v10 }
 0x649   : > { %1314 = vmatpush1.bf16.msra.mxu0 %v1917_v18  ;;  %1355 = vmatpush1.bf16.msra.mxu1 %v1918_v56 }
 0x64a   : > { %1315 = vmatprep.subr.bf16.mxu0 %v1919_v19  ;;  %1356 = vmatprep.subr.bf16.mxu1 %v1920_v21 }
 0x64d   : > { %1316 = vmatpush1.bf16.msra.mxu0 %v1921_v23  ;;  %1357 = vmatpush1.bf16.msra.mxu1 %v1922_v22 }
 0x703   : > { %v1216_v28 = vpop.f32.mrb[24].mxu0  ;;  %v1257_v29 = vpop.f32.mrb[24].mxu1 }
 0x704   : > { %v1264_v30 = vadd.f32 %v1216_v28, %v1178_v25  ;;  %v1218_v32 = vpop.f32.mrb[25].mxu0  ;;  %v1259_v33 = vpop.f32.mrb[25].mxu1  ;;  %v1266_v41 = vadd.f32 %v1257_v29, %v1180_v31 }
 0x705   : > { %v1265_v34 = vadd.f32 %v1218_v32, %v1179_v27  ;;  %v1220_v35 = vpop.f32.mrb[26].mxu0  ;;  %v1261_v36 = vpop.f32.mrb[26].mxu1  ;;  %v1267_v43 = vadd.f32 %v1259_v33, %v1181_v42 }
 0x706   : > { %v1268_v37 = vmul.f32 0.5, %v1264_v30  ;;  %v1221_v38 = vpop.f32.mrb[27].mxu0  ;;  %v1262_v39 = vpop.f32.mrb[27].mxu1 }
 0x707   : > { %v1272_v40 = vmul.f32 0.5, %v1265_v34  ;;  %v1277_v44 = vmul.f32 0.5, %v1267_v43 }
 0x708   : > { %1871 = vtanh.f32 %v1268_v37 }
 0x709   : > { %1873 = vtanh.f32 %v1272_v40 }
 0x70a   : > { %1875 = vtanh.f32 %v1266_v41 }
 0x70b   : > { %1877 = vtanh.f32 %v1277_v44 }
 0x712   : > { %v1872_v45 = vpop.eup %1871 }
 0x713   : > { %v1874_v46 = vpop.eup %1873  ;;  %v1270_v47 = vmul.f32 0.5, %v1872_v45 }
 0x714   : > { %v1274_v48 = vmul.f32 0.5, %v1874_v46  ;;  %v1876_v11 = vpop.eup %1875 }
 0x715   : > { %v1271_v49 = vadd.f32 0.5, %v1270_v47  ;;  %v1878_v51 = vpop.eup %1877 }
 0x716   : > { %v1275_v12 = vadd.f32 0.5, %v1274_v48  ;;  %v1279_v52 = vmul.f32 0.5, %v1878_v51 }
 0x717   : > { %v1282_v13 = vmul.f32 %v1876_v11, %v1271_v49 }
 0x718   : > { %v1281_v14 = vmul.f32 %v1275_v12, %v2459_v50  ;;  %v1280_v17 = vadd.f32 0.5, %v1279_v52 }
 0x71a   : > { %v1283_v15 = vadd.f32 %v1282_v13, %v1281_v14 }
 0x71c   : > { %1879 = vtanh.f32 %v1283_v15 }
 0x726   : > { %v1880_v53 = vpop.eup %1879 }
 0x727   : > { %v1285_v20 = vmul.f32 %v1880_v53, %v1280_v17 }
 0x729   : > { %v1286_v54 = vpack.c.bf16 %v1285_v20, %v1285_v20 }
 0x72b   : > { %1706 = vst [vmem:[%s1570_s25 + $0x18] sm:$0xf] %v1286_v54  ;;  %1334 = vmatmul.mubr.bf16.vlgmr.msra.gmra.mrb[28].mxu0 %v1286_v54  ;;  %1375 = vmatmul.mubr.bf16.vlgmr.msra.gmra.mrb[28].mxu1 %v1286_v54 }
 0x7fe   : > { %v1335_v50 = vpop.f32.mrb[28].mxu0  ;;  %v1376_v60 = vpop.f32.mrb[28].mxu1 }
 0x7ff   : > { %v1383_v61 = vadd.f32 %v1335_v50, %v1297_v57  ;;  %v1337_v16 = vpop.f32.mrb[29].mxu0  ;;  %v1378_v63 = vpop.f32.mrb[29].mxu1  ;;  %v1385_v7 = vadd.f32 %v1376_v60, %v1299_v62 }
 0x800   : > { %v1384_v0 = vadd.f32 %v1337_v16, %v1298_v59  ;;  %v1339_v1 = vpop.f32.mrb[30].mxu0  ;;  %v1380_v2 = vpop.f32.mrb[30].mxu1  ;;  %v1386_v9 = vadd.f32 %v1378_v63, %v1300_v8 }
 0x801   : > { %v1387_v3 = vmul.f32 0.5, %v1383_v61  ;;  %v1340_v4 = vpop.f32.mrb[31].mxu0  ;;  %v1381_v5 = vpop.f32.mrb[31].mxu1 }
 0x802   : > { %v1391_v6 = vmul.f32 0.5, %v1384_v0  ;;  %v1396_v10 = vmul.f32 0.5, %v1386_v9 }
 0x803   : > { %1881 = vtanh.f32 %v1387_v3 }
 0x804   : > { %1883 = vtanh.f32 %v1391_v6 }
 0x805   : > { %1885 = vtanh.f32 %v1385_v7 }
 0x806   : > { %1887 = vtanh.f32 %v1396_v10 }
 0x80d   : > { %v1882_v18 = vpop.eup %1881 }
 0x80e   : > { %v1884_v56 = vpop.eup %1883  ;;  %v1389_v19 = vmul.f32 0.5, %v1882_v18 }
 0x80f   : > { %v1393_v21 = vmul.f32 0.5, %v1884_v56  ;;  %v1886_v22 = vpop.eup %1885 }
 0x810   : > { %v1390_v23 = vadd.f32 0.5, %v1389_v19  ;;  %v1888_v28 = vpop.eup %1887 }
 0x811   : > { %v1394_v24 = vadd.f32 0.5, %v1393_v21  ;;  %v1398_v29 = vmul.f32 0.5, %v1888_v28 }
 0x812   : > { %v1401_v25 = vmul.f32 %v1886_v22, %v1390_v23 }
 0x813   : > { %v1400_v26 = vmul.f32 %v1394_v24, %v1283_v15  ;;  %v1399_v30 = vadd.f32 0.5, %v1398_v29 }
 0x815   : > { %v1402_v27 = vadd.f32 %v1401_v25, %v1400_v26 }
 0x817   : > { %1889 = vtanh.f32 %v1402_v27 }
 0x820   : > { %1417 = sbr.rel (!%p2015_p6) target bundleno = 2099 (0x833), region = 59 }
 0x821   : > { %v1890_v31 = vpop.eup %1889 }
 0x822   : > { %v1404_v32 = vmul.f32 %v1890_v31, %v1399_v30 }
 0x824   : > { %v1405_v33 = vpack.c.bf16 %v1404_v32, %v1404_v32 }
 0x826   : > { %1711 = vst [vmem:[%s1578_s28 + $0x1c] sm:$0xf] %v1405_v33 }
 0x82d   : > { %v1442_v34 = vld [vmem:[%s2234_s17] sm:$0xf]  ;;  %v1444_v35 = vld [vmem:[%s2234_s17 + $0x4] sm:$0xf]  ;;  %v1446_v36 = vld [vmem:[%s2234_s17 + $0x8] sm:$0xf] }
 0x82e   : > { %1443 = vst [vmem:[%s1426_s5] sm:$0xf] %v1442_v34  ;;  %1445 = vst [vmem:[%s1426_s5 + $0x8] sm:$0xf] %v1444_v35  ;;  %v1448_v37 = vld [vmem:[%s2234_s17 + $0xc] sm:$0xf] }
 0x82f   : > { %1447 = vst [vmem:[%s1426_s5 + $0x10] sm:$0xf] %v1446_v36  ;;  %v1450_v38 = vld [vmem:[%s2234_s17 + $0x10] sm:$0xf]  ;;  %v1452_v39 = vld [vmem:[%s2234_s17 + $0x14] sm:$0xf] }
 0x830   : > { %1449 = vst [vmem:[%s1426_s5 + $0x18] sm:$0xf] %v1448_v37  ;;  %1451 = vst [vmem:[%s1426_s5 + $0x20] sm:$0xf] %v1450_v38  ;;  %v1454_v40 = vld [vmem:[%s2234_s17 + $0x18] sm:$0xf] }
 0x831   : > { %1453 = vst [vmem:[%s1426_s5 + $0x28] sm:$0xf] %v1452_v39  ;;  %v1456_v41 = vld [vmem:[%s2234_s17 + $0x1c] sm:$0xf]  ;;  %1455 = vst [vmem:[%s1426_s5 + $0x30] sm:$0xf] %v1454_v40 }
 0x832   : > { %1457 = vst [vmem:[%s1426_s5 + $0x38] sm:$0xf] %v1456_v41 }
 0x833 PF: > { %s12_s13 = sadd.s32 1, %s1961_s13   ;;  %s2539_s9 = smov %s1949_s10 }
 0x834   : > { %p9_p12 = scmp.ge.s32.totalorder %s12_s13, 4   ;;  %s2540_s10 = smov %s2020_s19 }
 0x835   : > { %s2541_s11 = smov %s1957_s12  ;;  %s2542_s12 = smov %s2544_s14 }
 0x836   :  { %11 = sbr.rel (!%p9_p12) target bundleno = 3 (0x3), region = 150 }

// kernel: binary_classifier_forward.7
= control target key start
LH: loop header
LB: loop body
LE: loop exit
PB: predicated region body
PF: predicated region fallthrough
CT: control target
= control target key end

     0   :  { %s2279_s1 = inlined_call_operand.vmem [shape: bf16[256,1024], index: 1, kind: input, shape index: {}]   ;;  %s2280_s0 = inlined_call_operand.vmem [shape: bf16[64,256], index: 0, kind: input, shape index: {}]   ;;  %s2281_s2 = inlined_call_operand.vmem [shape: f32[1,1024], index: 2, kind: input, shape index: {}]   ;;  %s2282_s3 = inlined_call_operand.vmem [shape: bf16[64,1024], index: 3, kind: output, shape index: {}]  }
   0x1   :  { %v22_v0 = vld [vmem:[%s2279_s1] sm:$0xff]  ;;  %v23_v2 = vld [vmem:[%s2279_s1 + $0x8] sm:$0xff] }
   0x2   :  { %v26_v1 = vld [vmem:[%s2279_s1 + $0x20] sm:$0xff]  ;;  %v27_v4 = vld [vmem:[%s2279_s1 + $0x28] sm:$0xff] }
   0x3   :  { %v1401_v3 = vcombine.high %v22_v0, %v26_v1  ;;  %v1400_v5 = vcombine.low %v22_v0, %v26_v1  ;;  %v30_v6 = vld [vmem:[%s2279_s1 + $0x40] sm:$0xff]  ;;  %v1403_v8 = vcombine.high %v23_v2, %v27_v4  ;;  %v1402_v9 = vcombine.low %v23_v2, %v27_v4  ;;  %v31_v11 = vld [vmem:[%s2279_s1 + $0x48] sm:$0xff] }
   0x4   :  { %v34_v7 = vld [vmem:[%s2279_s1 + $0x60] sm:$0xff]  ;;  %v35_v12 = vld [vmem:[%s2279_s1 + $0x68] sm:$0xff] }
   0x5   :  { %v1409_v10 = vcombine.high %v30_v6, %v34_v7  ;;  %v38_v13 = vld [vmem:[%s2279_s1 + $0x80] sm:$0xff]  ;;  %872 = vmatprep.subr.bf16.mxu0 %v1401_v3  ;;  %v1411_v14 = vcombine.high %v31_v11, %v35_v12  ;;  %v39_v16 = vld [vmem:[%s2279_s1 + $0x88] sm:$0xff]  ;;  %945 = vmatprep.subr.bf16.mxu1 %v1403_v8  ;;  %v1408_v18 = vcombine.low %v30_v6, %v34_v7 }
   0x6   :  { %v42_v15 = vld [vmem:[%s2279_s1 + $0xa0] sm:$0xff]  ;;  %v43_v17 = vld [vmem:[%s2279_s1 + $0xa8] sm:$0xff]  ;;  %873 = vmatpush1.bf16.msra.mxu0 %v1400_v5  ;;  %946 = vmatpush1.bf16.msra.mxu1 %v1402_v9  ;;  %v1410_v19 = vcombine.low %v31_v11, %v35_v12 }
   0x7   :  { %874 = vmatprep.subr.bf16.mxu0 %v1409_v10  ;;  %v1417_v20 = vcombine.high %v38_v13, %v42_v15  ;;  %947 = vmatprep.subr.bf16.mxu1 %v1411_v14  ;;  %v1419_v21 = vcombine.high %v39_v16, %v43_v17  ;;  %v46_v22 = vld [vmem:[%s2279_s1 + $0xc0] sm:$0xff]  ;;  %v47_v24 = vld [vmem:[%s2279_s1 + $0xc8] sm:$0xff]  ;;  %v1416_v26 = vcombine.low %v38_v13, %v42_v15 }
   0x8   :  { %v50_v23 = vld [vmem:[%s2279_s1 + $0xe0] sm:$0xff]  ;;  %v51_v25 = vld [vmem:[%s2279_s1 + $0xe8] sm:$0xff]  ;;  %v1418_v27 = vcombine.low %v39_v16, %v43_v17 }
   0x9   :  { %v1425_v28 = vcombine.high %v46_v22, %v50_v23  ;;  %v1427_v29 = vcombine.high %v47_v24, %v51_v25  ;;  %v54_v30 = vld [vmem:[%s2279_s1 + $0x100] sm:$0xff]  ;;  %v55_v32 = vld [vmem:[%s2279_s1 + $0x108] sm:$0xff]  ;;  %v1424_v34 = vcombine.low %v46_v22, %v50_v23  ;;  %v1426_v35 = vcombine.low %v47_v24, %v51_v25 }
   0xa   :  { %875 = vmatpush1.bf16.msra.mxu0 %v1408_v18  ;;  %948 = vmatpush1.bf16.msra.mxu1 %v1410_v19  ;;  %v58_v31 = vld [vmem:[%s2279_s1 + $0x120] sm:$0xff]  ;;  %v59_v33 = vld [vmem:[%s2279_s1 + $0x128] sm:$0xff] }
   0xb   :  { %876 = vmatprep.subr.bf16.mxu0 %v1417_v20  ;;  %949 = vmatprep.subr.bf16.mxu1 %v1419_v21  ;;  %v1433_v36 = vcombine.high %v54_v30, %v58_v31  ;;  %v1435_v37 = vcombine.high %v55_v32, %v59_v33  ;;  %v62_v38 = vld [vmem:[%s2279_s1 + $0x140] sm:$0xff]  ;;  %v63_v40 = vld [vmem:[%s2279_s1 + $0x148] sm:$0xff]  ;;  %v1432_v42 = vcombine.low %v54_v30, %v58_v31 }
   0xc   :  { %v66_v39 = vld [vmem:[%s2279_s1 + $0x160] sm:$0xff]  ;;  %v67_v41 = vld [vmem:[%s2279_s1 + $0x168] sm:$0xff]  ;;  %v1434_v43 = vcombine.low %v55_v32, %v59_v33 }
   0xd   :  { %v1441_v44 = vcombine.high %v62_v38, %v66_v39  ;;  %v1443_v45 = vcombine.high %v63_v40, %v67_v41  ;;  %v70_v46 = vld [vmem:[%s2279_s1 + $0x180] sm:$0xff]  ;;  %v71_v48 = vld [vmem:[%s2279_s1 + $0x188] sm:$0xff]  ;;  %v1440_v50 = vcombine.low %v62_v38, %v66_v39  ;;  %v1442_v51 = vcombine.low %v63_v40, %v67_v41 }
   0xe   :  { %877 = vmatpush1.bf16.msra.mxu0 %v1416_v26  ;;  %950 = vmatpush1.bf16.msra.mxu1 %v1418_v27  ;;  %v74_v47 = vld [vmem:[%s2279_s1 + $0x1a0] sm:$0xff]  ;;  %v75_v49 = vld [vmem:[%s2279_s1 + $0x1a8] sm:$0xff] }
   0xf   :  { %878 = vmatprep.subr.bf16.mxu0 %v1425_v28  ;;  %951 = vmatprep.subr.bf16.mxu1 %v1427_v29  ;;  %v1449_v52 = vcombine.high %v70_v46, %v74_v47  ;;  %v1451_v53 = vcombine.high %v71_v48, %v75_v49  ;;  %v78_v54 = vld [vmem:[%s2279_s1 + $0x1c0] sm:$0xff]  ;;  %v79_v57 = vld [vmem:[%s2279_s1 + $0x1c8] sm:$0xff]  ;;  %v1448_v59 = vcombine.low %v70_v46, %v74_v47 }
  0x10   :  { %v82_v55 = vld [vmem:[%s2279_s1 + $0x1e0] sm:$0xff]  ;;  %v83_v58 = vld [vmem:[%s2279_s1 + $0x1e8] sm:$0xff]  ;;  %v1450_v60 = vcombine.low %v71_v48, %v75_v49 }
  0x11   :  { %v1717_v56 = vld [vmem:[%s2280_s0 + $0x4] ss:$8 sps:$4 sm:$0xff]   ;;  %v1457_v61 = vcombine.high %v78_v54, %v82_v55  ;;  %v1459_v62 = vcombine.high %v79_v57, %v83_v58  ;;  %v1456_v3 = vcombine.low %v78_v54, %v82_v55  ;;  %v1458_v4 = vcombine.low %v79_v57, %v83_v58 }
  0x12   :  { %879 = vmatpush1.bf16.msra.mxu0 %v1424_v34  ;;  %952 = vmatpush1.bf16.msra.mxu1 %v1426_v35  ;;  %v86_v63 = vld [vmem:[%s2279_s1 + $0x200] sm:$0xff]  ;;  %v87_v1 = vld [vmem:[%s2279_s1 + $0x208] sm:$0xff] }
  0x13   :  { %880 = vmatprep.subr.bf16.mxu0 %v1433_v36  ;;  %953 = vmatprep.subr.bf16.mxu1 %v1435_v37  ;;  %v90_v0 = vld [vmem:[%s2279_s1 + $0x220] sm:$0xff]  ;;  %v91_v2 = vld [vmem:[%s2279_s1 + $0x228] sm:$0xff] }
  0x14   :  { %904 = vmatprep.mubr.bf16.mxu0 %v1717_v56  ;;  %977 = vmatprep.mubr.bf16.mxu1 %v1717_v56  ;;  %v1465_v5 = vcombine.high %v86_v63, %v90_v0  ;;  %v1467_v6 = vcombine.high %v87_v1, %v91_v2  ;;  %v94_v7 = vld [vmem:[%s2279_s1 + $0x240] sm:$0xff]  ;;  %v95_v9 = vld [vmem:[%s2279_s1 + $0x248] sm:$0xff]  ;;  %v1464_v11 = vcombine.low %v86_v63, %v90_v0  ;;  %v24_v0 = vld [vmem:[%s2279_s1 + $0x10] sm:$0xff] }
  0x15   :  { %v98_v8 = vld [vmem:[%s2279_s1 + $0x260] sm:$0xff]  ;;  %v99_v10 = vld [vmem:[%s2279_s1 + $0x268] sm:$0xff]  ;;  %v1466_v12 = vcombine.low %v87_v1, %v91_v2  ;;  %v28_v1 = vld [vmem:[%s2279_s1 + $0x30] sm:$0xff] }
  0x16   :  { %881 = vmatpush1.bf16.msra.mxu0 %v1432_v42  ;;  %954 = vmatpush1.bf16.msra.mxu1 %v1434_v43  ;;  %v1473_v13 = vcombine.high %v94_v7, %v98_v8  ;;  %v1475_v14 = vcombine.high %v95_v9, %v99_v10  ;;  %v102_v15 = vld [vmem:[%s2279_s1 + $0x280] sm:$0xff]  ;;  %v103_v17 = vld [vmem:[%s2279_s1 + $0x288] sm:$0xff]  ;;  %v1472_v19 = vcombine.low %v94_v7, %v98_v8  ;;  %v25_v2 = vld [vmem:[%s2279_s1 + $0x18] sm:$0xff] }
  0x17   :  { %882 = vmatprep.subr.bf16.mxu0 %v1441_v44  ;;  %955 = vmatprep.subr.bf16.mxu1 %v1443_v45  ;;  %v106_v16 = vld [vmem:[%s2279_s1 + $0x2a0] sm:$0xff]  ;;  %v107_v18 = vld [vmem:[%s2279_s1 + $0x2a8] sm:$0xff]  ;;  %v1474_v20 = vcombine.low %v95_v9, %v99_v10  ;;  %v32_v8 = vld [vmem:[%s2279_s1 + $0x50] sm:$0xff] }
  0x18   :  { %v1481_v21 = vcombine.high %v102_v15, %v106_v16  ;;  %v1483_v22 = vcombine.high %v103_v17, %v107_v18  ;;  %v110_v23 = vld [vmem:[%s2279_s1 + $0x2c0] sm:$0xff]  ;;  %v111_v25 = vld [vmem:[%s2279_s1 + $0x2c8] sm:$0xff]  ;;  %v1480_v27 = vcombine.low %v102_v15, %v106_v16  ;;  %v1482_v28 = vcombine.low %v103_v17, %v107_v18  ;;  %v36_v9 = vld [vmem:[%s2279_s1 + $0x70] sm:$0xff] }
  0x19   :  { %v114_v24 = vld [vmem:[%s2279_s1 + $0x2e0] sm:$0xff]  ;;  %v115_v26 = vld [vmem:[%s2279_s1 + $0x2e8] sm:$0xff]  ;;  %v1413_v15 = vcombine.high %v32_v8, %v36_v9  ;;  %v40_v17 = vld [vmem:[%s2279_s1 + $0x90] sm:$0xff] }
  0x1a   :  { %883 = vmatpush1.bf16.msra.mxu0 %v1440_v50  ;;  %956 = vmatpush1.bf16.msra.mxu1 %v1442_v51  ;;  %v1489_v29 = vcombine.high %v110_v23, %v114_v24  ;;  %v1491_v30 = vcombine.high %v111_v25, %v115_v26  ;;  %v118_v31 = vld [vmem:[%s2279_s1 + $0x300] sm:$0xff]  ;;  %v119_v33 = vld [vmem:[%s2279_s1 + $0x308] sm:$0xff]  ;;  %v1488_v35 = vcombine.low %v110_v23, %v114_v24  ;;  %v44_v18 = vld [vmem:[%s2279_s1 + $0xb0] sm:$0xff] }
  0x1b   :  { %884 = vmatprep.subr.bf16.mxu0 %v1449_v52  ;;  %957 = vmatprep.subr.bf16.mxu1 %v1451_v53  ;;  %v122_v32 = vld [vmem:[%s2279_s1 + $0x320] sm:$0xff]  ;;  %v123_v34 = vld [vmem:[%s2279_s1 + $0x328] sm:$0xff]  ;;  %v1490_v36 = vcombine.low %v111_v25, %v115_v26  ;;  %v1421_v24 = vcombine.high %v40_v17, %v44_v18  ;;  %v48_v26 = vld [vmem:[%s2279_s1 + $0xd0] sm:$0xff] }
  0x1c   :  { %v1497_v37 = vcombine.high %v118_v31, %v122_v32  ;;  %v1499_v38 = vcombine.high %v119_v33, %v123_v34  ;;  %v126_v39 = vld [vmem:[%s2279_s1 + $0x340] sm:$0xff]  ;;  %v127_v41 = vld [vmem:[%s2279_s1 + $0x348] sm:$0xff]  ;;  %v1496_v43 = vcombine.low %v118_v31, %v122_v32  ;;  %v1498_v44 = vcombine.low %v119_v33, %v123_v34 }
  0x1d   :  { %v130_v40 = vld [vmem:[%s2279_s1 + $0x360] sm:$0xff]  ;;  %v131_v42 = vld [vmem:[%s2279_s1 + $0x368] sm:$0xff]  ;;  %v1420_v31 = vcombine.low %v40_v17, %v44_v18  ;;  %v96_v17 = vld [vmem:[%s2279_s1 + $0x250] sm:$0xff] }
  0x1e   :  { %885 = vmatpush1.bf16.msra.mxu0 %v1448_v59  ;;  %958 = vmatpush1.bf16.msra.mxu1 %v1450_v60  ;;  %v1505_v45 = vcombine.high %v126_v39, %v130_v40  ;;  %v1507_v46 = vcombine.high %v127_v41, %v131_v42  ;;  %v134_v47 = vld [vmem:[%s2279_s1 + $0x380] sm:$0xff]  ;;  %v135_v49 = vld [vmem:[%s2279_s1 + $0x388] sm:$0xff]  ;;  %v1504_v51 = vcombine.low %v126_v39, %v130_v40  ;;  %v61_v39 = vld [vmem:[%s2279_s1 + $0x138] sm:$0xff] }
  0x1f   :  { %886 = vmatprep.subr.bf16.mxu0 %v1457_v61  ;;  %959 = vmatprep.subr.bf16.mxu1 %v1459_v62  ;;  %v138_v48 = vld [vmem:[%s2279_s1 + $0x3a0] sm:$0xff]  ;;  %v139_v50 = vld [vmem:[%s2279_s1 + $0x3a8] sm:$0xff]  ;;  %v1506_v52 = vcombine.low %v127_v41, %v131_v42  ;;  %v100_v18 = vld [vmem:[%s2279_s1 + $0x270] sm:$0xff] }
  0x20   :  { %v1513_v53 = vcombine.high %v134_v47, %v138_v48  ;;  %v1515_v54 = vcombine.high %v135_v49, %v139_v50  ;;  %v142_v55 = vld [vmem:[%s2279_s1 + $0x3c0] sm:$0xff]  ;;  %v143_v58 = vld [vmem:[%s2279_s1 + $0x3c8] sm:$0xff]  ;;  %v1512_v60 = vcombine.low %v134_v47, %v138_v48  ;;  %v1514_v61 = vcombine.low %v135_v49, %v139_v50  ;;  %v69_v47 = vld [vmem:[%s2279_s1 + $0x178] sm:$0xff] }
  0x21   :  { %v146_v57 = vld [vmem:[%s2279_s1 + $0x3e0] sm:$0xff]  ;;  %v147_v59 = vld [vmem:[%s2279_s1 + $0x3e8] sm:$0xff] }
  0x22   :  { %887 = vmatpush1.bf16.msra.mxu0 %v1456_v3  ;;  %960 = vmatpush1.bf16.msra.mxu1 %v1458_v4  ;;  %v1521_v62 = vcombine.high %v142_v55, %v146_v57  ;;  %v1523_v63 = vcombine.high %v143_v58, %v147_v59  ;;  %v29_v3 = vld [vmem:[%s2279_s1 + $0x38] sm:$0xff]  ;;  %v1520_v4 = vcombine.low %v142_v55, %v146_v57  ;;  %v1844_v10 = vld [vmem:[%s2280_s0] ss:$8 sps:$4 sm:$0xff]  }
  0x23   :  { %888 = vmatprep.subr.bf16.mxu0 %v1465_v5  ;;  %961 = vmatprep.subr.bf16.mxu1 %v1467_v6  ;;  %v1522_v5 = vcombine.low %v143_v58, %v147_v59  ;;  %v1405_v6 = vcombine.high %v24_v0, %v28_v1  ;;  %v1407_v7 = vcombine.high %v25_v2, %v29_v3  ;;  %v1926_v48 = vld [vmem:[%s2280_s0 + $0x20] ss:$8 sps:$4 sm:$0xff]   ;;  %v1937_v55 = vld [vmem:[%s2280_s0 + $0x34] ss:$8 sps:$4 sm:$0xff]  }
  0x24   :  { %v73_v57 = vld [vmem:[%s2279_s1 + $0x198] sm:$0xff] }
  0x25   :  { %v77_v58 = vld [vmem:[%s2279_s1 + $0x1b8] sm:$0xff] }
  0x26   :  { %889 = vmatpush1.bf16.msra.mxu0 %v1464_v11  ;;  %962 = vmatpush1.bf16.msra.mxu1 %v1466_v12  ;;  %v33_v11 = vld [vmem:[%s2279_s1 + $0x58] sm:$0xff] }
  0x27   :  { %890 = vmatprep.subr.bf16.mxu0 %v1473_v13  ;;  %963 = vmatprep.subr.bf16.mxu1 %v1475_v14  ;;  %v37_v12 = vld [vmem:[%s2279_s1 + $0x78] sm:$0xff]  ;;  %v1404_v13 = vcombine.low %v24_v0, %v28_v1  ;;  %v1406_v14 = vcombine.low %v25_v2, %v29_v3  ;;  %v84_v0 = vld [vmem:[%s2279_s1 + $0x1f0] sm:$0xff] }
  0x28   :  { %v1415_v16 = vcombine.high %v33_v11, %v37_v12  ;;  %v1414_v23 = vcombine.low %v33_v11, %v37_v12  ;;  %v81_v1 = vld [vmem:[%s2279_s1 + $0x1d8] sm:$0xff] }
  0x29   :  { %v85_v2 = vld [vmem:[%s2279_s1 + $0x1f8] sm:$0xff] }
  0x2a   :  { %891 = vmatpush1.bf16.msra.mxu0 %v1472_v19  ;;  %964 = vmatpush1.bf16.msra.mxu1 %v1474_v20  ;;  %v1861_v19 = vld [vmem:[%s2280_s0 + $0x14] ss:$8 sps:$4 sm:$0xff]   ;;  %v1964_v3 = vld [vmem:[%s2280_s0 + $0x30] ss:$8 sps:$4 sm:$0xff]  }
  0x2b   :  { %892 = vmatprep.subr.bf16.mxu0 %v1481_v21  ;;  %965 = vmatprep.subr.bf16.mxu1 %v1483_v22  ;;  %v41_v20 = vld [vmem:[%s2279_s1 + $0x98] sm:$0xff]  ;;  %v1412_v22 = vcombine.low %v32_v8, %v36_v9  ;;  %v88_v8 = vld [vmem:[%s2279_s1 + $0x210] sm:$0xff] }
  0x2c   :  { %v45_v21 = vld [vmem:[%s2279_s1 + $0xb8] sm:$0xff]  ;;  %v92_v9 = vld [vmem:[%s2279_s1 + $0x230] sm:$0xff] }
  0x2d   :  { %v1423_v25 = vcombine.high %v41_v20, %v45_v21  ;;  %v1422_v32 = vcombine.low %v41_v20, %v45_v21  ;;  %v89_v11 = vld [vmem:[%s2279_s1 + $0x218] sm:$0xff] }
  0x2e   :  { %893 = vmatpush1.bf16.msra.mxu0 %v1480_v27  ;;  %966 = vmatpush1.bf16.msra.mxu1 %v1482_v28  ;;  %v52_v27 = vld [vmem:[%s2279_s1 + $0xf0] sm:$0xff]  ;;  %v49_v28 = vld [vmem:[%s2279_s1 + $0xd8] sm:$0xff] }
  0x2f   :  { %894 = vmatprep.subr.bf16.mxu0 %v1489_v29  ;;  %967 = vmatprep.subr.bf16.mxu1 %v1491_v30  ;;  %v53_v29 = vld [vmem:[%s2279_s1 + $0xf8] sm:$0xff]  ;;  %v1429_v33 = vcombine.high %v48_v26, %v52_v27  ;;  %v1428_v40 = vcombine.low %v48_v26, %v52_v27  ;;  %v104_v26 = vld [vmem:[%s2279_s1 + $0x290] sm:$0xff] }
  0x30   :  { %v1888_v30 = vld [vmem:[%s2280_s0 + $0x10] ss:$8 sps:$4 sm:$0xff]   ;;  %v1431_v34 = vcombine.high %v49_v28, %v53_v29  ;;  %v1430_v41 = vcombine.low %v49_v28, %v53_v29  ;;  %v1476_v29 = vcombine.low %v96_v17, %v100_v18 }
  0x31   :  { %v93_v12 = vld [vmem:[%s2279_s1 + $0x238] sm:$0xff]  ;;  %v108_v27 = vld [vmem:[%s2279_s1 + $0x2b0] sm:$0xff] }
  0x32   :  { %895 = vmatpush1.bf16.msra.mxu0 %v1488_v35  ;;  %968 = vmatpush1.bf16.msra.mxu1 %v1490_v36  ;;  %v56_v35 = vld [vmem:[%s2279_s1 + $0x110] sm:$0xff]  ;;  %v97_v20 = vld [vmem:[%s2279_s1 + $0x258] sm:$0xff] }
  0x33   :  { %896 = vmatprep.subr.bf16.mxu0 %v1497_v37  ;;  %969 = vmatprep.subr.bf16.mxu1 %v1499_v38  ;;  %v60_v36 = vld [vmem:[%s2279_s1 + $0x130] sm:$0xff]  ;;  %v1899_v37 = vld [vmem:[%s2280_s0 + $0x24] ss:$8 sps:$4 sm:$0xff]   ;;  %v57_v38 = vld [vmem:[%s2279_s1 + $0x118] sm:$0xff] }
  0x34   :  { %v1437_v42 = vcombine.high %v56_v35, %v60_v36  ;;  %v1436_v49 = vcombine.low %v56_v35, %v60_v36  ;;  %v1438_v50 = vcombine.low %v57_v38, %v61_v39  ;;  %v101_v21 = vld [vmem:[%s2279_s1 + $0x278] sm:$0xff]  ;;  %v116_v35 = vld [vmem:[%s2279_s1 + $0x2f0] sm:$0xff] }
  0x35   :  { %v109_v28 = vld [vmem:[%s2279_s1 + $0x2b8] sm:$0xff] }
  0x36   :  { %897 = vmatpush1.bf16.msra.mxu0 %v1496_v43  ;;  %970 = vmatpush1.bf16.msra.mxu1 %v1498_v44  ;;  %v1439_v43 = vcombine.high %v57_v38, %v61_v39  ;;  %v64_v44 = vld [vmem:[%s2279_s1 + $0x150] sm:$0xff]  ;;  %v113_v36 = vld [vmem:[%s2279_s1 + $0x2d8] sm:$0xff]  ;;  %v1484_v39 = vcombine.low %v104_v26, %v108_v27 }
  0x37   :  { %898 = vmatprep.subr.bf16.mxu0 %v1505_v45  ;;  %971 = vmatprep.subr.bf16.mxu1 %v1507_v46  ;;  %v68_v45 = vld [vmem:[%s2279_s1 + $0x170] sm:$0xff]  ;;  %v65_v46 = vld [vmem:[%s2279_s1 + $0x158] sm:$0xff] }
  0x38   :  { %v1444_v59 = vcombine.low %v64_v44, %v68_v45  ;;  %v117_v38 = vld [vmem:[%s2279_s1 + $0x2f8] sm:$0xff] }
  0x3a   :  { %899 = vmatpush1.bf16.msra.mxu0 %v1504_v51  ;;  %972 = vmatpush1.bf16.msra.mxu1 %v1506_v52  ;;  %v1445_v51 = vcombine.high %v64_v44, %v68_v45  ;;  %v1447_v52 = vcombine.high %v65_v46, %v69_v47  ;;  %v124_v44 = vld [vmem:[%s2279_s1 + $0x330] sm:$0xff]  ;;  %v121_v45 = vld [vmem:[%s2279_s1 + $0x318] sm:$0xff] }
  0x3b   :  { %900 = vmatprep.subr.bf16.mxu0 %v1513_v53  ;;  %973 = vmatprep.subr.bf16.mxu1 %v1515_v54  ;;  %v72_v53 = vld [vmem:[%s2279_s1 + $0x190] sm:$0xff] }
  0x3c   :  { %v76_v54 = vld [vmem:[%s2279_s1 + $0x1b0] sm:$0xff] }
  0x3e   :  { %901 = vmatpush1.bf16.msra.mxu0 %v1512_v60  ;;  %974 = vmatpush1.bf16.msra.mxu1 %v1514_v61  ;;  %v1446_v60 = vcombine.low %v65_v46, %v69_v47  ;;  %v1453_v61 = vcombine.high %v72_v53, %v76_v54  ;;  %v125_v46 = vld [vmem:[%s2279_s1 + $0x338] sm:$0xff] }
  0x3f   :  { %902 = vmatprep.subr.bf16.mxu0 %v1521_v62  ;;  %975 = vmatprep.subr.bf16.mxu1 %v1523_v63  ;;  %v1455_v62 = vcombine.high %v73_v57, %v77_v58  ;;  %v80_v63 = vld [vmem:[%s2279_s1 + $0x1d0] sm:$0xff] }
  0x42   :  { %903 = vmatpush1.bf16.msra.mxu0 %v1520_v4  ;;  %976 = vmatpush1.bf16.msra.mxu1 %v1522_v5  ;;  %v1452_v4 = vcombine.low %v72_v53, %v76_v54  ;;  %v1454_v5 = vcombine.low %v73_v57, %v77_v58  ;;  %v132_v53 = vld [vmem:[%s2279_s1 + $0x370] sm:$0xff]  ;;  %v129_v54 = vld [vmem:[%s2279_s1 + $0x358] sm:$0xff] }
  0x43   :  { %1018 = vmatprep.subr.bf16.mxu0 %v1405_v6  ;;  %1091 = vmatprep.subr.bf16.mxu1 %v1407_v7  ;;  %v1461_v6 = vcombine.high %v80_v63, %v84_v0  ;;  %v1463_v7 = vcombine.high %v81_v1, %v85_v2  ;;  %v133_v57 = vld [vmem:[%s2279_s1 + $0x378] sm:$0xff] }
  0x45   :  { %905 = vmatmul.mubr.bf16.vlgmr.msra.gmra.mrb[0].mxu0 %v1844_v10  ;;  %978 = vmatmul.mubr.bf16.vlgmr.msra.gmra.mrb[0].mxu1 %v1844_v10 }
  0x46   :  { %1019 = vmatpush1.bf16.msra.mxu0 %v1404_v13  ;;  %1092 = vmatpush1.bf16.msra.mxu1 %v1406_v14  ;;  %v1460_v13 = vcombine.low %v80_v63, %v84_v0  ;;  %v1462_v14 = vcombine.low %v81_v1, %v85_v2  ;;  %v140_v63 = vld [vmem:[%s2279_s1 + $0x3b0] sm:$0xff]  ;;  %v137_v0 = vld [vmem:[%s2279_s1 + $0x398] sm:$0xff] }
  0x47   :  { %1020 = vmatprep.subr.bf16.mxu0 %v1413_v15  ;;  %1093 = vmatprep.subr.bf16.mxu1 %v1415_v16  ;;  %v1469_v15 = vcombine.high %v88_v8, %v92_v9  ;;  %v1471_v16 = vcombine.high %v89_v11, %v93_v12  ;;  %v141_v1 = vld [vmem:[%s2279_s1 + $0x3b8] sm:$0xff] }
  0x48   :  { %914 = vmatprep.mubr.bf16.mxu0 %v1861_v19  ;;  %987 = vmatprep.mubr.bf16.mxu1 %v1861_v19 }
  0x4a   :  { %1021 = vmatpush1.bf16.msra.mxu0 %v1412_v22  ;;  %1094 = vmatpush1.bf16.msra.mxu1 %v1414_v23  ;;  %v1468_v22 = vcombine.low %v88_v8, %v92_v9  ;;  %v1470_v23 = vcombine.low %v89_v11, %v93_v12  ;;  %v148_v8 = vld [vmem:[%s2279_s1 + $0x3f0] sm:$0xff]  ;;  %v145_v9 = vld [vmem:[%s2279_s1 + $0x3d8] sm:$0xff] }
  0x4b   :  { %1022 = vmatprep.subr.bf16.mxu0 %v1421_v24  ;;  %1095 = vmatprep.subr.bf16.mxu1 %v1423_v25  ;;  %v1477_v24 = vcombine.high %v96_v17, %v100_v18  ;;  %v1479_v25 = vcombine.high %v97_v20, %v101_v21  ;;  %v149_v11 = vld [vmem:[%s2279_s1 + $0x3f8] sm:$0xff] }
  0x4c   :  { %v1526_v17 = vcombine.low %v145_v9, %v149_v11 }
  0x4d   :  { %915 = vmatmul.mubr.bf16.gmra.mrb[4].mxu0 %v1888_v30  ;;  %988 = vmatmul.mubr.bf16.gmra.mrb[4].mxu1 %v1888_v30 }
  0x4e   :  { %1023 = vmatpush1.bf16.msra.mxu0 %v1420_v31  ;;  %1096 = vmatpush1.bf16.msra.mxu1 %v1422_v32  ;;  %v1478_v31 = vcombine.low %v97_v20, %v101_v21  ;;  %v1485_v32 = vcombine.high %v104_v26, %v108_v27 }
  0x4f   :  { %1024 = vmatprep.subr.bf16.mxu0 %v1429_v33  ;;  %1097 = vmatprep.subr.bf16.mxu1 %v1431_v34  ;;  %v112_v34 = vld [vmem:[%s2279_s1 + $0x2d0] sm:$0xff] }
  0x50   :  { %924 = vmatprep.mubr.bf16.mxu0 %v1899_v37  ;;  %997 = vmatprep.mubr.bf16.mxu1 %v1899_v37  ;;  %v1492_v47 = vcombine.low %v112_v34, %v116_v35 }
  0x52   :  { %1025 = vmatpush1.bf16.msra.mxu0 %v1428_v40  ;;  %1098 = vmatpush1.bf16.msra.mxu1 %v1430_v41  ;;  %v1493_v41 = vcombine.high %v112_v34, %v116_v35 }
  0x53   :  { %1026 = vmatprep.subr.bf16.mxu0 %v1437_v42  ;;  %1099 = vmatprep.subr.bf16.mxu1 %v1439_v43  ;;  %v1495_v42 = vcombine.high %v113_v36, %v117_v38  ;;  %v120_v43 = vld [vmem:[%s2279_s1 + $0x310] sm:$0xff] }
  0x54   :  { %v1500_v58 = vcombine.low %v120_v43, %v124_v44 }
  0x55   :  { %925 = vmatmul.mubr.bf16.gmra.mrb[8].mxu0 %v1926_v48  ;;  %998 = vmatmul.mubr.bf16.gmra.mrb[8].mxu1 %v1926_v48 }
  0x56   :  { %1027 = vmatpush1.bf16.msra.mxu0 %v1436_v49  ;;  %1100 = vmatpush1.bf16.msra.mxu1 %v1438_v50  ;;  %v1494_v49 = vcombine.low %v113_v36, %v117_v38  ;;  %v1501_v50 = vcombine.high %v120_v43, %v124_v44 }
  0x57   :  { %1028 = vmatprep.subr.bf16.mxu0 %v1445_v51  ;;  %1101 = vmatprep.subr.bf16.mxu1 %v1447_v52  ;;  %v1503_v51 = vcombine.high %v121_v45, %v125_v46  ;;  %v128_v52 = vld [vmem:[%s2279_s1 + $0x350] sm:$0xff] }
  0x58   :  { %934 = vmatprep.mubr.bf16.mxu0 %v1937_v55  ;;  %1007 = vmatprep.mubr.bf16.mxu1 %v1937_v55  ;;  %v1508_v2 = vcombine.low %v128_v52, %v132_v53 }
  0x5a   :  { %1029 = vmatpush1.bf16.msra.mxu0 %v1444_v59  ;;  %1102 = vmatpush1.bf16.msra.mxu1 %v1446_v60  ;;  %v1502_v59 = vcombine.low %v121_v45, %v125_v46  ;;  %v1509_v60 = vcombine.high %v128_v52, %v132_v53 }
  0x5b   :  { %1030 = vmatprep.subr.bf16.mxu0 %v1453_v61  ;;  %1103 = vmatprep.subr.bf16.mxu1 %v1455_v62  ;;  %v1511_v61 = vcombine.high %v129_v54, %v133_v57  ;;  %v136_v62 = vld [vmem:[%s2279_s1 + $0x390] sm:$0xff] }
  0x5c   :  { %v1516_v12 = vcombine.low %v136_v62, %v140_v63 }
  0x5d   :  { %935 = vmatmul.mubr.bf16.gmra.mrb[12].mxu0 %v1964_v3  ;;  %1008 = vmatmul.mubr.bf16.gmra.mrb[12].mxu1 %v1964_v3 }
  0x5e   :  { %1031 = vmatpush1.bf16.msra.mxu0 %v1452_v4  ;;  %1104 = vmatpush1.bf16.msra.mxu1 %v1454_v5  ;;  %v1510_v4 = vcombine.low %v129_v54, %v133_v57  ;;  %v1517_v5 = vcombine.high %v136_v62, %v140_v63 }
  0x5f   :  { %1032 = vmatprep.subr.bf16.mxu0 %v1461_v6  ;;  %1105 = vmatprep.subr.bf16.mxu1 %v1463_v7  ;;  %v1519_v6 = vcombine.high %v137_v0, %v141_v1  ;;  %v144_v7 = vld [vmem:[%s2279_s1 + $0x3d0] sm:$0xff] }
  0x60   :  { %1050 = vmatprep.mubr.bf16.mxu0 %v1717_v56  ;;  %1123 = vmatprep.mubr.bf16.mxu1 %v1717_v56  ;;  %v105_v56 = vld [vmem:[%s2279_s1 + $0x298] sm:$0xff] }
  0x61   :  { %v1487_v33 = vcombine.high %v105_v56, %v109_v28  ;;  %v1486_v40 = vcombine.low %v105_v56, %v109_v28 }
  0x62   :  { %1033 = vmatpush1.bf16.msra.mxu0 %v1460_v13  ;;  %1106 = vmatpush1.bf16.msra.mxu1 %v1462_v14  ;;  %v1518_v13 = vcombine.low %v137_v0, %v141_v1  ;;  %v1525_v14 = vcombine.high %v144_v7, %v148_v8 }
  0x63   :  { %1034 = vmatprep.subr.bf16.mxu0 %v1469_v15  ;;  %1107 = vmatprep.subr.bf16.mxu1 %v1471_v16  ;;  %v1527_v15 = vcombine.high %v145_v9, %v149_v11  ;;  %v1524_v16 = vcombine.low %v144_v7, %v148_v8 }
  0x66   :  { %1035 = vmatpush1.bf16.msra.mxu0 %v1468_v22  ;;  %1108 = vmatpush1.bf16.msra.mxu1 %v1470_v23 }
  0x67   :  { %1036 = vmatprep.subr.bf16.mxu0 %v1477_v24  ;;  %1109 = vmatprep.subr.bf16.mxu1 %v1479_v25 }
  0x6a   :  { %1037 = vmatpush1.bf16.msra.mxu0 %v1476_v29  ;;  %1110 = vmatpush1.bf16.msra.mxu1 %v1478_v31 }
  0x6b   :  { %1038 = vmatprep.subr.bf16.mxu0 %v1485_v32  ;;  %1111 = vmatprep.subr.bf16.mxu1 %v1487_v33 }
  0x6e   :  { %1039 = vmatpush1.bf16.msra.mxu0 %v1484_v39  ;;  %1112 = vmatpush1.bf16.msra.mxu1 %v1486_v40 }
  0x6f   :  { %1040 = vmatprep.subr.bf16.mxu0 %v1493_v41  ;;  %1113 = vmatprep.subr.bf16.mxu1 %v1495_v42 }
  0x72   :  { %1041 = vmatpush1.bf16.msra.mxu0 %v1492_v47  ;;  %1114 = vmatpush1.bf16.msra.mxu1 %v1494_v49 }
  0x73   :  { %1042 = vmatprep.subr.bf16.mxu0 %v1501_v50  ;;  %1115 = vmatprep.subr.bf16.mxu1 %v1503_v51 }
  0x76   :  { %1043 = vmatpush1.bf16.msra.mxu0 %v1500_v58  ;;  %1116 = vmatpush1.bf16.msra.mxu1 %v1502_v59 }
  0x77   :  { %1044 = vmatprep.subr.bf16.mxu0 %v1509_v60  ;;  %1117 = vmatprep.subr.bf16.mxu1 %v1511_v61 }
  0x7a   :  { %1045 = vmatpush1.bf16.msra.mxu0 %v1508_v2  ;;  %1118 = vmatpush1.bf16.msra.mxu1 %v1510_v4 }
  0x7b   :  { %1046 = vmatprep.subr.bf16.mxu0 %v1517_v5  ;;  %1119 = vmatprep.subr.bf16.mxu1 %v1519_v6 }
  0x7e   :  { %1047 = vmatpush1.bf16.msra.mxu0 %v1516_v12  ;;  %1120 = vmatpush1.bf16.msra.mxu1 %v1518_v13 }
  0x7f   :  { %1048 = vmatprep.subr.bf16.mxu0 %v1525_v14  ;;  %1121 = vmatprep.subr.bf16.mxu1 %v1527_v15 }
  0x82   :  { %1049 = vmatpush1.bf16.msra.mxu0 %v1524_v16  ;;  %1122 = vmatpush1.bf16.msra.mxu1 %v1526_v17 }
  0x85   :  { %1051 = vmatmul.mubr.bf16.vlgmr.msra.gmra.mrb[16].mxu0 %v1844_v10  ;;  %1124 = vmatmul.mubr.bf16.vlgmr.msra.gmra.mrb[16].mxu1 %v1844_v10  ;;  %v152_v10 = vlaneseq }
  0x86   :  { %1060 = vmatprep.mubr.bf16.mxu0 %v1861_v19  ;;  %1133 = vmatprep.mubr.bf16.mxu1 %v1861_v19 }
  0x87   :  { %v2080_v19 = vshrl.u32 %v152_v10, 7 }
  0x89   :  { %v158_v18 = vsub.s32 1, %v2080_v19 }
  0x8d   :  { %1061 = vmatmul.mubr.bf16.gmra.mrb[20].mxu0 %v1888_v30  ;;  %1134 = vmatmul.mubr.bf16.gmra.mrb[20].mxu1 %v1888_v30  ;;  %v154_v30 = vsub.s32 0, %v2080_v19 }
  0x8e   :  { %1070 = vmatprep.mubr.bf16.mxu0 %v1899_v37  ;;  %1143 = vmatprep.mubr.bf16.mxu1 %v1899_v37  ;;  %v2086_v37 = vld [vmem:[%s2281_s2] sm:$0xff] }
  0x8f   :  { %v2092_v20 = vrot.slane %v2086_v37, %v154_v30  ;;  %v2098_v21 = vrot.slane %v2086_v37, %v158_v18 }
  0x95   :  { %1071 = vmatmul.mubr.bf16.gmra.mrb[24].mxu0 %v1926_v48  ;;  %1144 = vmatmul.mubr.bf16.gmra.mrb[24].mxu1 %v1926_v48  ;;  %v162_v48 = vsub.s32 2, %v2080_v19 }
  0x96   :  { %1080 = vmatprep.mubr.bf16.mxu0 %v1937_v55  ;;  %1153 = vmatprep.mubr.bf16.mxu1 %v1937_v55  ;;  %v166_v55 = vsub.s32 3, %v2080_v19 }
  0x98   :  { %v2101_v22 = vrot.slane %v2086_v37, %v166_v55 }
  0x9d   :  { %1081 = vmatmul.mubr.bf16.gmra.mrb[28].mxu0 %v1964_v3  ;;  %1154 = vmatmul.mubr.bf16.gmra.mrb[28].mxu1 %v1964_v3  ;;  %v2095_v3 = vrot.slane %v2086_v37, %v162_v48 }
 0x118   :  { %v906_v23 = vpop.f32.mrb[0].mxu0  ;;  %v979_v25 = vpop.f32.mrb[0].mxu1 }
 0x119   :  { %v907_v24 = vadd.f32 %v906_v23, %v2092_v20  ;;  %v908_v26 = vpop.f32.mrb[1].mxu0  ;;  %v980_v27 = vadd.f32 %v979_v25, %v2095_v3  ;;  %v981_v28 = vpop.f32.mrb[1].mxu1 }
 0x11a   :  { %v909_v56 = vadd.f32 %v908_v26, %v2098_v21  ;;  %v910_v29 = vpop.f32.mrb[2].mxu0  ;;  %v982_v31 = vadd.f32 %v981_v28, %v2101_v22  ;;  %v983_v33 = vpop.f32.mrb[2].mxu1 }
 0x11b   :  { %v911_v32 = vadd.f32 %v910_v29, %v2092_v20  ;;  %v912_v34 = vpop.f32.mrb[3].mxu0  ;;  %v984_v36 = vadd.f32 %v983_v33, %v2095_v3  ;;  %v985_v39 = vpop.f32.mrb[3].mxu1 }
 0x11c   :  { %v1560_v35 = vpack.c.bf16 %v909_v56, %v907_v24  ;;  %v913_v38 = vadd.f32 %v912_v34, %v2098_v21  ;;  %v1561_v40 = vpack.c.bf16 %v982_v31, %v980_v27  ;;  %v986_v41 = vadd.f32 %v985_v39, %v2101_v22 }
 0x11e   :  { %1356 = vst [vmem:[%s2282_s3] sm:$0xff] %v1560_v35  ;;  %v1564_v42 = vpack.c.bf16 %v913_v38, %v911_v32  ;;  %1357 = vst [vmem:[%s2282_s3 + $0x8] sm:$0xff] %v1561_v40  ;;  %v1565_v43 = vpack.c.bf16 %v986_v41, %v984_v36 }
 0x120   :  { %1360 = vst [vmem:[%s2282_s3 + $0x20] sm:$0xff] %v1564_v42  ;;  %v916_v44 = vpop.f32.mrb[4].mxu0  ;;  %1361 = vst [vmem:[%s2282_s3 + $0x28] sm:$0xff] %v1565_v43  ;;  %v989_v46 = vpop.f32.mrb[4].mxu1 }
 0x121   :  { %v917_v45 = vadd.f32 %v916_v44, %v2092_v20  ;;  %v918_v47 = vpop.f32.mrb[5].mxu0  ;;  %v990_v49 = vadd.f32 %v989_v46, %v2095_v3  ;;  %v991_v51 = vpop.f32.mrb[5].mxu1 }
 0x122   :  { %v919_v50 = vadd.f32 %v918_v47, %v2098_v21  ;;  %v920_v52 = vpop.f32.mrb[6].mxu0  ;;  %v992_v53 = vadd.f32 %v991_v51, %v2101_v22  ;;  %v993_v57 = vpop.f32.mrb[6].mxu1 }
 0x123   :  { %v921_v54 = vadd.f32 %v920_v52, %v2092_v20  ;;  %v922_v58 = vpop.f32.mrb[7].mxu0  ;;  %v994_v60 = vadd.f32 %v993_v57, %v2095_v3  ;;  %v995_v62 = vpop.f32.mrb[7].mxu1 }
 0x124   :  { %v1568_v59 = vpack.c.bf16 %v919_v50, %v917_v45  ;;  %v923_v61 = vadd.f32 %v922_v58, %v2098_v21  ;;  %v1569_v63 = vpack.c.bf16 %v992_v53, %v990_v49  ;;  %v996_v0 = vadd.f32 %v995_v62, %v2101_v22 }
 0x125   :  { %v182_v45 = vsub.s32 7, %v2080_v19 }
 0x126   :  { %1364 = vst [vmem:[%s2282_s3 + $0x40] sm:$0xff] %v1568_v59  ;;  %v1572_v1 = vpack.c.bf16 %v923_v61, %v921_v54  ;;  %1365 = vst [vmem:[%s2282_s3 + $0x48] sm:$0xff] %v1569_v63  ;;  %v1573_v2 = vpack.c.bf16 %v996_v0, %v994_v60 }
 0x127   :  { %v2197_v50 = vrot.slane %v2086_v37, %v182_v45 }
 0x128   :  { %1368 = vst [vmem:[%s2282_s3 + $0x60] sm:$0xff] %v1572_v1  ;;  %v926_v4 = vpop.f32.mrb[8].mxu0  ;;  %1369 = vst [vmem:[%s2282_s3 + $0x68] sm:$0xff] %v1573_v2  ;;  %v999_v6 = vpop.f32.mrb[8].mxu1 }
 0x129   :  { %v927_v5 = vadd.f32 %v926_v4, %v2092_v20  ;;  %v928_v7 = vpop.f32.mrb[9].mxu0  ;;  %v1000_v8 = vadd.f32 %v999_v6, %v2095_v3  ;;  %v1001_v11 = vpop.f32.mrb[9].mxu1 }
 0x12a   :  { %v929_v9 = vadd.f32 %v928_v7, %v2098_v21  ;;  %v930_v12 = vpop.f32.mrb[10].mxu0  ;;  %v1002_v13 = vadd.f32 %v1001_v11, %v2101_v22  ;;  %v1003_v15 = vpop.f32.mrb[10].mxu1 }
 0x12b   :  { %v931_v14 = vadd.f32 %v930_v12, %v2092_v20  ;;  %v932_v16 = vpop.f32.mrb[11].mxu0  ;;  %v1004_v10 = vadd.f32 %v1003_v15, %v2095_v3  ;;  %v1005_v48 = vpop.f32.mrb[11].mxu1 }
 0x12c   :  { %v1576_v17 = vpack.c.bf16 %v929_v9, %v927_v5  ;;  %v933_v30 = vadd.f32 %v932_v16, %v2098_v21  ;;  %v1577_v18 = vpack.c.bf16 %v1002_v13, %v1000_v8  ;;  %v1006_v55 = vadd.f32 %v1005_v48, %v2101_v22 }
 0x12e   :  { %1372 = vst [vmem:[%s2282_s3 + $0x80] sm:$0xff] %v1576_v17  ;;  %v1580_v23 = vpack.c.bf16 %v933_v30, %v931_v14  ;;  %1373 = vst [vmem:[%s2282_s3 + $0x88] sm:$0xff] %v1577_v18  ;;  %v1581_v24 = vpack.c.bf16 %v1006_v55, %v1004_v10 }
 0x130   :  { %1376 = vst [vmem:[%s2282_s3 + $0xa0] sm:$0xff] %v1580_v23  ;;  %v936_v25 = vpop.f32.mrb[12].mxu0  ;;  %1377 = vst [vmem:[%s2282_s3 + $0xa8] sm:$0xff] %v1581_v24  ;;  %v1009_v27 = vpop.f32.mrb[12].mxu1 }
 0x131   :  { %v937_v26 = vadd.f32 %v936_v25, %v2092_v20  ;;  %v938_v56 = vpop.f32.mrb[13].mxu0  ;;  %v1010_v28 = vadd.f32 %v1009_v27, %v2095_v3  ;;  %v1011_v31 = vpop.f32.mrb[13].mxu1 }
 0x132   :  { %v939_v29 = vadd.f32 %v938_v56, %v2098_v21  ;;  %v940_v32 = vpop.f32.mrb[14].mxu0  ;;  %v1012_v33 = vadd.f32 %v1011_v31, %v2101_v22  ;;  %v1013_v35 = vpop.f32.mrb[14].mxu1 }
 0x133   :  { %v941_v34 = vadd.f32 %v940_v32, %v2092_v20  ;;  %v942_v36 = vpop.f32.mrb[15].mxu0  ;;  %v1014_v39 = vadd.f32 %v1013_v35, %v2095_v3  ;;  %v1015_v41 = vpop.f32.mrb[15].mxu1  ;;  %v170_v3 = vsub.s32 4, %v2080_v19 }
 0x134   :  { %v1584_v38 = vpack.c.bf16 %v939_v29, %v937_v26  ;;  %v943_v40 = vadd.f32 %v942_v36, %v2098_v21  ;;  %v1585_v42 = vpack.c.bf16 %v1012_v33, %v1010_v28  ;;  %v1016_v43 = vadd.f32 %v1015_v41, %v2101_v22 }
 0x135   :  { %v178_v21 = vsub.s32 6, %v2080_v19  ;;  %v174_v22 = vsub.s32 5, %v2080_v19  ;;  %v2188_v46 = vrot.slane %v2086_v37, %v170_v3 }
 0x136   :  { %1380 = vst [vmem:[%s2282_s3 + $0xc0] sm:$0xff] %v1584_v38  ;;  %v1588_v44 = vpack.c.bf16 %v943_v40, %v941_v34  ;;  %1381 = vst [vmem:[%s2282_s3 + $0xc8] sm:$0xff] %v1585_v42  ;;  %v1589_v20 = vpack.c.bf16 %v1016_v43, %v1014_v39 }
 0x137   :  { %v2191_v47 = vrot.slane %v2086_v37, %v178_v21  ;;  %v2194_v49 = vrot.slane %v2086_v37, %v174_v22 }
 0x138   :  { %1384 = vst [vmem:[%s2282_s3 + $0xe0] sm:$0xff] %v1588_v44  ;;  %1385 = vst [vmem:[%s2282_s3 + $0xe8] sm:$0xff] %v1589_v20 }
 0x158   :  { %v1052_v51 = vpop.f32.mrb[16].mxu0  ;;  %v1125_v53 = vpop.f32.mrb[16].mxu1 }
 0x159   :  { %v1053_v52 = vadd.f32 %v1052_v51, %v2188_v46  ;;  %v1054_v54 = vpop.f32.mrb[17].mxu0  ;;  %v1126_v57 = vadd.f32 %v1125_v53, %v2191_v47  ;;  %v1127_v58 = vpop.f32.mrb[17].mxu1 }
 0x15a   :  { %v1055_v19 = vadd.f32 %v1054_v54, %v2194_v49  ;;  %v1056_v59 = vpop.f32.mrb[18].mxu0  ;;  %v1128_v60 = vadd.f32 %v1127_v58, %v2197_v50  ;;  %v1129_v62 = vpop.f32.mrb[18].mxu1 }
 0x15b   :  { %v1057_v61 = vadd.f32 %v1056_v59, %v2188_v46  ;;  %v1058_v63 = vpop.f32.mrb[19].mxu0  ;;  %v1130_v37 = vadd.f32 %v1129_v62, %v2191_v47  ;;  %v1131_v2 = vpop.f32.mrb[19].mxu1 }
 0x15c   :  { %v1562_v0 = vpack.c.bf16 %v1055_v19, %v1053_v52  ;;  %v1059_v1 = vadd.f32 %v1058_v63, %v2194_v49  ;;  %v1563_v4 = vpack.c.bf16 %v1128_v60, %v1126_v57  ;;  %v1132_v5 = vadd.f32 %v1131_v2, %v2197_v50 }
 0x15e   :  { %1358 = vst [vmem:[%s2282_s3 + $0x10] sm:$0xff] %v1562_v0  ;;  %v1566_v6 = vpack.c.bf16 %v1059_v1, %v1057_v61  ;;  %1359 = vst [vmem:[%s2282_s3 + $0x18] sm:$0xff] %v1563_v4  ;;  %v1567_v7 = vpack.c.bf16 %v1132_v5, %v1130_v37 }
 0x160   :  { %1362 = vst [vmem:[%s2282_s3 + $0x30] sm:$0xff] %v1566_v6  ;;  %v1062_v8 = vpop.f32.mrb[20].mxu0  ;;  %1363 = vst [vmem:[%s2282_s3 + $0x38] sm:$0xff] %v1567_v7  ;;  %v1135_v11 = vpop.f32.mrb[20].mxu1 }
 0x161   :  { %v1063_v9 = vadd.f32 %v1062_v8, %v2188_v46  ;;  %v1064_v12 = vpop.f32.mrb[21].mxu0  ;;  %v1136_v13 = vadd.f32 %v1135_v11, %v2191_v47  ;;  %v1137_v15 = vpop.f32.mrb[21].mxu1 }
 0x162   :  { %v1065_v14 = vadd.f32 %v1064_v12, %v2194_v49  ;;  %v1066_v16 = vpop.f32.mrb[22].mxu0  ;;  %v1138_v17 = vadd.f32 %v1137_v15, %v2197_v50  ;;  %v1139_v30 = vpop.f32.mrb[22].mxu1 }
 0x163   :  { %v1067_v10 = vadd.f32 %v1066_v16, %v2188_v46  ;;  %v1068_v48 = vpop.f32.mrb[23].mxu0  ;;  %v1140_v55 = vadd.f32 %v1139_v30, %v2191_v47  ;;  %v1141_v24 = vpop.f32.mrb[23].mxu1 }
 0x164   :  { %v1570_v18 = vpack.c.bf16 %v1065_v14, %v1063_v9  ;;  %v1069_v23 = vadd.f32 %v1068_v48, %v2194_v49  ;;  %v1571_v25 = vpack.c.bf16 %v1138_v17, %v1136_v13  ;;  %v1142_v26 = vadd.f32 %v1141_v24, %v2197_v50 }
 0x166   :  { %1366 = vst [vmem:[%s2282_s3 + $0x50] sm:$0xff] %v1570_v18  ;;  %v1574_v27 = vpack.c.bf16 %v1069_v23, %v1067_v10  ;;  %1367 = vst [vmem:[%s2282_s3 + $0x58] sm:$0xff] %v1571_v25  ;;  %v1575_v56 = vpack.c.bf16 %v1142_v26, %v1140_v55 }
 0x168   :  { %1370 = vst [vmem:[%s2282_s3 + $0x70] sm:$0xff] %v1574_v27  ;;  %v1072_v28 = vpop.f32.mrb[24].mxu0  ;;  %1371 = vst [vmem:[%s2282_s3 + $0x78] sm:$0xff] %v1575_v56  ;;  %v1145_v31 = vpop.f32.mrb[24].mxu1 }
 0x169   :  { %v1073_v29 = vadd.f32 %v1072_v28, %v2188_v46  ;;  %v1074_v32 = vpop.f32.mrb[25].mxu0  ;;  %v1146_v33 = vadd.f32 %v1145_v31, %v2191_v47  ;;  %v1147_v35 = vpop.f32.mrb[25].mxu1 }
 0x16a   :  { %v1075_v34 = vadd.f32 %v1074_v32, %v2194_v49  ;;  %v1076_v36 = vpop.f32.mrb[26].mxu0  ;;  %v1148_v38 = vadd.f32 %v1147_v35, %v2197_v50  ;;  %v1149_v40 = vpop.f32.mrb[26].mxu1 }
 0x16b   :  { %v1077_v39 = vadd.f32 %v1076_v36, %v2188_v46  ;;  %v1078_v41 = vpop.f32.mrb[27].mxu0  ;;  %v1150_v43 = vadd.f32 %v1149_v40, %v2191_v47  ;;  %v1151_v20 = vpop.f32.mrb[27].mxu1 }
 0x16c   :  { %v1578_v42 = vpack.c.bf16 %v1075_v34, %v1073_v29  ;;  %v1079_v44 = vadd.f32 %v1078_v41, %v2194_v49  ;;  %v1579_v3 = vpack.c.bf16 %v1148_v38, %v1146_v33  ;;  %v1152_v21 = vadd.f32 %v1151_v20, %v2197_v50 }
 0x16e   :  { %1374 = vst [vmem:[%s2282_s3 + $0x90] sm:$0xff] %v1578_v42  ;;  %v1582_v22 = vpack.c.bf16 %v1079_v44, %v1077_v39  ;;  %1375 = vst [vmem:[%s2282_s3 + $0x98] sm:$0xff] %v1579_v3  ;;  %v1583_v45 = vpack.c.bf16 %v1152_v21, %v1150_v43 }
 0x170   :  { %1378 = vst [vmem:[%s2282_s3 + $0xb0] sm:$0xff] %v1582_v22  ;;  %v1082_v51 = vpop.f32.mrb[28].mxu0  ;;  %1379 = vst [vmem:[%s2282_s3 + $0xb8] sm:$0xff] %v1583_v45  ;;  %v1155_v53 = vpop.f32.mrb[28].mxu1 }
 0x171   :  { %v1083_v52 = vadd.f32 %v1082_v51, %v2188_v46  ;;  %v1084_v54 = vpop.f32.mrb[29].mxu0  ;;  %v1156_v57 = vadd.f32 %v1155_v53, %v2191_v47  ;;  %v1157_v58 = vpop.f32.mrb[29].mxu1 }
 0x172   :  { %v1085_v19 = vadd.f32 %v1084_v54, %v2194_v49  ;;  %v1086_v59 = vpop.f32.mrb[30].mxu0  ;;  %v1158_v60 = vadd.f32 %v1157_v58, %v2197_v50  ;;  %v1159_v62 = vpop.f32.mrb[30].mxu1 }
 0x173   :  { %v1087_v61 = vadd.f32 %v1086_v59, %v2188_v46  ;;  %v1088_v63 = vpop.f32.mrb[31].mxu0  ;;  %v1160_v37 = vadd.f32 %v1159_v62, %v2191_v47  ;;  %v1161_v2 = vpop.f32.mrb[31].mxu1 }
 0x174   :  { %v1586_v0 = vpack.c.bf16 %v1085_v19, %v1083_v52  ;;  %v1089_v1 = vadd.f32 %v1088_v63, %v2194_v49  ;;  %v1587_v4 = vpack.c.bf16 %v1158_v60, %v1156_v57  ;;  %v1162_v5 = vadd.f32 %v1161_v2, %v2197_v50 }
 0x176   :  { %1382 = vst [vmem:[%s2282_s3 + $0xd0] sm:$0xff] %v1586_v0  ;;  %v1590_v6 = vpack.c.bf16 %v1089_v1, %v1087_v61  ;;  %1383 = vst [vmem:[%s2282_s3 + $0xd8] sm:$0xff] %v1587_v4  ;;  %v1591_v46 = vpack.c.bf16 %v1162_v5, %v1160_v37 }
 0x178   :  { %1386 = vst [vmem:[%s2282_s3 + $0xf0] sm:$0xff] %v1590_v6  ;;  %1387 = vst [vmem:[%s2282_s3 + $0xf8] sm:$0xff] %v1591_v46 }

// kernel: binary_classifier_forward.9
= control target key start
LH: loop header
LB: loop body
LE: loop exit
PB: predicated region body
PF: predicated region fallthrough
CT: control target
= control target key end

     0   :  { %v455_v14 = vmov 0   ;;  %vm302_vm0 = vcmask 261120   ;;  %vm342_vm1 = vcmask 7168   ;;  %s607_s1 = inlined_call_operand.vmem [shape: bf16[256,32], index: 1, kind: input, shape index: {}]   ;;  %s608_s0 = inlined_call_operand.vmem [shape: bf16[64,256], index: 0, kind: input, shape index: {}]   ;;  %s609_s4 = inlined_call_operand.<no memory space> [shape: f32[1,1], index: 4, kind: input, shape index: {}]   ;;  %s610_s2 = inlined_call_operand.vmem [shape: f32[1,32], index: 2, kind: input, shape index: {}]   ;;  %s611_s3 = inlined_call_operand.vmem [shape: f32[1,32], index: 3, kind: input, shape index: {}]   ;;  %s612_s5 = inlined_call_operand.vmem [shape: f32[64,1], index: 5, kind: output, shape index: {}]  }
   0x1   :  { %v439_v0 = vld [vmem:[%s607_s1 + $0x40] sm:$0xff]   ;;  %v441_v2 = vld [vmem:[%s607_s1 + $0x48] sm:$0xff]   ;;  %v443_v4 = vld [vmem:[%s607_s1 + $0x50] sm:$0xff]   ;;  %v10_v41 = vstv %s609_s4 }
   0x2   :  { %v440_v1 = vld [vmem:[%s607_s1] sm:$0xff]   ;;  %382 = vmatprep.subr.bf16.mxu0 %v439_v0  ;;  %422 = vmatprep.subr.bf16.mxu1 %v439_v0  ;;  %v442_v3 = vld [vmem:[%s607_s1 + $0x8] sm:$0xff]   ;;  %v444_v5 = vld [vmem:[%s607_s1 + $0x10] sm:$0xff]   ;;  %11 = vst [vmem:[#allocation2] sm:$0x1] %v10_v41 }
   0x3   :  { %383 = vmatpush3.bf16.msra.mxu0 %v440_v1  ;;  %430 = vmatpush3.bf16.msra.mxu1 %v440_v1  ;;  %v445_v6 = vld [vmem:[%s607_s1 + $0x58] sm:$0xff]   ;;  %v447_v8 = vld [vmem:[%s607_s1 + $0x60] sm:$0xff]   ;;  %v449_v10 = vld [vmem:[%s607_s1 + $0x68] sm:$0xff]  }
   0x4   :  { %384 = vmatprep.subr.bf16.mxu0 %v441_v2  ;;  %423 = vmatprep.subr.bf16.mxu1 %v441_v2  ;;  %v446_v7 = vld [vmem:[%s607_s1 + $0x18] sm:$0xff]   ;;  %v448_v9 = vld [vmem:[%s607_s1 + $0x20] sm:$0xff]   ;;  %v24_v12 = vld [vmem:[%s608_s0 + $0x8] sm:$0xff] }
   0x5   :  { %v23_v11 = vld [vmem:[%s608_s0] sm:$0xff]  ;;  %v32_v16 = vmax.bf16 %v455_v14, %v24_v12  ;;  %v28_v17 = vld [vmem:[%s608_s0 + $0x28] sm:$0xff]  ;;  %v451_v22 = vld [vmem:[%s607_s1 + $0x70] sm:$0xff]  }
   0x6   :  { %v27_v13 = vld [vmem:[%s608_s0 + $0x20] sm:$0xff]  ;;  %v31_v15 = vmax.bf16 %v455_v14, %v23_v11  ;;  %v36_v19 = vmax.bf16 %v455_v14, %v28_v17  ;;  %v450_v20 = vld [vmem:[%s607_s1 + $0x28] sm:$0xff]   ;;  %v452_v24 = vld [vmem:[%s607_s1 + $0x30] sm:$0xff]  }
   0x7   :  { %385 = vmatpush3.bf16.msra.mxu0 %v442_v3  ;;  %431 = vmatpush3.bf16.msra.mxu1 %v442_v3  ;;  %v35_v18 = vmax.bf16 %v455_v14, %v27_v13  ;;  %v453_v25 = vld [vmem:[%s607_s1 + $0x78] sm:$0xff]   ;;  %v25_v26 = vld [vmem:[%s608_s0 + $0x10] sm:$0xff]  ;;  %v355_v44 = vld [vmem:[%s610_s2] ss:$0 sm:$0xff] }
   0x8   :  { %386 = vmatprep.subr.bf16.mxu0 %v443_v4  ;;  %424 = vmatprep.subr.bf16.mxu1 %v443_v4  ;;  %v357_v21 = vcombine.high %v31_v15, %v32_v16  ;;  %v26_v27 = vld [vmem:[%s608_s0 + $0x18] sm:$0xff]  ;;  %v29_v28 = vld [vmem:[%s608_s0 + $0x30] sm:$0xff]  ;;  %v33_v30 = vmax.bf16 %v455_v14, %v25_v26  ;;  %v356_v35 = vcombine.low %v31_v15, %v32_v16  ;;  %v380_v57 = vld [vmem:[%s611_s3] ss:$0 sm:$0xff] }
   0x9   :  { %v361_v23 = vcombine.high %v35_v18, %v36_v19  ;;  %v30_v29 = vld [vmem:[%s608_s0 + $0x38] sm:$0xff]  ;;  %v34_v32 = vmax.bf16 %v455_v14, %v26_v27  ;;  %v37_v33 = vmax.bf16 %v455_v14, %v29_v28  ;;  %v360_v36 = vcombine.low %v35_v18, %v36_v19 }
   0xa   :  { %246 = vmatprep.mubr.bf16.mxu0 %v357_v21  ;;  %v454_v31 = vld [vmem:[%s607_s1 + $0x38] sm:$0xff]   ;;  %v38_v34 = vmax.bf16 %v455_v14, %v30_v29 }
   0xb   :  { %387 = vmatpush3.bf16.msra.mxu0 %v444_v5  ;;  %432 = vmatpush3.bf16.msra.mxu1 %v444_v5  ;;  %v359_v37 = vcombine.high %v33_v30, %v34_v32  ;;  %v358_v39 = vcombine.low %v33_v30, %v34_v32 }
   0xc   :  { %388 = vmatprep.subr.bf16.mxu0 %v445_v6  ;;  %425 = vmatprep.subr.bf16.mxu1 %v445_v6  ;;  %v363_v38 = vcombine.high %v37_v33, %v38_v34  ;;  %v362_v40 = vcombine.low %v37_v33, %v38_v34 }
   0xd   :  { %262 = vmatprep.mubr.bf16.mxu1 %v361_v23 }
   0xf   :  { %389 = vmatpush3.bf16.msra.mxu0 %v446_v7  ;;  %433 = vmatpush3.bf16.msra.mxu1 %v446_v7 }
  0x10   :  { %390 = vmatprep.subr.bf16.mxu0 %v447_v8  ;;  %426 = vmatprep.subr.bf16.mxu1 %v447_v8 }
  0x13   :  { %391 = vmatpush3.bf16.msra.mxu0 %v448_v9  ;;  %434 = vmatpush3.bf16.msra.mxu1 %v448_v9 }
  0x14   :  { %392 = vmatprep.subr.bf16.mxu0 %v449_v10  ;;  %427 = vmatprep.subr.bf16.mxu1 %v449_v10 }
  0x17   :  { %393 = vmatpush3.bf16.msra.mxu0 %v450_v20  ;;  %435 = vmatpush3.bf16.msra.mxu1 %v450_v20 }
  0x18   :  { %394 = vmatprep.subr.bf16.mxu0 %v451_v22  ;;  %428 = vmatprep.subr.bf16.mxu1 %v451_v22 }
  0x1b   :  { %395 = vmatpush3.bf16.msra.mxu0 %v452_v24  ;;  %436 = vmatpush3.bf16.msra.mxu1 %v452_v24 }
  0x1c   :  { %396 = vmatprep.subr.bf16.mxu0 %v453_v25  ;;  %429 = vmatprep.subr.bf16.mxu1 %v453_v25 }
  0x1f   :  { %397 = vmatpush3.bf16.msra.mxu0 %v454_v31  ;;  %437 = vmatpush3.bf16.msra.mxu1 %v454_v31 }
  0x22   :  { %247 = vmatmul.mubr.bf16.vlgmr.msra.gmra.mrb[0].mxu0 %v356_v35  ;;  %263 = vmatmul.mubr.bf16.vlgmr.msra.gmra.mrb[0].mxu1 %v360_v36  ;;  %v381_v36 = vld [vmem:[#allocation2] ss:$0 sm:$0xff] }
  0x23   :  { %254 = vmatprep.mubr.bf16.mxu0 %v359_v37  ;;  %270 = vmatprep.mubr.bf16.mxu1 %v363_v38 }
  0x2a   :  { %255 = vmatmul.mubr.bf16.gmra.mrb[4].mxu0 %v358_v39  ;;  %271 = vmatmul.mubr.bf16.gmra.mrb[4].mxu1 %v362_v40 }
  0xf5   :  { %v398_v42 = vpop.f32.mrb[0].mxu0  ;;  %v410_v43 = vpop.f32.mrb[0].mxu1 }
  0xf6   :  { %v399_v45 = vpop.f32.mrb[1].mxu0  ;;  %v411_v46 = vpop.f32.mrb[1].mxu1 }
  0xf7   :  { %v400_v47 = vadd.f32 %v399_v45, %v398_v42  ;;  %v412_v48 = vadd.f32 %v411_v46, %v410_v43  ;;  %v401_v49 = vpop.f32.mrb[2].mxu0  ;;  %v413_v50 = vpop.f32.mrb[2].mxu1 }
  0xf8   :  { %v402_v51 = vpop.f32.mrb[3].mxu0  ;;  %v414_v52 = vpop.f32.mrb[3].mxu1 }
  0xf9   :  { %v249_v53 = vadd.f32 %v400_v47, %v355_v44  ;;  %v265_v54 = vadd.f32 %v412_v48, %v355_v44  ;;  %v403_v55 = vadd.f32 %v402_v51, %v401_v49  ;;  %v415_v56 = vadd.f32 %v414_v52, %v413_v50 }
  0xfb   :  { %v279_v58 = vmax.f32 %v249_v53, 0.0  ;;  %v283_v59 = vmax.f32 %v265_v54, 0.0  ;;  %v252_v60 = vadd.f32 %v403_v55, %v355_v44  ;;  %v268_v61 = vadd.f32 %v415_v56, %v355_v44 }
  0xfd   :  { %v284_v62 = vmax.f32 %v268_v61, 0.0  ;;  %v404_v63 = vpop.f32.mrb[4].mxu0  ;;  %v416_v0 = vpop.f32.mrb[4].mxu1  ;;  %v294_v1 = vmul.f32 %v380_v57, %v279_v58  ;;  %v280_v2 = vmax.f32 %v252_v60, 0.0  ;;  %v298_v5 = vmul.f32 %v380_v57, %v283_v59 }
  0xfe   :  { %v405_v3 = vpop.f32.mrb[5].mxu0  ;;  %v417_v4 = vpop.f32.mrb[5].mxu1 }
  0xff   :  { %v406_v6 = vadd.f32 %v405_v3, %v404_v63  ;;  %v407_v7 = vpop.f32.mrb[6].mxu0  ;;  %v303_v8 = vsel %vm302_vm0, %v294_v1, 0.0  ;;  %v418_v9 = vadd.f32 %v417_v4, %v416_v0  ;;  %v419_v10 = vpop.f32.mrb[6].mxu1  ;;  %v299_v11 = vmul.f32 %v380_v57, %v284_v62 }
 0x100   :  { %v408_v12 = vpop.f32.mrb[7].mxu0  ;;  %304 = vadd.xlane.f32.xlu0 %v303_v8  ;;  %v420_v13 = vpop.f32.mrb[7].mxu1  ;;  %v315_v19 = vsel %vm302_vm0, %v298_v5, 0.0  ;;  %v295_v23 = vmul.f32 %v380_v57, %v280_v2 }
 0x101   :  { %v257_v14 = vadd.f32 %v406_v6, %v355_v44  ;;  %v409_v15 = vadd.f32 %v408_v12, %v407_v7  ;;  %v273_v16 = vadd.f32 %v418_v9, %v355_v44  ;;  %v318_v17 = vsel %vm302_vm0, %v299_v11, 0.0 }
 0x102   :  { %319 = vadd.xlane.f32.xlu1 %v318_v17  ;;  %v421_v18 = vadd.f32 %v420_v13, %v419_v10  ;;  %v306_v30 = vsel %vm302_vm0, %v295_v23, 0.0 }
 0x103   :  { %v281_v20 = vmax.f32 %v257_v14, 0.0  ;;  %v260_v21 = vadd.f32 %v409_v15, %v355_v44  ;;  %v285_v22 = vmax.f32 %v273_v16, 0.0 }
 0x104   :  { %v276_v24 = vadd.f32 %v421_v18, %v355_v44  ;;  %316 = vadd.xlane.f32.xlu0 %v315_v19 }
 0x105   :  { %v282_v25 = vmax.f32 %v260_v21, 0.0  ;;  %v296_v26 = vmul.f32 %v380_v57, %v281_v20  ;;  %v300_v27 = vmul.f32 %v380_v57, %v285_v22 }
 0x106   :  { %v286_v28 = vmax.f32 %v276_v24, 0.0 }
 0x107   :  { %v309_v29 = vsel %vm302_vm0, %v296_v26, 0.0  ;;  %v297_v31 = vmul.f32 %v380_v57, %v282_v25  ;;  %v321_v32 = vsel %vm302_vm0, %v300_v27, 0.0 }
 0x108   :  { %310 = vadd.xlane.f32.xlu1 %v309_v29  ;;  %307 = vadd.xlane.f32.xlu0 %v306_v30  ;;  %v301_v34 = vmul.f32 %v380_v57, %v286_v28 }
 0x109   :  { %v312_v33 = vsel %vm302_vm0, %v297_v31, 0.0 }
 0x10a   :  { %v324_v35 = vsel %vm302_vm0, %v301_v34, 0.0 }
 0x10c   :  { %313 = vadd.xlane.f32.xlu1 %v312_v33  ;;  %322 = vadd.xlane.f32.xlu0 %v321_v32 }
 0x110   :  { %325 = vadd.xlane.f32.xlu1 %v324_v35 }
 0x18d   :  { %v305_v37 = vpop.xlane.xlu0 %304 }
 0x18e   :  { %v334_v38 = vadd.f32 %v381_v36, %v305_v37 }
 0x18f   :  { %v320_v39 = vpop.xlane.xlu1 %319 }
 0x190   :  { %343 = vst.msk [vmem:[%s612_s5] sm:$0xff] %vm342_vm1, %v334_v38  ;;  %v339_v40 = vadd.f32 %v381_v36, %v320_v39 }
 0x191   :  { %v317_v41 = vpop.xlane.xlu0 %316 }
 0x192   :  { %348 = vst.msk [vmem:[%s612_s5 + $0x28] sm:$0xff] %vm342_vm1, %v339_v40  ;;  %v338_v42 = vadd.f32 %v381_v36, %v317_v41 }
 0x194   :  { %347 = vst.msk [vmem:[%s612_s5 + $0x20] sm:$0xff] %vm342_vm1, %v338_v42 }
 0x195   :  { %v311_v43 = vpop.xlane.xlu1 %310  ;;  %v308_v44 = vpop.xlane.xlu0 %307 }
 0x196   :  { %v336_v45 = vadd.f32 %v381_v36, %v311_v43  ;;  %v335_v46 = vadd.f32 %v381_v36, %v308_v44 }
 0x198   :  { %345 = vst.msk [vmem:[%s612_s5 + $0x10] sm:$0xff] %vm342_vm1, %v336_v45  ;;  %344 = vst.msk [vmem:[%s612_s5 + $0x8] sm:$0xff] %vm342_vm1, %v335_v46 }
 0x199   :  { %v314_v47 = vpop.xlane.xlu1 %313  ;;  %v323_v48 = vpop.xlane.xlu0 %322 }
 0x19a   :  { %v337_v49 = vadd.f32 %v381_v36, %v314_v47  ;;  %v340_v50 = vadd.f32 %v381_v36, %v323_v48 }
 0x19c   :  { %346 = vst.msk [vmem:[%s612_s5 + $0x18] sm:$0xff] %vm342_vm1, %v337_v49  ;;  %349 = vst.msk [vmem:[%s612_s5 + $0x30] sm:$0xff] %vm342_vm1, %v340_v50 }
 0x19d   :  { %v326_v51 = vpop.xlane.xlu1 %325 }
 0x19e   :  { %v341_v52 = vadd.f32 %v381_v36, %v326_v51 }
 0x1a0   :  { %350 = vst.msk [vmem:[%s612_s5 + $0x38] sm:$0xff] %vm342_vm1, %v341_v52 }

</bundles_post_ra>
